<compile_context>
chip_gen: v7x
topology: tpu7x:2x2x1
jax: 0.10.0
libtpu: 0.0.40
codegen_flags: <defaults>
</compile_context>

<pallas_src>
import jax
import jax.numpy as jnp
from jax.experimental import pallas as pl
from jax.experimental.pallas import tpu as pltpu

FEAT_EACH = 2048          # each submodel emits 2048 features -> concat = 4096
HIDDEN = 512              # fc1 out_features
IN_DIM = 64               # synthetic per-branch input feature size


def _concat_mlp_kernel(x1_ref, x2_ref,
                       m1w_ref, m1b_ref, m2w_ref, m2b_ref,
                       w1a_ref, w1b_ref, b1_ref,
                       w2_ref, b2_ref,
                       out_ref):
    # Cast activations to bf16 in-kernel (free on VPU; avoids a wrapper convert).
    x1 = x1_ref[...].astype(jnp.bfloat16)                               # (B, 64)
    x2 = x2_ref[...].astype(jnp.bfloat16)                               # (B, 64)

    # Front-end feature extractors (fused): Linear(64 -> 2048), bf16 MXU, f32 acc.
    h1 = (jnp.dot(x1, m1w_ref[...],
                  preferred_element_type=jnp.float32) + m1b_ref[...])   # (B, 2048) f32
    h2 = (jnp.dot(x2, m2w_ref[...],
                  preferred_element_type=jnp.float32) + m2b_ref[...])   # (B, 2048) f32

    # fc1 on the (implicit) concatenation: split-weight matmul, f32 accumulation.
    z = (jnp.dot(h1.astype(jnp.bfloat16), w1a_ref[...],
                 preferred_element_type=jnp.float32)
         + jnp.dot(h2.astype(jnp.bfloat16), w1b_ref[...],
                   preferred_element_type=jnp.float32)
         + b1_ref[...])                                                 # (B, 512) f32

    # dropout: eval mode -> identity.

    # fc2 as a VPU multiply + XLU lane reduction (N=1 MXU matmul avoided).
    y = jnp.sum(z * w2_ref[...], axis=-1, keepdims=True) + b2_ref[...]  # (B, 1)
    out_ref[...] = y.astype(out_ref.dtype)


@jax.jit
def concat_model_forward(prep, x_hor, x_ver):
    """Fused forward: model_1/model_2 + concat + fc1 + dropout(eval) + fc2.

    prep : dict of pre-processed (pre-split / bf16-cast) parameters.
    x_hor, x_ver : (B, IN_DIM) f32
    returns (B, 1) f32
    """
    B = x_hor.shape[0]

    full = lambda shape: pl.BlockSpec(shape, lambda: (0,) * len(shape))

    flops = 2 * B * (IN_DIM * FEAT_EACH * 2          # model_1 + model_2
                     + FEAT_EACH * HIDDEN * 2        # fc1 (split into two matmuls)
                     + HIDDEN)                       # fc2 reduction
    bytes_accessed = (
        2 * B * IN_DIM * 4                           # x_hor, x_ver (f32)
        + 2 * IN_DIM * FEAT_EACH * 2                 # m1_w, m2_w (bf16)
        + 2 * FEAT_EACH * 4                          # m1_b, m2_b (f32)
        + 2 * FEAT_EACH * HIDDEN * 2                 # w1a, w1b (bf16)
        + 2 * HIDDEN * 4                             # b1, w2_row (f32)
        + 4                                          # b2
        + B * 4)                                     # output

    return pl.pallas_call(
        _concat_mlp_kernel,
        out_shape=jax.ShapeDtypeStruct((B, 1), jnp.float32),
        grid=(),
        in_specs=[
            full((B, IN_DIM)),              # x_hor (f32)
            full((B, IN_DIM)),              # x_ver (f32)
            full((IN_DIM, FEAT_EACH)),      # m1_w (bf16)
            full((1, FEAT_EACH)),           # m1_b (f32)
            full((IN_DIM, FEAT_EACH)),      # m2_w (bf16)
            full((1, FEAT_EACH)),           # m2_b (f32)
            full((FEAT_EACH, HIDDEN)),      # w1a  (bf16)
            full((FEAT_EACH, HIDDEN)),      # w1b  (bf16)
            full((1, HIDDEN)),              # b1   (f32)
            full((1, HIDDEN)),              # w2 as a row (f32)
            full((1, 1)),                   # b2   (f32)
        ],
        out_specs=full((B, 1)),
        compiler_params=pltpu.CompilerParams(vmem_limit_bytes=24 << 20),
        cost_estimate=pl.CostEstimate(flops=flops, transcendentals=0,
                                      bytes_accessed=bytes_accessed),
    )(x_hor, x_ver,
      prep["m1_w"], prep["m1_b"], prep["m2_w"], prep["m2_b"],
      prep["w1a"], prep["w1b"], prep["b1"],
      prep["w2_row"], prep["b2"])


def prepare_params(params):
    """One-time parameter preprocessing: bf16 cast of MXU operands and fc1
    weight split (fuses the concat).  Done once, outside the per-call path."""
    return {
        "m1_w": params["m1_w"].astype(jnp.bfloat16),                 # (64, 2048)
        "m1_b": params["m1_b"].reshape(1, FEAT_EACH),                # (1, 2048) f32
        "m2_w": params["m2_w"].astype(jnp.bfloat16),                 # (64, 2048)
        "m2_b": params["m2_b"].reshape(1, FEAT_EACH),                # (1, 2048) f32
        "w1a": params["fc1_w"][:FEAT_EACH].astype(jnp.bfloat16),     # (2048, 512)
        "w1b": params["fc1_w"][FEAT_EACH:].astype(jnp.bfloat16),     # (2048, 512)
        "b1": params["fc1_b"].reshape(1, HIDDEN),                    # (1, 512) f32
        "w2_row": params["fc2_w"].reshape(1, HIDDEN),                # (1, 512) f32
        "b2": params["fc2_b"].reshape(1, 1),                         # (1, 1)   f32
    }


def _init_linear(key, in_f, out_f):
    """Deterministic Linear params; returned as (in, out) so y = x @ W + b."""
    kw, kb = jax.random.split(key)
    bound = 1.0 / jnp.sqrt(in_f)
    w = jax.random.uniform(kw, (in_f, out_f), jnp.float32, -bound, bound)
    b = jax.random.uniform(kb, (out_f,), jnp.float32, -bound, bound)
    return w, b


if __name__ == "__main__":
    key = jax.random.PRNGKey(0)
    k_m1, k_m2, k_fc1, k_fc2, k_x1, k_x2 = jax.random.split(key, 6)

    params = {}
    params["m1_w"], params["m1_b"] = _init_linear(k_m1, IN_DIM, FEAT_EACH)
    params["m2_w"], params["m2_b"] = _init_linear(k_m2, IN_DIM, FEAT_EACH)
    params["fc1_w"], params["fc1_b"] = _init_linear(k_fc1, 2 * FEAT_EACH, HIDDEN)
    params["fc2_w"], params["fc2_b"] = _init_linear(k_fc2, HIDDEN, 1)

    prep = prepare_params(params)
    prep = jax.tree_util.tree_map(jax.block_until_ready, prep)

    B = 8
    x_hor = jax.random.normal(k_x1, (B, IN_DIM), jnp.float32)
    x_ver = jax.random.normal(k_x2, (B, IN_DIM), jnp.float32)

    out = concat_model_forward(prep, x_hor, x_ver)
    out = jax.block_until_ready(out)

    # Reference in plain JAX with the same precision scheme
    # (bf16 MXU operands, f32 accumulation; eval-mode dropout == identity).
    x1b = x_hor.astype(jnp.bfloat16)
    x2b = x_ver.astype(jnp.bfloat16)
    h1 = jnp.dot(x1b, params["m1_w"].astype(jnp.bfloat16),
                 preferred_element_type=jnp.float32) + params["m1_b"]
    h2 = jnp.dot(x2b, params["m2_w"].astype(jnp.bfloat16),
                 preferred_element_type=jnp.float32) + params["m2_b"]
    hcat = jnp.concatenate([h1.astype(jnp.bfloat16), h2.astype(jnp.bfloat16)], axis=1)
    z = jnp.dot(hcat, params["fc1_w"].astype(jnp.bfloat16),
                preferred_element_type=jnp.float32) + params["fc1_b"]
    ref = jnp.dot(z, params["fc2_w"], preferred_element_type=jnp.float32) + params["fc2_b"]

    assert out.shape == (B, 1)
    assert jnp.allclose(out, ref, atol=2e-3, rtol=2e-3), (
        f"max abs diff = {jnp.max(jnp.abs(out - ref))}")

    print("KERNEL_OK")
</pallas_src>

<mosaic_0001>
module attributes {stable_mosaic.version = 11 : i64} {
  func.func @_concat_mlp_kernel(%arg0: memref<8x64xf32, #tpu.memory_space<vmem>>, %arg1: memref<8x64xf32, #tpu.memory_space<vmem>>, %arg2: memref<64x2048xbf16, #tpu.memory_space<vmem>>, %arg3: memref<1x2048xf32, #tpu.memory_space<vmem>>, %arg4: memref<64x2048xbf16, #tpu.memory_space<vmem>>, %arg5: memref<1x2048xf32, #tpu.memory_space<vmem>>, %arg6: memref<2048x512xbf16, #tpu.memory_space<vmem>>, %arg7: memref<2048x512xbf16, #tpu.memory_space<vmem>>, %arg8: memref<1x512xf32, #tpu.memory_space<vmem>>, %arg9: memref<1x512xf32, #tpu.memory_space<vmem>>, %arg10: memref<1x1xf32, #tpu.memory_space<vmem>>, %arg11: memref<8x1xf32, #tpu.memory_space<vmem>>) attributes {dimension_semantics = [], scalar_prefetch = 0 : i64, scratch_operands = 0 : i64, tpu.core_type = #tpu.core_type<tc>} {
    %c0 = arith.constant 0 : index
    %c0_0 = arith.constant 0 : index
    %0 = vector.load %arg0[%c0, %c0_0] : memref<8x64xf32, #tpu.memory_space<vmem>>, vector<8x64xf32>
    %1 = arith.truncf %0 : vector<8x64xf32> to vector<8x64xbf16>
    %c0_1 = arith.constant 0 : index
    %c0_2 = arith.constant 0 : index
    %2 = vector.load %arg1[%c0_1, %c0_2] : memref<8x64xf32, #tpu.memory_space<vmem>>, vector<8x64xf32>
    %3 = arith.truncf %2 : vector<8x64xf32> to vector<8x64xbf16>
    %c0_3 = arith.constant 0 : index
    %c0_4 = arith.constant 0 : index
    %4 = vector.load %arg2[%c0_3, %c0_4] : memref<64x2048xbf16, #tpu.memory_space<vmem>>, vector<64x2048xbf16>
    %cst = arith.constant dense<0.000000e+00> : vector<8x2048xf32>
    %5 = tpu.matmul %1, %4, %cst {dimension_numbers = #tpu.dot_dimension_numbers<[1], [0], [0], [1], [0, 0, 1, 1], [], []>} : vector<8x64xbf16>, vector<64x2048xbf16>, vector<8x2048xf32> -> vector<8x2048xf32>
    %c0_5 = arith.constant 0 : index
    %c0_6 = arith.constant 0 : index
    %6 = vector.load %arg3[%c0_5, %c0_6] : memref<1x2048xf32, #tpu.memory_space<vmem>>, vector<1x2048xf32>
    %7 = vector.broadcast %6 : vector<1x2048xf32> to vector<8x2048xf32>
    %8 = arith.addf %5, %7 : vector<8x2048xf32>
    %c0_7 = arith.constant 0 : index
    %c0_8 = arith.constant 0 : index
    %9 = vector.load %arg4[%c0_7, %c0_8] : memref<64x2048xbf16, #tpu.memory_space<vmem>>, vector<64x2048xbf16>
    %cst_9 = arith.constant dense<0.000000e+00> : vector<8x2048xf32>
    %10 = tpu.matmul %3, %9, %cst_9 {dimension_numbers = #tpu.dot_dimension_numbers<[1], [0], [0], [1], [0, 0, 1, 1], [], []>} : vector<8x64xbf16>, vector<64x2048xbf16>, vector<8x2048xf32> -> vector<8x2048xf32>
    %c0_10 = arith.constant 0 : index
    %c0_11 = arith.constant 0 : index
    %11 = vector.load %arg5[%c0_10, %c0_11] : memref<1x2048xf32, #tpu.memory_space<vmem>>, vector<1x2048xf32>
    %12 = vector.broadcast %11 : vector<1x2048xf32> to vector<8x2048xf32>
    %13 = arith.addf %10, %12 : vector<8x2048xf32>
    %14 = arith.truncf %8 : vector<8x2048xf32> to vector<8x2048xbf16>
    %c0_12 = arith.constant 0 : index
    %c0_13 = arith.constant 0 : index
    %15 = vector.load %arg6[%c0_12, %c0_13] : memref<2048x512xbf16, #tpu.memory_space<vmem>>, vector<2048x512xbf16>
    %cst_14 = arith.constant dense<0.000000e+00> : vector<8x512xf32>
    %16 = tpu.matmul %14, %15, %cst_14 {dimension_numbers = #tpu.dot_dimension_numbers<[1], [0], [0], [1], [0, 0, 1, 1], [], []>} : vector<8x2048xbf16>, vector<2048x512xbf16>, vector<8x512xf32> -> vector<8x512xf32>
    %17 = arith.truncf %13 : vector<8x2048xf32> to vector<8x2048xbf16>
    %c0_15 = arith.constant 0 : index
    %c0_16 = arith.constant 0 : index
    %18 = vector.load %arg7[%c0_15, %c0_16] : memref<2048x512xbf16, #tpu.memory_space<vmem>>, vector<2048x512xbf16>
    %cst_17 = arith.constant dense<0.000000e+00> : vector<8x512xf32>
    %19 = tpu.matmul %17, %18, %cst_17 {dimension_numbers = #tpu.dot_dimension_numbers<[1], [0], [0], [1], [0, 0, 1, 1], [], []>} : vector<8x2048xbf16>, vector<2048x512xbf16>, vector<8x512xf32> -> vector<8x512xf32>
    %20 = arith.addf %16, %19 : vector<8x512xf32>
    %c0_18 = arith.constant 0 : index
    %c0_19 = arith.constant 0 : index
    %21 = vector.load %arg8[%c0_18, %c0_19] : memref<1x512xf32, #tpu.memory_space<vmem>>, vector<1x512xf32>
    %22 = vector.broadcast %21 : vector<1x512xf32> to vector<8x512xf32>
    %23 = arith.addf %20, %22 : vector<8x512xf32>
    %c0_20 = arith.constant 0 : index
    %c0_21 = arith.constant 0 : index
    %24 = vector.load %arg9[%c0_20, %c0_21] : memref<1x512xf32, #tpu.memory_space<vmem>>, vector<1x512xf32>
    %25 = vector.broadcast %24 : vector<1x512xf32> to vector<8x512xf32>
    %26 = arith.mulf %23, %25 : vector<8x512xf32>
    %cst_22 = arith.constant dense<0.000000e+00> : vector<8xf32>
    %27 = vector.multi_reduction <add>, %26, %cst_22 [1] : vector<8x512xf32> to vector<8xf32>
    %28 = vector.shape_cast %27 : vector<8xf32> to vector<8x1xf32>
    %c0_23 = arith.constant 0 : index
    %c0_24 = arith.constant 0 : index
    %29 = vector.load %arg10[%c0_23, %c0_24] : memref<1x1xf32, #tpu.memory_space<vmem>>, vector<1x1xf32>
    %30 = vector.broadcast %29 : vector<1x1xf32> to vector<8x1xf32>
    %31 = arith.addf %28, %30 : vector<8x1xf32>
    %c0_25 = arith.constant 0 : index
    %c0_26 = arith.constant 0 : index
    %32 = vector.load %arg11[%c0_25, %c0_26] : memref<8x1xf32, #tpu.memory_space<vmem>>, vector<8x1xf32>
    tpu.vector_store %arg11[%c0_25, %c0_26], %31 {strides = array<i32>} : memref<8x1xf32, #tpu.memory_space<vmem>>, vector<8x1xf32>,
    return
  }
}

</mosaic_0001>

<bundles_post_ra>
// kernel: concat_model_forward.1
= control target key start
LH: loop header
LB: loop body
LE: loop exit
PB: predicated region body
PF: predicated region fallthrough
CT: control target
= control target key end

     0   :  { %s12939_s0 = inlined_call_operand.hbm [shape: f32[8,64], index: 0, kind: input, shape index: {}]   ;;  %s12940_s1 = inlined_call_operand.hbm [shape: f32[8,64], index: 1, kind: input, shape index: {}]   ;;  %s12941_s2 = inlined_call_operand.hbm [shape: bf16[64,2048], index: 2, kind: input, shape index: {}]   ;;  %s12942_s3 = inlined_call_operand.hbm [shape: f32[1,2048], index: 3, kind: input, shape index: {}]   ;;  %s12943_s4 = inlined_call_operand.hbm [shape: bf16[64,2048], index: 4, kind: input, shape index: {}]   ;;  %s12944_s5 = inlined_call_operand.hbm [shape: f32[1,2048], index: 5, kind: input, shape index: {}]   ;;  %s12945_s6 = inlined_call_operand.hbm [shape: bf16[2048,512], index: 6, kind: input, shape index: {}]   ;;  %s12946_s7 = inlined_call_operand.hbm [shape: bf16[2048,512], index: 7, kind: input, shape index: {}]   ;;  %s12947_s8 = inlined_call_operand.hbm [shape: f32[1,512], index: 8, kind: input, shape index: {}]   ;;  %s12948_s9 = inlined_call_operand.hbm [shape: f32[1,512], index: 9, kind: input, shape index: {}]   ;;  %s12949_s10 = inlined_call_operand.<no memory space> [shape: f32[1,1], index: 10, kind: input, shape index: {}]   ;;  %s12950_s11 = inlined_call_operand.vmem [shape: f32[8,1], index: 11, kind: output, shape index: {}]  }
   0x1   :  { %v16_v0 = vstv %s12949_s10 }
   0x2   :  { %17 = vst [vmem:[#allocation2] sm:$0x1] %v16_v0 }
   0x3   :  { %18 = vsyncpa [#allocation4], 0 }
   0x4   :  { %19 = vsyncpa [#allocation6], 0 }
   0x5   :  { %20 = vsyncpa [#allocation9], 0 }
   0x6   :  { %21 = vsyncpa [#allocation12], 0 }
   0x7   :  { %22 = vsyncpa [#allocation15], 0 }
   0x8   :  { %23 = vsyncpa [#allocation18], 0  ;;  %s12286_s19 = smov [#allocation5]   ;;  %s12287_s21 = smov [#allocation8]  }
   0x9   :  { %s40_s20 = sshll.u32 %s12286_s19, 4  ;;  %s62_s22 = sshll.u32 %s12287_s21, 4  ;;  %s41_s20 = int_to_ptr.vmem [resolvable:$true] %s40_s20  ;;  %s63_s22 = int_to_ptr.vmem [resolvable:$true] %s62_s22 }
   0xa   :  { %s12054_s25 = scalar_lea.hbm %s12940_s1, 128 }
   0xb   :  { %p12055_p0 = scmp.ne.s32.totalorder %s12940_s1, %s12054_s25  ;;  %p12058_p1 = scmp.lt.u32.totalorder %s12054_s25, %s12940_s1 }
   0xd   :  { %p12060_p2 = pnand %p12058_p1, %p12055_p0 }
   0xf   :  { %12063 = shalt.err (!%p12060_p2)
}
  0x10   :  { %s12064_s29 = scalar_lea.vmem %s41_s20, 128  ;;  %p12069_p4 = scmp.lt.s32.totalorder %s41_s20, %s41_s20 }
  0x11   :  { %p12065_p3 = scmp.ne.s32.totalorder %s41_s20, %s12064_s29  ;;  %p12070_p5 = scmp.lt.s32.totalorder %s12064_s29, %s12064_s29 }
  0x13   :  { %p12071_p6 = por %p12070_p5, %p12069_p4 }
  0x15   :  { %p12072_p7 = pnand %p12071_p6, %p12065_p3 }
  0x17   :  { %12075 = shalt.err (!%p12072_p7)
}
  0x18   :  { %43 = dma.hbm_to_vmem [thread:$0]  %s12940_s1, 128, %s41_s20, [#allocation6]  }
  0x19   :  { %s12076_s15 = scalar_lea.hbm %s12942_s3, 256 }
  0x1a   :  { %p12077_p8 = scmp.ne.s32.totalorder %s12942_s3, %s12076_s15  ;;  %p12080_p9 = scmp.lt.u32.totalorder %s12076_s15, %s12942_s3 }
  0x1c   :  { %p12082_p10 = pnand %p12080_p9, %p12077_p8 }
  0x1e   :  { %12085 = shalt.err (!%p12082_p10)
}
  0x1f   :  { %s12086_s21 = scalar_lea.vmem %s63_s22, 256  ;;  %p12091_p12 = scmp.lt.s32.totalorder %s63_s22, %s63_s22 }
  0x20   :  { %p12087_p11 = scmp.ne.s32.totalorder %s63_s22, %s12086_s21  ;;  %p12092_p13 = scmp.lt.s32.totalorder %s12086_s21, %s12086_s21 }
  0x22   :  { %p12093_p0 = por %p12092_p13, %p12091_p12 }
  0x24   :  { %p12094_p1 = pnand %p12093_p0, %p12087_p11 }
  0x26   :  { %12097 = shalt.err (!%p12094_p1)
}
  0x27   :  { %65 = dma.hbm_to_vmem [thread:$0]  %s12942_s3, 256, %s63_s22, [#allocation9]  }
  0x28   :  { %s12288_s23 = smov [#allocation11]   ;;  %s12098_s27 = scalar_lea.hbm %s12944_s5, 256 }
  0x29   :  { %s84_s24 = sshll.u32 %s12288_s23, 4  ;;  %p12099_p2 = scmp.ne.s32.totalorder %s12944_s5, %s12098_s27  ;;  %s85_s24 = int_to_ptr.vmem [resolvable:$true] %s84_s24 }
  0x2a   :  { %p12102_p3 = scmp.lt.u32.totalorder %s12098_s27, %s12944_s5 }
  0x2c   :  { %p12104_p4 = pnand %p12102_p3, %p12099_p2 }
  0x2e   :  { %12107 = shalt.err (!%p12104_p4)
}
  0x2f   :  { %s12108_s12 = scalar_lea.vmem %s85_s24, 256  ;;  %p12113_p6 = scmp.lt.s32.totalorder %s85_s24, %s85_s24 }
  0x30   :  { %p12109_p5 = scmp.ne.s32.totalorder %s85_s24, %s12108_s12  ;;  %p12114_p7 = scmp.lt.s32.totalorder %s12108_s12, %s12108_s12 }
  0x32   :  { %p12115_p8 = por %p12114_p7, %p12113_p6 }
  0x34   :  { %p12116_p9 = pnand %p12115_p8, %p12109_p5 }
  0x36   :  { %12119 = shalt.err (!%p12116_p9)
}
  0x37   :  { %87 = dma.hbm_to_vmem [thread:$0]  %s12944_s5, 256, %s85_s24, [#allocation12]  }
  0x38   :  { %s12289_s13 = smov [#allocation14]   ;;  %s12290_s15 = smov [#allocation3]  }
  0x39   :  { %s105_s14 = sshll.u32 %s12289_s13, 4  ;;  %s30_s16 = sshll.u32 %s12290_s15, 4  ;;  %s106_s14 = int_to_ptr.vmem [resolvable:$true] %s105_s14  ;;  %s31_s16 = int_to_ptr.vmem [resolvable:$true] %s30_s16 }
  0x3a   :  { %s12120_s19 = scalar_lea.hbm %s12946_s7, 65536 }
  0x3b   :  { %p12121_p10 = scmp.ne.s32.totalorder %s12946_s7, %s12120_s19  ;;  %p12124_p11 = scmp.lt.u32.totalorder %s12120_s19, %s12946_s7 }
  0x3d   :  { %p12126_p12 = pnand %p12124_p11, %p12121_p10 }
  0x3f   :  { %12129 = shalt.err (!%p12126_p12)
}
  0x40   :  { %s12130_s5 = scalar_lea.vmem %s106_s14, 65536  ;;  %p12135_p0 = scmp.lt.s32.totalorder %s106_s14, %s106_s14 }
  0x41   :  { %p12131_p13 = scmp.ne.s32.totalorder %s106_s14, %s12130_s5  ;;  %p12136_p1 = scmp.lt.s32.totalorder %s12130_s5, %s12130_s5 }
  0x43   :  { %p12137_p2 = por %p12136_p1, %p12135_p0 }
  0x45   :  { %p12138_p3 = pnand %p12137_p2, %p12131_p13 }
  0x47   :  { %12141 = shalt.err (!%p12138_p3)
}
  0x48   :  { %s12291_s24 = smov 256   ;;  %s12292_s25 = smov 16  }
  0x49   :  { %111 = dma.hbm_to_vmem [thread:$0]  %s12946_s7, 65536, %s106_s14, [#allocation15], %s12291_s24, %s12291_s24, %s12292_s25  }
  0x4a   :  { %s12142_s29 = scalar_lea.hbm %s12939_s0, 128 }
  0x4b   :  { %p12143_p4 = scmp.ne.s32.totalorder %s12939_s0, %s12142_s29  ;;  %p12146_p5 = scmp.lt.u32.totalorder %s12142_s29, %s12939_s0 }
  0x4d   :  { %p12148_p6 = pnand %p12146_p5, %p12143_p4 }
  0x4f   :  { %12151 = shalt.err (!%p12148_p6)
}
  0x50   :  { %s12152_s13 = scalar_lea.vmem %s31_s16, 128  ;;  %p12157_p8 = scmp.lt.s32.totalorder %s31_s16, %s31_s16 }
  0x51   :  { %p12153_p7 = scmp.ne.s32.totalorder %s31_s16, %s12152_s13  ;;  %p12158_p9 = scmp.lt.s32.totalorder %s12152_s13, %s12152_s13 }
  0x53   :  { %p12159_p10 = por %p12158_p9, %p12157_p8 }
  0x55   :  { %p12160_p11 = pnand %p12159_p10, %p12153_p7 }
  0x57   :  { %12163 = shalt.err (!%p12160_p11)
}
  0x58   :  { %33 = dma.hbm_to_vmem [thread:$0]  %s12939_s0, 128, %s31_s16, [#allocation4]  }
  0x59   :  { %s12293_s15 = smov [#allocation7]   ;;  %s12164_s21 = scalar_lea.hbm %s12941_s2, 8192 }
  0x5a   :  { %s49_s17 = sshll.u32 %s12293_s15, 4  ;;  %p12165_p12 = scmp.ne.s32.totalorder %s12941_s2, %s12164_s21  ;;  %s50_s17 = int_to_ptr.vmem [resolvable:$true] %s49_s17 }
  0x5b   :  { %p12168_p13 = scmp.lt.u32.totalorder %s12164_s21, %s12941_s2 }
  0x5d   :  { %p12170_p0 = pnand %p12168_p13, %p12165_p12 }
  0x5f   :  { %12173 = shalt.err (!%p12170_p0)
}
  0x60   :  { %s12174_s26 = scalar_lea.vmem %s50_s17, 8192  ;;  %p12179_p2 = scmp.lt.s32.totalorder %s50_s17, %s50_s17 }
  0x61   :  { %p12175_p1 = scmp.ne.s32.totalorder %s50_s17, %s12174_s26  ;;  %p12180_p3 = scmp.lt.s32.totalorder %s12174_s26, %s12174_s26 }
  0x63   :  { %p12181_p4 = por %p12180_p3, %p12179_p2 }
  0x65   :  { %p12182_p5 = pnand %p12181_p4, %p12175_p1 }
  0x67   :  { %12185 = shalt.err (!%p12182_p5)
}
  0x68   :  { %s12294_s0 = smov 1024   ;;  %s12295_s16 = smov 64  }
  0x69   :  { %55 = dma.hbm_to_vmem [thread:$0]  %s12941_s2, 8192, %s50_s17, [#allocation6], %s12294_s0, %s12294_s0, %s12295_s16  }
  0x6a   :  { %s12296_s28 = smov [#allocation10]   ;;  %s12297_s30 = smov [#allocation13]  }
  0x6b   :  { %s71_s29 = sshll.u32 %s12296_s28, 4  ;;  %s93_s12 = sshll.u32 %s12297_s30, 4  ;;  %s72_s29 = int_to_ptr.vmem [resolvable:$true] %s71_s29  ;;  %s12439_s12 = int_to_ptr.vmem [resolvable:$true] %s93_s12 }
  0x6c   :  { %s12186_s13 = scalar_lea.hbm %s12943_s4, 8192 }
  0x6d   :  { %p12187_p6 = scmp.ne.s32.totalorder %s12943_s4, %s12186_s13  ;;  %p12190_p7 = scmp.lt.u32.totalorder %s12186_s13, %s12943_s4 }
  0x6f   :  { %p12192_p8 = pnand %p12190_p7, %p12187_p6 }
  0x71   :  { %12195 = shalt.err (!%p12192_p8)
}
  0x72   :  { %s12196_s2 = scalar_lea.vmem %s72_s29, 8192  ;;  %p12201_p10 = scmp.lt.s32.totalorder %s72_s29, %s72_s29 }
  0x73   :  { %p12197_p9 = scmp.ne.s32.totalorder %s72_s29, %s12196_s2  ;;  %p12202_p11 = scmp.lt.s32.totalorder %s12196_s2, %s12196_s2 }
  0x75   :  { %p12203_p12 = por %p12202_p11, %p12201_p10 }
  0x77   :  { %p12204_p13 = pnand %p12203_p12, %p12197_p9 }
  0x79   :  { %12207 = shalt.err (!%p12204_p13)
}
  0x7a   :  { %77 = dma.hbm_to_vmem [thread:$0]  %s12943_s4, 8192, %s72_s29, [#allocation9], %s12294_s0, %s12294_s0, %s12295_s16  }
  0x7b   :  { %s12208_s20 = scalar_lea.hbm %s12945_s6, 65536 }
  0x7c   :  { %p12209_p0 = scmp.ne.s32.totalorder %s12945_s6, %s12208_s20  ;;  %p12212_p1 = scmp.lt.u32.totalorder %s12208_s20, %s12945_s6 }
  0x7e   :  { %p12214_p2 = pnand %p12212_p1, %p12209_p0 }
  0x80   :  { %12217 = shalt.err (!%p12214_p2)
}
  0x81   :  { %s12218_s10 = scalar_lea.vmem %s12439_s12, 65536  ;;  %p12223_p4 = scmp.lt.s32.totalorder %s12439_s12, %s12439_s12 }
  0x82   :  { %p12219_p3 = scmp.ne.s32.totalorder %s12439_s12, %s12218_s10  ;;  %p12224_p5 = scmp.lt.s32.totalorder %s12218_s10, %s12218_s10 }
  0x84   :  { %p12225_p6 = por %p12224_p5, %p12223_p4 }
  0x86   :  { %p12226_p7 = pnand %p12225_p6, %p12219_p3 }
  0x88   :  { %12229 = shalt.err (!%p12226_p7)
}
  0x89   :  { %99 = dma.hbm_to_vmem [thread:$0]  %s12945_s6, 65536, %s12439_s12, [#allocation12], %s12291_s24, %s12291_s24, %s12292_s25  }
  0x8a   :  { %s12298_s16 = smov [#allocation16]   ;;  %s12299_s29 = smov [#allocation17]  }
  0x8b   :  { %s118_s28 = sshll.u32 %s12298_s16, 4  ;;  %s128_s30 = sshll.u32 %s12299_s29, 4  ;;  %s119_s28 = int_to_ptr.vmem [resolvable:$true] %s118_s28  ;;  %s129_s30 = int_to_ptr.vmem [resolvable:$true] %s128_s30 }
  0x8c   :  { %s12230_s13 = scalar_lea.hbm %s12947_s8, 64 }
  0x8d   :  { %p12231_p8 = scmp.ne.s32.totalorder %s12947_s8, %s12230_s13  ;;  %p12234_p9 = scmp.lt.u32.totalorder %s12230_s13, %s12947_s8 }
  0x8f   :  { %p12236_p10 = pnand %p12234_p9, %p12231_p8 }
  0x91   :  { %12239 = shalt.err (!%p12236_p10)
}
  0x92   :  { %s12240_s6 = scalar_lea.vmem %s119_s28, 64  ;;  %p12245_p12 = scmp.lt.s32.totalorder %s119_s28, %s119_s28 }
  0x93   :  { %p12241_p11 = scmp.ne.s32.totalorder %s119_s28, %s12240_s6  ;;  %p12246_p13 = scmp.lt.s32.totalorder %s12240_s6, %s12240_s6 }
  0x95   :  { %p12247_p0 = por %p12246_p13, %p12245_p12 }
  0x97   :  { %p12248_p1 = pnand %p12247_p0, %p12241_p11 }
  0x99   :  { %12251 = shalt.err (!%p12248_p1)
}
  0x9a   :  { %121 = dma.hbm_to_vmem [thread:$0]  %s12947_s8, 64, %s119_s28, [#allocation15]  }
  0x9b   :  { %s12252_s17 = scalar_lea.hbm %s12948_s9, 64 }
  0x9c   :  { %p12253_p2 = scmp.ne.s32.totalorder %s12948_s9, %s12252_s17  ;;  %p12256_p3 = scmp.lt.u32.totalorder %s12252_s17, %s12948_s9 }
  0x9e   :  { %p12258_p4 = pnand %p12256_p3, %p12253_p2 }
  0xa0   :  { %12261 = shalt.err (!%p12258_p4)
}
  0xa1   :  { %s12262_s23 = scalar_lea.vmem %s129_s30, 64  ;;  %p12267_p6 = scmp.lt.s32.totalorder %s129_s30, %s129_s30 }
  0xa2   :  { %p12263_p5 = scmp.ne.s32.totalorder %s129_s30, %s12262_s23  ;;  %p12268_p7 = scmp.lt.s32.totalorder %s12262_s23, %s12262_s23 }
  0xa4   :  { %p12269_p8 = por %p12268_p7, %p12267_p6 }
  0xa6   :  { %p12270_p9 = pnand %p12269_p8, %p12263_p5 }
  0xa8   :  { %12273 = shalt.err (!%p12270_p9)
}
  0xa9   :  { %131 = dma.hbm_to_vmem [thread:$0]  %s12948_s9, 64, %s129_s30, [#allocation18]  }
  0xaa   :  { %12274 = dma.done.wait [#allocation4], 128  }
  0xab   :  { %12275 = vsyncadd [#allocation4], 4294967168 }
  0xac   :  { %12276 = dma.done.wait [#allocation6], 8320  }
  0xad   :  { %12277 = vsyncadd [#allocation6], 4294958976 }
  0xae   :  { %12278 = dma.done.wait [#allocation9], 8448  }
  0xaf   :  { %12279 = vsyncadd [#allocation9], 4294958848 }
  0xb0   :  { %12280 = dma.done.wait [#allocation12], 65792  }
  0xb1   :  { %12281 = vsyncadd [#allocation12], 4294901504 }
  0xb2   :  { %12282 = dma.done.wait [#allocation15], 65600  }
  0xb3   :  { %12283 = vsyncadd [#allocation15], 4294901696 }
  0xb4   :  { %12284 = dma.done.wait [#allocation18], 64  }
  0xb5   :  { %12285 = vsyncadd [#allocation18], 4294967232  ;;  %v12300_v1 = vmov 0   ;;  %v169_v2 = vld [vmem:[#allocation7] sm:$0xff]  ;;  %v170_v4 = vld [vmem:[#allocation7 + $0x8] sm:$0xff]  ;;  %vm637_vm0 = vcmask 523264  }
  0xb6   :  { %673 = vmatprep.mubr.bf16.mxu0 %v12300_v1  ;;  %714 = vmatprep.mubr.bf16.mxu1 %v12300_v1  ;;  %v177_v3 = vld [vmem:[#allocation7 + $0x40] sm:$0xff]  ;;  %v178_v6 = vld [vmem:[#allocation7 + $0x48] sm:$0xff]  ;;  %v171_v32 = vld [vmem:[#allocation7 + $0x10] sm:$0xff]  ;;  %vm9321_vm1 = vcmask 7168  }
  0xb7   :  { %v9334_v5 = vcombine.high %v169_v2, %v177_v3  ;;  %v9333_v7 = vcombine.low %v169_v2, %v177_v3  ;;  %v185_v8 = vld [vmem:[#allocation7 + $0x80] sm:$0xff]  ;;  %v9336_v10 = vcombine.high %v170_v4, %v178_v6  ;;  %v9335_v11 = vcombine.low %v170_v4, %v178_v6  ;;  %v186_v13 = vld [vmem:[#allocation7 + $0x88] sm:$0xff]  ;;  %v179_v33 = vld [vmem:[#allocation7 + $0x50] sm:$0xff] }
  0xb8   :  { %v193_v9 = vld [vmem:[#allocation7 + $0xc0] sm:$0xff]  ;;  %v194_v14 = vld [vmem:[#allocation7 + $0xc8] sm:$0xff]  ;;  %v172_v34 = vld [vmem:[#allocation7 + $0x18] sm:$0xff]  ;;  %v9338_v39 = vcombine.high %v171_v32, %v179_v33  ;;  %v9337_v46 = vcombine.low %v171_v32, %v179_v33 }
  0xb9   :  { %v9350_v12 = vcombine.high %v185_v8, %v193_v9  ;;  %v201_v15 = vld [vmem:[#allocation7 + $0x100] sm:$0xff]  ;;  %641 = vmatprep.subr.bf16.mxu0 %v9334_v5  ;;  %v9352_v16 = vcombine.high %v186_v13, %v194_v14  ;;  %v202_v18 = vld [vmem:[#allocation7 + $0x108] sm:$0xff]  ;;  %682 = vmatprep.subr.bf16.mxu1 %v9336_v10  ;;  %v9349_v20 = vcombine.low %v185_v8, %v193_v9  ;;  %v180_v35 = vld [vmem:[#allocation7 + $0x58] sm:$0xff] }
  0xba   :  { %v209_v17 = vld [vmem:[#allocation7 + $0x140] sm:$0xff]  ;;  %v210_v19 = vld [vmem:[#allocation7 + $0x148] sm:$0xff]  ;;  %642 = vmatpush1.bf16.msra.mxu0 %v9333_v7  ;;  %683 = vmatpush1.bf16.msra.mxu1 %v9335_v11  ;;  %v9351_v21 = vcombine.low %v186_v13, %v194_v14  ;;  %v165_v37 = vld [vmem:[#allocation3] sm:$0xff]  ;;  %v9340_v40 = vcombine.high %v172_v34, %v180_v35  ;;  %v9339_v47 = vcombine.low %v172_v34, %v180_v35 }
  0xbb   :  { %643 = vmatprep.subr.bf16.mxu0 %v9350_v12  ;;  %v9366_v22 = vcombine.high %v201_v15, %v209_v17  ;;  %684 = vmatprep.subr.bf16.mxu1 %v9352_v16  ;;  %v9368_v23 = vcombine.high %v202_v18, %v210_v19  ;;  %v217_v24 = vld [vmem:[#allocation7 + $0x180] sm:$0xff]  ;;  %v218_v26 = vld [vmem:[#allocation7 + $0x188] sm:$0xff]  ;;  %v9365_v28 = vcombine.low %v201_v15, %v209_v17  ;;  %v187_v41 = vld [vmem:[#allocation7 + $0x90] sm:$0xff] }
  0xbc   :  { %v225_v25 = vld [vmem:[#allocation7 + $0x1c0] sm:$0xff]  ;;  %v226_v27 = vld [vmem:[#allocation7 + $0x1c8] sm:$0xff]  ;;  %v9367_v29 = vcombine.low %v202_v18, %v210_v19  ;;  %v195_v42 = vld [vmem:[#allocation7 + $0xd0] sm:$0xff]  ;;  %v12499_v43 = vpack.c.bf16 %v165_v37, %v165_v37 }
  0xbd   :  { %v9382_v30 = vcombine.high %v217_v24, %v225_v25  ;;  %v9384_v31 = vcombine.high %v218_v26, %v226_v27  ;;  %v9381_v36 = vcombine.low %v217_v24, %v225_v25  ;;  %v9383_v38 = vcombine.low %v218_v26, %v226_v27  ;;  %v188_v44 = vld [vmem:[#allocation7 + $0x98] sm:$0xff]  ;;  %v203_v50 = vld [vmem:[#allocation7 + $0x110] sm:$0xff]  ;;  %v173_v3 = vld [vmem:[#allocation7 + $0x20] sm:$0xff] }
  0xbe   :  { %644 = vmatpush1.bf16.msra.mxu0 %v9349_v20  ;;  %685 = vmatpush1.bf16.msra.mxu1 %v9351_v21  ;;  %v196_v45 = vld [vmem:[#allocation7 + $0xd8] sm:$0xff]  ;;  %v9354_v48 = vcombine.high %v187_v41, %v195_v42  ;;  %v211_v51 = vld [vmem:[#allocation7 + $0x150] sm:$0xff]  ;;  %v9353_v54 = vcombine.low %v187_v41, %v195_v42  ;;  %v181_v4 = vld [vmem:[#allocation7 + $0x60] sm:$0xff] }
  0xbf   :  { %645 = vmatprep.subr.bf16.mxu0 %v9366_v22  ;;  %686 = vmatprep.subr.bf16.mxu1 %v9368_v23  ;;  %v9356_v49 = vcombine.high %v188_v44, %v196_v45  ;;  %v204_v52 = vld [vmem:[#allocation7 + $0x118] sm:$0xff]  ;;  %v9355_v55 = vcombine.low %v188_v44, %v196_v45  ;;  %v9370_v56 = vcombine.high %v203_v50, %v211_v51  ;;  %v219_v58 = vld [vmem:[#allocation7 + $0x190] sm:$0xff]  ;;  %v174_v5 = vld [vmem:[#allocation7 + $0x28] sm:$0xff] }
  0xc0   :  { %v212_v53 = vld [vmem:[#allocation7 + $0x158] sm:$0xff]  ;;  %v227_v59 = vld [vmem:[#allocation7 + $0x1d0] sm:$0xff]  ;;  %v9369_v62 = vcombine.low %v203_v50, %v211_v51  ;;  %v182_v6 = vld [vmem:[#allocation7 + $0x68] sm:$0xff]  ;;  %v9342_v9 = vcombine.high %v173_v3, %v181_v4  ;;  %v9341_v15 = vcombine.low %v173_v3, %v181_v4 }
  0xc1   :  { %v9372_v57 = vcombine.high %v204_v52, %v212_v53  ;;  %v220_v60 = vld [vmem:[#allocation7 + $0x198] sm:$0xff]  ;;  %v9371_v63 = vcombine.low %v204_v52, %v212_v53  ;;  %v9386_v0 = vcombine.high %v219_v58, %v227_v59  ;;  %v9385_v7 = vcombine.low %v219_v58, %v227_v59  ;;  %v189_v11 = vld [vmem:[#allocation7 + $0xa0] sm:$0xff]  ;;  %v190_v13 = vld [vmem:[#allocation7 + $0xa8] sm:$0xff] }
  0xc2   :  { %646 = vmatpush1.bf16.msra.mxu0 %v9365_v28  ;;  %687 = vmatpush1.bf16.msra.mxu1 %v9367_v29  ;;  %v228_v61 = vld [vmem:[#allocation7 + $0x1d8] sm:$0xff]  ;;  %v9344_v10 = vcombine.high %v174_v5, %v182_v6  ;;  %v197_v12 = vld [vmem:[#allocation7 + $0xe0] sm:$0xff]  ;;  %v198_v14 = vld [vmem:[#allocation7 + $0xe8] sm:$0xff]  ;;  %v9343_v16 = vcombine.low %v174_v5, %v182_v6 }
  0xc3   :  { %647 = vmatprep.subr.bf16.mxu0 %v9382_v30  ;;  %688 = vmatprep.subr.bf16.mxu1 %v9384_v31  ;;  %v9388_v2 = vcombine.high %v220_v60, %v228_v61  ;;  %v9387_v8 = vcombine.low %v220_v60, %v228_v61  ;;  %v9358_v17 = vcombine.high %v189_v11, %v197_v12  ;;  %v205_v19 = vld [vmem:[#allocation7 + $0x120] sm:$0xff]  ;;  %v206_v21 = vld [vmem:[#allocation7 + $0x128] sm:$0xff]  ;;  %v175_v34 = vld [vmem:[#allocation7 + $0x30] sm:$0xff] }
  0xc4   :  { %v9360_v18 = vcombine.high %v190_v13, %v198_v14  ;;  %v213_v20 = vld [vmem:[#allocation7 + $0x160] sm:$0xff]  ;;  %v214_v22 = vld [vmem:[#allocation7 + $0x168] sm:$0xff]  ;;  %v9357_v23 = vcombine.low %v189_v11, %v197_v12  ;;  %v9359_v24 = vcombine.low %v190_v13, %v198_v14  ;;  %v183_v35 = vld [vmem:[#allocation7 + $0x70] sm:$0xff] }
  0xc5   :  { %v9374_v25 = vcombine.high %v205_v19, %v213_v20  ;;  %v9376_v26 = vcombine.high %v206_v21, %v214_v22  ;;  %v221_v27 = vld [vmem:[#allocation7 + $0x1a0] sm:$0xff]  ;;  %v222_v29 = vld [vmem:[#allocation7 + $0x1a8] sm:$0xff]  ;;  %v9373_v31 = vcombine.low %v205_v19, %v213_v20  ;;  %v9375_v32 = vcombine.low %v206_v21, %v214_v22  ;;  %v199_v41 = vld [vmem:[#allocation7 + $0xf0] sm:$0xff] }
  0xc6   :  { %648 = vmatpush1.bf16.msra.mxu0 %v9381_v36  ;;  %689 = vmatpush1.bf16.msra.mxu1 %v9383_v38  ;;  %v229_v28 = vld [vmem:[#allocation7 + $0x1e0] sm:$0xff]  ;;  %v230_v30 = vld [vmem:[#allocation7 + $0x1e8] sm:$0xff]  ;;  %v176_v36 = vld [vmem:[#allocation7 + $0x38] sm:$0xff]  ;;  %v9346_v44 = vcombine.high %v175_v34, %v183_v35 }
  0xc7   :  { %723 = vmatprep.subr.bf16.mxu0 %v9338_v39  ;;  %764 = vmatprep.subr.bf16.mxu1 %v9340_v40  ;;  %v9390_v33 = vcombine.high %v221_v27, %v229_v28  ;;  %v9392_v37 = vcombine.high %v222_v29, %v230_v30  ;;  %v184_v38 = vld [vmem:[#allocation7 + $0x78] sm:$0xff]  ;;  %v9389_v39 = vcombine.low %v221_v27, %v229_v28  ;;  %v191_v40 = vld [vmem:[#allocation7 + $0xb0] sm:$0xff] }
  0xc8   :  { %v9391_v42 = vcombine.low %v222_v29, %v230_v30  ;;  %v192_v45 = vld [vmem:[#allocation7 + $0xb8] sm:$0xff]  ;;  %v215_v50 = vld [vmem:[#allocation7 + $0x170] sm:$0xff]  ;;  %v9347_v51 = vcombine.low %v176_v36, %v184_v38  ;;  %v9362_v52 = vcombine.high %v191_v40, %v199_v41 }
  0xc9   :  { %9397 = vmatmul.mubr.msk.bf16.vlgmr.msra.gmra.mrb[0].mxu0 %vm637_vm0, %v12499_v43  ;;  %9398 = vmatmul.mubr.msk.bf16.vlgmr.msra.gmra.mrb[0].mxu1 %vm637_vm0, %v12499_v43  ;;  %v208_v53 = vld [vmem:[#allocation7 + $0x138] sm:$0xff]  ;;  %v231_v58 = vld [vmem:[#allocation7 + $0x1f0] sm:$0xff] }
  0xca   :  { %724 = vmatpush1.bf16.msra.mxu0 %v9337_v46  ;;  %765 = vmatpush1.bf16.msra.mxu1 %v9339_v47  ;;  %v200_v46 = vld [vmem:[#allocation7 + $0xf8] sm:$0xff]  ;;  %v9348_v47 = vcombine.high %v176_v36, %v184_v38  ;;  %v977_v3 = vld [vmem:[#allocation10 + $0x40] sm:$0xff]  ;;  %v980_v38 = vld [vmem:[#allocation10 + $0x58] sm:$0xff] }
  0xcb   :  { %725 = vmatprep.subr.bf16.mxu0 %v9354_v48  ;;  %766 = vmatprep.subr.bf16.mxu1 %v9356_v49  ;;  %v9345_v48 = vcombine.low %v175_v34, %v183_v35  ;;  %v207_v49 = vld [vmem:[#allocation7 + $0x130] sm:$0xff]  ;;  %v9363_v59 = vcombine.low %v192_v45, %v200_v46  ;;  %v224_v61 = vld [vmem:[#allocation7 + $0x1b8] sm:$0xff]  ;;  %v971_v34 = vld [vmem:[#allocation10 + $0x10] sm:$0xff] }
  0xcc   :  { %755 = vmatprep.mubr.bf16.mxu0 %v12300_v1  ;;  %796 = vmatprep.mubr.bf16.mxu1 %v12300_v1  ;;  %v9378_v60 = vcombine.high %v207_v49, %v215_v50  ;;  %v970_v6 = vld [vmem:[#allocation10 + $0x8] sm:$0xff]  ;;  %v993_v11 = vld [vmem:[#allocation10 + $0xc0] sm:$0xff] }
  0xcd   :  { %v986_v14 = vld [vmem:[#allocation10 + $0x88] sm:$0xff]  ;;  %v1009_v19 = vld [vmem:[#allocation10 + $0x140] sm:$0xff] }
  0xce   :  { %726 = vmatpush1.bf16.msra.mxu0 %v9353_v54  ;;  %767 = vmatpush1.bf16.msra.mxu1 %v9355_v55  ;;  %v216_v54 = vld [vmem:[#allocation7 + $0x178] sm:$0xff]  ;;  %v9364_v55 = vcombine.high %v192_v45, %v200_v46  ;;  %v1025_v27 = vld [vmem:[#allocation10 + $0x1c0] sm:$0xff] }
  0xcf   :  { %727 = vmatprep.subr.bf16.mxu0 %v9370_v56  ;;  %768 = vmatprep.subr.bf16.mxu1 %v9372_v57  ;;  %v9361_v56 = vcombine.low %v191_v40, %v199_v41  ;;  %v223_v57 = vld [vmem:[#allocation7 + $0x1b0] sm:$0xff]  ;;  %v9379_v4 = vcombine.low %v208_v53, %v216_v54  ;;  %v1002_v22 = vld [vmem:[#allocation10 + $0x108] sm:$0xff] }
  0xd0   :  { %v9394_v5 = vcombine.high %v223_v57, %v231_v58  ;;  %v1018_v30 = vld [vmem:[#allocation10 + $0x188] sm:$0xff] }
  0xd1   :  { %v167_v40 = vld [vmem:[#allocation5] sm:$0xff] }
  0xd2   :  { %728 = vmatpush1.bf16.msra.mxu0 %v9369_v62  ;;  %769 = vmatpush1.bf16.msra.mxu1 %v9371_v63  ;;  %v232_v62 = vld [vmem:[#allocation7 + $0x1f8] sm:$0xff]  ;;  %v9380_v63 = vcombine.high %v208_v53, %v216_v54  ;;  %v1011_v53 = vld [vmem:[#allocation10 + $0x150] sm:$0xff] }
  0xd3   :  { %729 = vmatprep.subr.bf16.mxu0 %v9386_v0  ;;  %770 = vmatprep.subr.bf16.mxu1 %v9388_v2  ;;  %v9377_v0 = vcombine.low %v207_v49, %v215_v50  ;;  %v969_v2 = vld [vmem:[#allocation10] sm:$0xff]  ;;  %v9395_v12 = vcombine.low %v224_v61, %v232_v62  ;;  %v12525_v50 = vpack.c.bf16 %v167_v40, %v167_v40 }
  0xd4   :  { %v9406_v13 = vcombine.high %v969_v2, %v977_v3 }
  0xd6   :  { %730 = vmatpush1.bf16.msra.mxu0 %v9385_v7  ;;  %771 = vmatpush1.bf16.msra.mxu1 %v9387_v8  ;;  %v978_v7 = vld [vmem:[#allocation10 + $0x48] sm:$0xff]  ;;  %v9396_v8 = vcombine.high %v224_v61, %v232_v62  ;;  %v1027_v61 = vld [vmem:[#allocation10 + $0x1d0] sm:$0xff] }
  0xd7   :  { %805 = vmatprep.subr.bf16.mxu0 %v9342_v9  ;;  %846 = vmatprep.subr.bf16.mxu1 %v9344_v10  ;;  %v9393_v9 = vcombine.low %v223_v57, %v231_v58  ;;  %v985_v10 = vld [vmem:[#allocation10 + $0x80] sm:$0xff]  ;;  %v9407_v20 = vcombine.low %v970_v6, %v978_v7  ;;  %v1012_v57 = vld [vmem:[#allocation10 + $0x158] sm:$0xff] }
  0xd8   :  { %v9422_v21 = vcombine.high %v985_v10, %v993_v11 }
  0xd9   :  { %9399 = vmatmul.mubr.msk.bf16.vlgmr.msra.gmra.mrb[4].mxu0 %vm637_vm0, %v12499_v43  ;;  %9400 = vmatmul.mubr.msk.bf16.vlgmr.msra.gmra.mrb[4].mxu1 %vm637_vm0, %v12499_v43 }
  0xda   :  { %806 = vmatpush1.bf16.msra.mxu0 %v9341_v15  ;;  %847 = vmatpush1.bf16.msra.mxu1 %v9343_v16  ;;  %v994_v15 = vld [vmem:[#allocation10 + $0xc8] sm:$0xff]  ;;  %v9408_v16 = vcombine.high %v970_v6, %v978_v7  ;;  %v981_v6 = vld [vmem:[#allocation10 + $0x60] sm:$0xff] }
  0xdb   :  { %807 = vmatprep.subr.bf16.mxu0 %v9358_v17  ;;  %848 = vmatprep.subr.bf16.mxu1 %v9360_v18  ;;  %v9405_v17 = vcombine.low %v969_v2, %v977_v3  ;;  %v1001_v18 = vld [vmem:[#allocation10 + $0x100] sm:$0xff]  ;;  %v9423_v28 = vcombine.low %v986_v14, %v994_v15  ;;  %v1028_v2 = vld [vmem:[#allocation10 + $0x1d8] sm:$0xff] }
  0xdc   :  { %837 = vmatprep.mubr.bf16.mxu0 %v12300_v1  ;;  %878 = vmatprep.mubr.bf16.mxu1 %v12300_v1  ;;  %v9438_v29 = vcombine.high %v1001_v18, %v1009_v19 }
  0xde   :  { %808 = vmatpush1.bf16.msra.mxu0 %v9357_v23  ;;  %849 = vmatpush1.bf16.msra.mxu1 %v9359_v24  ;;  %v1010_v23 = vld [vmem:[#allocation10 + $0x148] sm:$0xff]  ;;  %v9424_v24 = vcombine.high %v986_v14, %v994_v15  ;;  %v997_v14 = vld [vmem:[#allocation10 + $0xe0] sm:$0xff] }
  0xdf   :  { %809 = vmatprep.subr.bf16.mxu0 %v9374_v25  ;;  %850 = vmatprep.subr.bf16.mxu1 %v9376_v26  ;;  %v9421_v25 = vcombine.low %v985_v10, %v993_v11  ;;  %v1017_v26 = vld [vmem:[#allocation10 + $0x180] sm:$0xff]  ;;  %v9439_v35 = vcombine.low %v1002_v22, %v1010_v23  ;;  %v982_v10 = vld [vmem:[#allocation10 + $0x68] sm:$0xff] }
  0xe0   :  { %v9454_v36 = vcombine.high %v1017_v26, %v1025_v27  ;;  %v9453_v41 = vcombine.low %v1017_v26, %v1025_v27  ;;  %v1014_v26 = vld [vmem:[#allocation10 + $0x168] sm:$0xff] }
  0xe2   :  { %810 = vmatpush1.bf16.msra.mxu0 %v9373_v31  ;;  %851 = vmatpush1.bf16.msra.mxu1 %v9375_v32  ;;  %v1026_v31 = vld [vmem:[#allocation10 + $0x1c8] sm:$0xff]  ;;  %v9440_v32 = vcombine.high %v1002_v22, %v1010_v23  ;;  %v1013_v22 = vld [vmem:[#allocation10 + $0x160] sm:$0xff] }
  0xe3   :  { %811 = vmatprep.subr.bf16.mxu0 %v9390_v33  ;;  %852 = vmatprep.subr.bf16.mxu1 %v9392_v37  ;;  %v9437_v33 = vcombine.low %v1001_v18, %v1009_v19  ;;  %v972_v37 = vld [vmem:[#allocation10 + $0x18] sm:$0xff]  ;;  %v9455_v45 = vcombine.low %v1018_v30, %v1026_v31  ;;  %v998_v18 = vld [vmem:[#allocation10 + $0xe8] sm:$0xff] }
  0xe4   :  { %v9412_v49 = vcombine.high %v972_v37, %v980_v38  ;;  %v9411_v54 = vcombine.low %v972_v37, %v980_v38  ;;  %v983_v37 = vld [vmem:[#allocation10 + $0x70] sm:$0xff] }
  0xe6   :  { %812 = vmatpush1.bf16.msra.mxu0 %v9389_v39  ;;  %853 = vmatpush1.bf16.msra.mxu1 %v9391_v42  ;;  %v9456_v39 = vcombine.high %v1018_v30, %v1026_v31  ;;  %v987_v42 = vld [vmem:[#allocation10 + $0x90] sm:$0xff]  ;;  %v1029_v30 = vld [vmem:[#allocation10 + $0x1e0] sm:$0xff] }
  0xe7   :  { %887 = vmatprep.subr.bf16.mxu0 %v9346_v44  ;;  %928 = vmatprep.subr.bf16.mxu1 %v9348_v47  ;;  %v995_v44 = vld [vmem:[#allocation10 + $0xd0] sm:$0xff]  ;;  %v988_v47 = vld [vmem:[#allocation10 + $0x98] sm:$0xff] }
  0xe9   :  { %9401 = vmatmul.mubr.msk.bf16.vlgmr.msra.gmra.mrb[8].mxu0 %vm637_vm0, %v12499_v43  ;;  %9402 = vmatmul.mubr.msk.bf16.vlgmr.msra.gmra.mrb[8].mxu1 %vm637_vm0, %v12499_v43 }
  0xea   :  { %888 = vmatpush1.bf16.msra.mxu0 %v9345_v48  ;;  %929 = vmatpush1.bf16.msra.mxu1 %v9347_v51  ;;  %v996_v48 = vld [vmem:[#allocation10 + $0xd8] sm:$0xff] }
  0xeb   :  { %889 = vmatprep.subr.bf16.mxu0 %v9362_v52  ;;  %930 = vmatprep.subr.bf16.mxu1 %v9364_v55  ;;  %v1003_v52 = vld [vmem:[#allocation10 + $0x110] sm:$0xff]  ;;  %v9426_v55 = vcombine.high %v987_v42, %v995_v44  ;;  %v9428_v58 = vcombine.high %v988_v47, %v996_v48  ;;  %v9427_v62 = vcombine.low %v988_v47, %v996_v48 }
  0xec   :  { %919 = vmatprep.mubr.bf16.mxu0 %v12300_v1  ;;  %960 = vmatprep.mubr.bf16.mxu1 %v12300_v1  ;;  %v991_v47 = vld [vmem:[#allocation10 + $0xb0] sm:$0xff] }
  0xee   :  { %890 = vmatpush1.bf16.msra.mxu0 %v9361_v56  ;;  %931 = vmatpush1.bf16.msra.mxu1 %v9363_v59  ;;  %v1004_v56 = vld [vmem:[#allocation10 + $0x118] sm:$0xff]  ;;  %v9425_v59 = vcombine.low %v987_v42, %v995_v44 }
  0xef   :  { %891 = vmatprep.subr.bf16.mxu0 %v9378_v60  ;;  %932 = vmatprep.subr.bf16.mxu1 %v9380_v63  ;;  %v1019_v60 = vld [vmem:[#allocation10 + $0x190] sm:$0xff]  ;;  %v9442_v63 = vcombine.high %v1003_v52, %v1011_v53  ;;  %v9444_v3 = vcombine.high %v1004_v56, %v1012_v57  ;;  %v9443_v7 = vcombine.low %v1004_v56, %v1012_v57  ;;  %v984_v42 = vld [vmem:[#allocation10 + $0x78] sm:$0xff] }
  0xf2   :  { %892 = vmatpush1.bf16.msra.mxu0 %v9377_v0  ;;  %933 = vmatpush1.bf16.msra.mxu1 %v9379_v4  ;;  %v1020_v0 = vld [vmem:[#allocation10 + $0x198] sm:$0xff]  ;;  %v9441_v4 = vcombine.low %v1003_v52, %v1011_v53 }
  0xf3   :  { %893 = vmatprep.subr.bf16.mxu0 %v9394_v5  ;;  %934 = vmatprep.subr.bf16.mxu1 %v9396_v8  ;;  %v973_v5 = vld [vmem:[#allocation10 + $0x20] sm:$0xff]  ;;  %v9458_v8 = vcombine.high %v1019_v60, %v1027_v61  ;;  %v9460_v11 = vcombine.high %v1020_v0, %v1028_v2  ;;  %v9459_v15 = vcombine.low %v1020_v0, %v1028_v2  ;;  %v1000_v52 = vld [vmem:[#allocation10 + $0xf8] sm:$0xff] }
  0xf6   :  { %894 = vmatpush1.bf16.msra.mxu0 %v9393_v9  ;;  %935 = vmatpush1.bf16.msra.mxu1 %v9395_v12  ;;  %v974_v9 = vld [vmem:[#allocation10 + $0x28] sm:$0xff]  ;;  %v9457_v12 = vcombine.low %v1019_v60, %v1027_v61 }
  0xf7   :  { %1440 = vmatprep.subr.bf16.mxu0 %v9406_v13  ;;  %1481 = vmatprep.subr.bf16.mxu1 %v9408_v16  ;;  %v989_v13 = vld [vmem:[#allocation10 + $0xa0] sm:$0xff]  ;;  %v9414_v16 = vcombine.high %v973_v5, %v981_v6  ;;  %v9416_v19 = vcombine.high %v974_v9, %v982_v10  ;;  %v9415_v23 = vcombine.low %v974_v9, %v982_v10 }
  0xf9   :  { %9403 = vmatmul.mubr.msk.bf16.vlgmr.msra.gmra.mrb[12].mxu0 %vm637_vm0, %v12499_v43  ;;  %9404 = vmatmul.mubr.msk.bf16.vlgmr.msra.gmra.mrb[12].mxu1 %vm637_vm0, %v12499_v43  ;;  %v979_v43 = vld [vmem:[#allocation10 + $0x50] sm:$0xff] }
  0xfa   :  { %1441 = vmatpush1.bf16.msra.mxu0 %v9405_v17  ;;  %1482 = vmatpush1.bf16.msra.mxu1 %v9407_v20  ;;  %v9410_v46 = vcombine.high %v971_v34, %v979_v43  ;;  %v9409_v51 = vcombine.low %v971_v34, %v979_v43  ;;  %v990_v17 = vld [vmem:[#allocation10 + $0xa8] sm:$0xff]  ;;  %v9413_v20 = vcombine.low %v973_v5, %v981_v6  ;;  %v1032_v5 = vld [vmem:[#allocation10 + $0x1f8] sm:$0xff] }
  0xfb   :  { %1442 = vmatprep.subr.bf16.mxu0 %v9422_v21  ;;  %1483 = vmatprep.subr.bf16.mxu1 %v9424_v24  ;;  %v1005_v21 = vld [vmem:[#allocation10 + $0x120] sm:$0xff]  ;;  %v9430_v24 = vcombine.high %v989_v13, %v997_v14  ;;  %v9432_v27 = vcombine.high %v990_v17, %v998_v18  ;;  %v9431_v31 = vcombine.low %v990_v17, %v998_v18  ;;  %v1022_v34 = vld [vmem:[#allocation10 + $0x1a8] sm:$0xff] }
  0xfc   :  { %1472 = vmatprep.mubr.bf16.mxu0 %v12300_v1  ;;  %1513 = vmatprep.mubr.bf16.mxu1 %v12300_v1  ;;  %v1030_v43 = vld [vmem:[#allocation10 + $0x1e8] sm:$0xff]  ;;  %v10523_v17 = vld [vmem:[#allocation14 + $0x20] ss:$16 sps:$4 sm:$0xff]  }
  0xfd   :  { %v9464_v40 = vcombine.high %v1022_v34, %v1030_v43  ;;  %v10526_v18 = vld [vmem:[#allocation14 + $0x220] ss:$16 sps:$4 sm:$0xff]  }
  0xfe   :  { %1443 = vmatpush1.bf16.msra.mxu0 %v9421_v25  ;;  %1484 = vmatpush1.bf16.msra.mxu1 %v9423_v28  ;;  %v1006_v25 = vld [vmem:[#allocation10 + $0x128] sm:$0xff]  ;;  %v9429_v28 = vcombine.low %v989_v13, %v997_v14  ;;  %v10517_v13 = vld [vmem:[#allocation14] ss:$16 sps:$4 sm:$0xff]   ;;  %v10522_v14 = vld [vmem:[#allocation14 + $0x204] ss:$16 sps:$4 sm:$0xff]  }
  0xff   :  { %1444 = vmatprep.subr.bf16.mxu0 %v9438_v29  ;;  %1485 = vmatprep.subr.bf16.mxu1 %v9440_v32  ;;  %v1021_v29 = vld [vmem:[#allocation10 + $0x1a0] sm:$0xff]  ;;  %v9446_v32 = vcombine.high %v1005_v21, %v1013_v22  ;;  %v9447_v38 = vcombine.low %v1006_v25, %v1014_v26 }
 0x100   :  { %v9461_v44 = vcombine.low %v1021_v29, %v1029_v30 }
 0x102   :  { %1445 = vmatpush1.bf16.msra.mxu0 %v9437_v33  ;;  %1486 = vmatpush1.bf16.msra.mxu1 %v9439_v35  ;;  %v9448_v33 = vcombine.high %v1006_v25, %v1014_v26  ;;  %v9445_v35 = vcombine.low %v1005_v21, %v1013_v22  ;;  %v10529_v21 = vld [vmem:[#allocation14 + $0x40] ss:$16 sps:$4 sm:$0xff]  }
 0x103   :  { %1446 = vmatprep.subr.bf16.mxu0 %v9454_v36  ;;  %1487 = vmatprep.subr.bf16.mxu1 %v9456_v39  ;;  %v975_v36 = vld [vmem:[#allocation10 + $0x30] sm:$0xff]  ;;  %v9462_v39 = vcombine.high %v1021_v29, %v1029_v30 }
 0x104   :  { %v9417_v53 = vcombine.low %v975_v36, %v983_v37  ;;  %v10532_v22 = vld [vmem:[#allocation14 + $0x240] ss:$16 sps:$4 sm:$0xff]   ;;  %v10549_v30 = vld [vmem:[#allocation14 + $0xa4] ss:$16 sps:$4 sm:$0xff]  }
 0x105   :  { %v10535_v25 = vld [vmem:[#allocation14 + $0x60] ss:$16 sps:$4 sm:$0xff]  }
 0x106   :  { %1447 = vmatpush1.bf16.msra.mxu0 %v9453_v41  ;;  %1488 = vmatpush1.bf16.msra.mxu1 %v9455_v45  ;;  %v976_v41 = vld [vmem:[#allocation10 + $0x38] sm:$0xff]  ;;  %v9463_v45 = vcombine.low %v1022_v34, %v1030_v43  ;;  %v10538_v26 = vld [vmem:[#allocation14 + $0x260] ss:$16 sps:$4 sm:$0xff]   ;;  %v10555_v34 = vld [vmem:[#allocation14 + $0xc4] ss:$16 sps:$4 sm:$0xff]  }
 0x107   :  { %1522 = vmatprep.subr.bf16.mxu0 %v9410_v46  ;;  %1563 = vmatprep.subr.bf16.mxu1 %v9412_v49  ;;  %v9418_v46 = vcombine.high %v975_v36, %v983_v37  ;;  %v9420_v48 = vcombine.high %v976_v41, %v984_v42  ;;  %v999_v49 = vld [vmem:[#allocation10 + $0xf0] sm:$0xff]  ;;  %v9419_v56 = vcombine.low %v976_v41, %v984_v42 }
 0x108   :  { %v9434_v57 = vcombine.high %v991_v47, %v999_v49  ;;  %v9433_v61 = vcombine.low %v991_v47, %v999_v49  ;;  %v10544_v29 = vld [vmem:[#allocation14 + $0x280] ss:$16 sps:$4 sm:$0xff]   ;;  %v10558_v43 = vld [vmem:[#allocation14 + $0x2c4] ss:$16 sps:$4 sm:$0xff]  }
 0x109   :  { %9469 = vmatmul.mubr.msk.bf16.vlgmr.msra.gmra.mrb[16].mxu0 %vm637_vm0, %v12525_v50  ;;  %9470 = vmatmul.mubr.msk.bf16.vlgmr.msra.gmra.mrb[16].mxu1 %vm637_vm0, %v12525_v50  ;;  %v10556_v36 = vld [vmem:[#allocation14 + $0x2c0] ss:$16 sps:$4 sm:$0xff]   ;;  %v10561_v37 = vld [vmem:[#allocation14 + $0xe4] ss:$16 sps:$4 sm:$0xff]  }
 0x10a   :  { %1523 = vmatpush1.bf16.msra.mxu0 %v9409_v51  ;;  %1564 = vmatpush1.bf16.msra.mxu1 %v9411_v54  ;;  %v992_v51 = vld [vmem:[#allocation10 + $0xb8] sm:$0xff]  ;;  %v1007_v54 = vld [vmem:[#allocation10 + $0x130] sm:$0xff] }
 0x10b   :  { %1524 = vmatprep.subr.bf16.mxu0 %v9426_v55  ;;  %1565 = vmatprep.subr.bf16.mxu1 %v9428_v58  ;;  %v1015_v55 = vld [vmem:[#allocation10 + $0x170] sm:$0xff]  ;;  %v1008_v58 = vld [vmem:[#allocation10 + $0x138] sm:$0xff]  ;;  %v9436_v60 = vcombine.high %v992_v51, %v1000_v52  ;;  %v9435_v0 = vcombine.low %v992_v51, %v1000_v52 }
 0x10c   :  { %1554 = vmatprep.mubr.bf16.mxu0 %v12300_v1  ;;  %1595 = vmatprep.mubr.bf16.mxu1 %v12300_v1  ;;  %v9450_v2 = vcombine.high %v1007_v54, %v1015_v55  ;;  %v9449_v6 = vcombine.low %v1007_v54, %v1015_v55  ;;  %v10567_v41 = vld [vmem:[#allocation14 + $0x104] ss:$16 sps:$4 sm:$0xff]   ;;  %v10565_v42 = vld [vmem:[#allocation14 + $0x100] ss:$16 sps:$4 sm:$0xff]  }
 0x10d   :  { %v10576_v47 = vld [vmem:[#allocation14 + $0x324] ss:$16 sps:$4 sm:$0xff]   ;;  %v10574_v49 = vld [vmem:[#allocation14 + $0x320] ss:$16 sps:$4 sm:$0xff]  }
 0x10e   :  { %1525 = vmatpush1.bf16.msra.mxu0 %v9425_v59  ;;  %1566 = vmatpush1.bf16.msra.mxu1 %v9427_v62  ;;  %v1016_v59 = vld [vmem:[#allocation10 + $0x178] sm:$0xff]  ;;  %v1023_v62 = vld [vmem:[#allocation10 + $0x1b0] sm:$0xff] }
 0x10f   :  { %1526 = vmatprep.subr.bf16.mxu0 %v9442_v63  ;;  %1567 = vmatprep.subr.bf16.mxu1 %v9444_v3  ;;  %v1031_v63 = vld [vmem:[#allocation10 + $0x1f0] sm:$0xff]  ;;  %v9452_v3 = vcombine.high %v1008_v58, %v1016_v59 }
 0x110   :  { %v9465_v10 = vcombine.low %v1023_v62, %v1031_v63  ;;  %v10579_v51 = vld [vmem:[#allocation14 + $0x144] ss:$16 sps:$4 sm:$0xff]   ;;  %v10580_v54 = vld [vmem:[#allocation14 + $0x340] ss:$16 sps:$4 sm:$0xff]  }
 0x111   :  { %v10582_v52 = vld [vmem:[#allocation14 + $0x344] ss:$16 sps:$4 sm:$0xff]  }
 0x112   :  { %1527 = vmatpush1.bf16.msra.mxu0 %v9441_v4  ;;  %1568 = vmatpush1.bf16.msra.mxu1 %v9443_v7  ;;  %v1024_v4 = vld [vmem:[#allocation10 + $0x1b8] sm:$0xff]  ;;  %v9451_v7 = vcombine.low %v1008_v58, %v1016_v59  ;;  %v10585_v55 = vld [vmem:[#allocation14 + $0x164] ss:$16 sps:$4 sm:$0xff]   ;;  %v10586_v58 = vld [vmem:[#allocation14 + $0x360] ss:$16 sps:$4 sm:$0xff]  }
 0x113   :  { %1528 = vmatprep.subr.bf16.mxu0 %v9458_v8  ;;  %1569 = vmatprep.subr.bf16.mxu1 %v9460_v11  ;;  %v9466_v8 = vcombine.high %v1023_v62, %v1031_v63  ;;  %v9468_v9 = vcombine.high %v1024_v4, %v1032_v5  ;;  %v9467_v11 = vcombine.low %v1024_v4, %v1032_v5  ;;  %v10591_v59 = vld [vmem:[#allocation14 + $0x184] ss:$16 sps:$4 sm:$0xff]   ;;  %v10592_v62 = vld [vmem:[#allocation14 + $0x380] ss:$16 sps:$4 sm:$0xff]  }
 0x114   :  { %v10597_v63 = vld [vmem:[#allocation14 + $0x1a4] ss:$16 sps:$4 sm:$0xff]  }
 0x115   :  { %v10603_v4 = vld [vmem:[#allocation14 + $0x1c4] ss:$16 sps:$4 sm:$0xff]  }
 0x116   :  { %1529 = vmatpush1.bf16.msra.mxu0 %v9457_v12  ;;  %1570 = vmatpush1.bf16.msra.mxu1 %v9459_v15  ;;  %v10519_v12 = vld [vmem:[#allocation14 + $0x4] ss:$16 sps:$4 sm:$0xff]   ;;  %v10520_v15 = vld [vmem:[#allocation14 + $0x200] ss:$16 sps:$4 sm:$0xff]  }
 0x117   :  { %1604 = vmatprep.subr.bf16.mxu0 %v9414_v16  ;;  %1645 = vmatprep.subr.bf16.mxu1 %v9416_v19  ;;  %v10525_v16 = vld [vmem:[#allocation14 + $0x24] ss:$16 sps:$4 sm:$0xff]  }
 0x118   :  { %v10531_v19 = vld [vmem:[#allocation14 + $0x44] ss:$16 sps:$4 sm:$0xff]  }
 0x119   :  { %9471 = vmatmul.mubr.msk.bf16.vlgmr.msra.gmra.mrb[20].mxu0 %vm637_vm0, %v12525_v50  ;;  %9472 = vmatmul.mubr.msk.bf16.vlgmr.msra.gmra.mrb[20].mxu1 %vm637_vm0, %v12525_v50  ;;  %v10606_v5 = vld [vmem:[#allocation14 + $0x3c4] ss:$16 sps:$4 sm:$0xff]  }
 0x11a   :  { %1605 = vmatpush1.bf16.msra.mxu0 %v9413_v20  ;;  %1646 = vmatpush1.bf16.msra.mxu1 %v9415_v23  ;;  %v10534_v20 = vld [vmem:[#allocation14 + $0x244] ss:$16 sps:$4 sm:$0xff]  }
 0x11b   :  { %1606 = vmatprep.subr.bf16.mxu0 %v9430_v24  ;;  %1647 = vmatprep.subr.bf16.mxu1 %v9432_v27  ;;  %v10537_v23 = vld [vmem:[#allocation14 + $0x64] ss:$16 sps:$4 sm:$0xff]  }
 0x11c   :  { %1636 = vmatprep.mubr.bf16.mxu0 %v12300_v1  ;;  %1677 = vmatprep.mubr.bf16.mxu1 %v12300_v1  ;;  %v10540_v24 = vld [vmem:[#allocation14 + $0x264] ss:$16 sps:$4 sm:$0xff]  }
 0x11d   :  { %v10543_v27 = vld [vmem:[#allocation14 + $0x84] ss:$16 sps:$4 sm:$0xff]  }
 0x11e   :  { %1607 = vmatpush1.bf16.msra.mxu0 %v9429_v28  ;;  %1648 = vmatpush1.bf16.msra.mxu1 %v9431_v31  ;;  %v10546_v28 = vld [vmem:[#allocation14 + $0x284] ss:$16 sps:$4 sm:$0xff]  }
 0x11f   :  { %1608 = vmatprep.subr.bf16.mxu0 %v9446_v32  ;;  %1649 = vmatprep.subr.bf16.mxu1 %v9448_v33  ;;  %v10552_v31 = vld [vmem:[#allocation14 + $0x2a4] ss:$16 sps:$4 sm:$0xff]   ;;  %v10547_v32 = vld [vmem:[#allocation14 + $0xa0] ss:$16 sps:$4 sm:$0xff]  }
 0x120   :  { %v10550_v33 = vld [vmem:[#allocation14 + $0x2a0] ss:$16 sps:$4 sm:$0xff]  }
 0x122   :  { %1609 = vmatpush1.bf16.msra.mxu0 %v9445_v35  ;;  %1650 = vmatpush1.bf16.msra.mxu1 %v9447_v38  ;;  %v10553_v35 = vld [vmem:[#allocation14 + $0xc0] ss:$16 sps:$4 sm:$0xff]   ;;  %v10564_v38 = vld [vmem:[#allocation14 + $0x2e4] ss:$16 sps:$4 sm:$0xff]  }
 0x123   :  { %1610 = vmatprep.subr.bf16.mxu0 %v9462_v39  ;;  %1651 = vmatprep.subr.bf16.mxu1 %v9464_v40  ;;  %v10559_v39 = vld [vmem:[#allocation14 + $0xe0] ss:$16 sps:$4 sm:$0xff]  }
 0x124   :  { %v10562_v40 = vld [vmem:[#allocation14 + $0x2e0] ss:$16 sps:$4 sm:$0xff]  }
 0x126   :  { %1611 = vmatpush1.bf16.msra.mxu0 %v9461_v44  ;;  %1652 = vmatpush1.bf16.msra.mxu1 %v9463_v45  ;;  %v10570_v44 = vld [vmem:[#allocation14 + $0x304] ss:$16 sps:$4 sm:$0xff]   ;;  %v10568_v45 = vld [vmem:[#allocation14 + $0x300] ss:$16 sps:$4 sm:$0xff]  }
 0x127   :  { %1686 = vmatprep.subr.bf16.mxu0 %v9418_v46  ;;  %1727 = vmatprep.subr.bf16.mxu1 %v9420_v48  ;;  %v10573_v46 = vld [vmem:[#allocation14 + $0x124] ss:$16 sps:$4 sm:$0xff]   ;;  %v10571_v48 = vld [vmem:[#allocation14 + $0x120] ss:$16 sps:$4 sm:$0xff]  }
 0x129   :  { %9473 = vmatmul.mubr.msk.bf16.vlgmr.msra.gmra.mrb[24].mxu0 %vm637_vm0, %v12525_v50  ;;  %9474 = vmatmul.mubr.msk.bf16.vlgmr.msra.gmra.mrb[24].mxu1 %vm637_vm0, %v12525_v50 }
 0x12a   :  { %1687 = vmatpush1.bf16.msra.mxu0 %v9417_v53  ;;  %1728 = vmatpush1.bf16.msra.mxu1 %v9419_v56  ;;  %v10577_v53 = vld [vmem:[#allocation14 + $0x140] ss:$16 sps:$4 sm:$0xff]   ;;  %v10588_v56 = vld [vmem:[#allocation14 + $0x364] ss:$16 sps:$4 sm:$0xff]  }
 0x12b   :  { %1688 = vmatprep.subr.bf16.mxu0 %v9434_v57  ;;  %1729 = vmatprep.subr.bf16.mxu1 %v9436_v60  ;;  %v10583_v57 = vld [vmem:[#allocation14 + $0x160] ss:$16 sps:$4 sm:$0xff]   ;;  %v10594_v60 = vld [vmem:[#allocation14 + $0x384] ss:$16 sps:$4 sm:$0xff]  }
 0x12c   :  { %1718 = vmatprep.mubr.bf16.mxu0 %v12300_v1  ;;  %1759 = vmatprep.mubr.bf16.mxu1 %v12300_v1  ;;  %v10528_v1 = vld [vmem:[#allocation14 + $0x224] ss:$16 sps:$4 sm:$0xff]  }
 0x12e   :  { %1689 = vmatpush1.bf16.msra.mxu0 %v9433_v61  ;;  %1730 = vmatpush1.bf16.msra.mxu1 %v9435_v0  ;;  %v10589_v61 = vld [vmem:[#allocation14 + $0x180] ss:$16 sps:$4 sm:$0xff]   ;;  %v10600_v0 = vld [vmem:[#allocation14 + $0x3a4] ss:$16 sps:$4 sm:$0xff]  }
 0x12f   :  { %1690 = vmatprep.subr.bf16.mxu0 %v9450_v2  ;;  %1731 = vmatprep.subr.bf16.mxu1 %v9452_v3  ;;  %v10595_v2 = vld [vmem:[#allocation14 + $0x1a0] ss:$16 sps:$4 sm:$0xff]  }
 0x130   :  { %v10598_v3 = vld [vmem:[#allocation14 + $0x3a0] ss:$16 sps:$4 sm:$0xff]  }
 0x132   :  { %1691 = vmatpush1.bf16.msra.mxu0 %v9449_v6  ;;  %1732 = vmatpush1.bf16.msra.mxu1 %v9451_v7  ;;  %v10601_v6 = vld [vmem:[#allocation14 + $0x1c0] ss:$16 sps:$4 sm:$0xff]  }
 0x133   :  { %1692 = vmatprep.subr.bf16.mxu0 %v9466_v8  ;;  %1733 = vmatprep.subr.bf16.mxu1 %v9468_v9  ;;  %v10604_v7 = vld [vmem:[#allocation14 + $0x3c0] ss:$16 sps:$4 sm:$0xff]   ;;  %v10609_v8 = vld [vmem:[#allocation14 + $0x1e4] ss:$16 sps:$4 sm:$0xff]  }
 0x134   :  { %v10612_v9 = vld [vmem:[#allocation14 + $0x3e4] ss:$16 sps:$4 sm:$0xff]  }
 0x136   :  { %1693 = vmatpush1.bf16.msra.mxu0 %v9465_v10  ;;  %1734 = vmatpush1.bf16.msra.mxu1 %v9467_v11  ;;  %v10607_v10 = vld [vmem:[#allocation14 + $0x1e0] ss:$16 sps:$4 sm:$0xff]  }
 0x137   :  { %5384 = vmatprep.subr.bf16.mxu0 %v10519_v12  ;;  %5425 = vmatprep.subr.bf16.mxu1 %v10522_v14  ;;  %v10610_v11 = vld [vmem:[#allocation14 + $0x3e0] ss:$16 sps:$4 sm:$0xff]   ;;  %v10615_v12 = vld [vmem:[#allocation14 + $0x404] ss:$16 sps:$4 sm:$0xff]  }
 0x139   :  { %9475 = vmatmul.mubr.msk.bf16.vlgmr.msra.gmra.mrb[28].mxu0 %vm637_vm0, %v12525_v50  ;;  %9476 = vmatmul.mubr.msk.bf16.vlgmr.msra.gmra.mrb[28].mxu1 %vm637_vm0, %v12525_v50  ;;  %v10541_v50 = vld [vmem:[#allocation14 + $0x80] ss:$16 sps:$4 sm:$0xff]  }
 0x13a   :  { %5385 = vmatpush1.bf16.msra.mxu0 %v10517_v13  ;;  %5426 = vmatpush1.bf16.msra.mxu1 %v10520_v15  ;;  %v10618_v13 = vld [vmem:[#allocation14 + $0x604] ss:$16 sps:$4 sm:$0xff]  }
 0x13b   :  { %5386 = vmatprep.subr.bf16.mxu0 %v10525_v16  ;;  %5427 = vmatprep.subr.bf16.mxu1 %v10528_v1 }
 0x13e   :  { %5387 = vmatpush1.bf16.msra.mxu0 %v10523_v17  ;;  %5428 = vmatpush1.bf16.msra.mxu1 %v10526_v18 }
 0x13f   :  { %5388 = vmatprep.subr.bf16.mxu0 %v10531_v19  ;;  %5429 = vmatprep.subr.bf16.mxu1 %v10534_v20 }
 0x142   :  { %5389 = vmatpush1.bf16.msra.mxu0 %v10529_v21  ;;  %5430 = vmatpush1.bf16.msra.mxu1 %v10532_v22 }
 0x143   :  { %5390 = vmatprep.subr.bf16.mxu0 %v10537_v23  ;;  %5431 = vmatprep.subr.bf16.mxu1 %v10540_v24 }
 0x146   :  { %5391 = vmatpush1.bf16.msra.mxu0 %v10535_v25  ;;  %5432 = vmatpush1.bf16.msra.mxu1 %v10538_v26 }
 0x147   :  { %5392 = vmatprep.subr.bf16.mxu0 %v10543_v27  ;;  %5433 = vmatprep.subr.bf16.mxu1 %v10546_v28 }
 0x14a   :  { %5393 = vmatpush1.bf16.msra.mxu0 %v10541_v50  ;;  %5434 = vmatpush1.bf16.msra.mxu1 %v10544_v29 }
 0x14b   :  { %5394 = vmatprep.subr.bf16.mxu0 %v10549_v30  ;;  %5435 = vmatprep.subr.bf16.mxu1 %v10552_v31 }
 0x14e   :  { %5395 = vmatpush1.bf16.msra.mxu0 %v10547_v32  ;;  %5436 = vmatpush1.bf16.msra.mxu1 %v10550_v33 }
 0x14f   :  { %5396 = vmatprep.subr.bf16.mxu0 %v10555_v34  ;;  %5437 = vmatprep.subr.bf16.mxu1 %v10558_v43 }
 0x152   :  { %5397 = vmatpush1.bf16.msra.mxu0 %v10553_v35  ;;  %5438 = vmatpush1.bf16.msra.mxu1 %v10556_v36  ;;  %v237_v35 = vlaneseq }
 0x153   :  { %5398 = vmatprep.subr.bf16.mxu0 %v10561_v37  ;;  %5439 = vmatprep.subr.bf16.mxu1 %v10564_v38  ;;  %v234_v37 = vld [vmem:[#allocation8 + $0x8] sm:$0xff] }
 0x154   :  { %v238_v36 = vshrl.u32 %v237_v35, 7  ;;  %v10619_v35 = vld [vmem:[#allocation14 + $0x420] ss:$16 sps:$4 sm:$0xff]  }
 0x156   :  { %5399 = vmatpush1.bf16.msra.mxu0 %v10559_v39  ;;  %5440 = vmatpush1.bf16.msra.mxu1 %v10562_v40  ;;  %v12573_v38 = vsub.s32 4, %v238_v36  ;;  %v12575_v39 = vsub.s32 6, %v238_v36  ;;  %v12577_v40 = vsub.s32 5, %v238_v36 }
 0x157   :  { %5400 = vmatprep.subr.bf16.mxu0 %v10567_v41  ;;  %5441 = vmatprep.subr.bf16.mxu1 %v10570_v44  ;;  %v12579_v41 = vsub.s32 7, %v238_v36 }
 0x158   :  { %v296_v44 = vrot.slane %v234_v37, %v12575_v39 }
 0x15a   :  { %5401 = vmatpush1.bf16.msra.mxu0 %v10565_v42  ;;  %5442 = vmatpush1.bf16.msra.mxu1 %v10568_v45  ;;  %v288_v42 = vrot.slane %v234_v37, %v12573_v38  ;;  %v292_v45 = vrot.slane %v234_v37, %v12577_v40 }
 0x15b   :  { %5402 = vmatprep.subr.bf16.mxu0 %v10573_v46  ;;  %5443 = vmatprep.subr.bf16.mxu1 %v10576_v47  ;;  %v300_v46 = vrot.slane %v234_v37, %v12579_v41  ;;  %v10627_v37 = vld [vmem:[#allocation14 + $0x444] ss:$16 sps:$4 sm:$0xff]  }
 0x15e   :  { %5403 = vmatpush1.bf16.msra.mxu0 %v10571_v48  ;;  %5444 = vmatpush1.bf16.msra.mxu1 %v10574_v49 }
 0x15f   :  { %5404 = vmatprep.subr.bf16.mxu0 %v10579_v51  ;;  %5445 = vmatprep.subr.bf16.mxu1 %v10582_v52 }
 0x162   :  { %5405 = vmatpush1.bf16.msra.mxu0 %v10577_v53  ;;  %5446 = vmatpush1.bf16.msra.mxu1 %v10580_v54 }
 0x163   :  { %5406 = vmatprep.subr.bf16.mxu0 %v10585_v55  ;;  %5447 = vmatprep.subr.bf16.mxu1 %v10588_v56 }
 0x166   :  { %5407 = vmatpush1.bf16.msra.mxu0 %v10583_v57  ;;  %5448 = vmatpush1.bf16.msra.mxu1 %v10586_v58 }
 0x167   :  { %5408 = vmatprep.subr.bf16.mxu0 %v10591_v59  ;;  %5449 = vmatprep.subr.bf16.mxu1 %v10594_v60  ;;  %v12593_v60 = vld [vmem:[#allocation11] sm:$0xff] }
 0x16a   :  { %5409 = vmatpush1.bf16.msra.mxu0 %v10589_v61  ;;  %5450 = vmatpush1.bf16.msra.mxu1 %v10592_v62  ;;  %v12595_v61 = vsub.s32 0, %v238_v36  ;;  %v12597_v62 = vsub.s32 2, %v238_v36 }
 0x16b   :  { %5410 = vmatprep.subr.bf16.mxu0 %v10597_v63  ;;  %5451 = vmatprep.subr.bf16.mxu1 %v10600_v0  ;;  %v12599_v63 = vsub.s32 1, %v238_v36  ;;  %v12601_v0 = vsub.s32 3, %v238_v36  ;;  %v10622_v36 = vld [vmem:[#allocation14 + $0x620] ss:$16 sps:$4 sm:$0xff]  }
 0x16e   :  { %5411 = vmatpush1.bf16.msra.mxu0 %v10595_v2  ;;  %5452 = vmatpush1.bf16.msra.mxu1 %v10598_v3  ;;  %v1040_v2 = vrot.slane %v12593_v60, %v12595_v61  ;;  %v1048_v3 = vrot.slane %v12593_v60, %v12597_v62 }
 0x16f   :  { %5412 = vmatprep.subr.bf16.mxu0 %v10603_v4  ;;  %5453 = vmatprep.subr.bf16.mxu1 %v10606_v5  ;;  %v1044_v4 = vrot.slane %v12593_v60, %v12599_v63  ;;  %v1052_v5 = vrot.slane %v12593_v60, %v12601_v0 }
 0x172   :  { %5413 = vmatpush1.bf16.msra.mxu0 %v10601_v6  ;;  %5454 = vmatpush1.bf16.msra.mxu1 %v10604_v7 }
 0x173   :  { %5414 = vmatprep.subr.bf16.mxu0 %v10609_v8  ;;  %5455 = vmatprep.subr.bf16.mxu1 %v10612_v9 }
 0x176   :  { %5415 = vmatpush1.bf16.msra.mxu0 %v10607_v10  ;;  %5456 = vmatpush1.bf16.msra.mxu1 %v10610_v11 }
 0x177   :  { %5466 = vmatprep.subr.bf16.mxu0 %v10615_v12  ;;  %5507 = vmatprep.subr.bf16.mxu1 %v10618_v13 }
 0x19c   :  { %v12549_v14 = vpop.f32.mrb[0].mxu0  ;;  %v12551_v15 = vpop.f32.mrb[0].mxu1 }
 0x19d   :  { %v12553_v16 = vpop.f32.mrb[1].mxu0  ;;  %v12555_v1 = vpop.f32.mrb[1].mxu1 }
 0x19e   :  { %v679_v17 = vpop.f32.mrb[2].mxu0  ;;  %v720_v18 = vpop.f32.mrb[2].mxu1 }
 0x19f   :  { %v680_v19 = vpop.f32.mrb[3].mxu0  ;;  %v721_v20 = vpop.f32.mrb[3].mxu1  ;;  %v10613_v17 = vld [vmem:[#allocation14 + $0x400] ss:$16 sps:$4 sm:$0xff]  }
 0x1ac   :  { %v12557_v21 = vpop.f32.mrb[4].mxu0  ;;  %v12559_v22 = vpop.f32.mrb[4].mxu1 }
 0x1ad   :  { %v12561_v23 = vpop.f32.mrb[5].mxu0  ;;  %v12563_v24 = vpop.f32.mrb[5].mxu1 }
 0x1ae   :  { %v761_v25 = vpop.f32.mrb[6].mxu0  ;;  %v802_v26 = vpop.f32.mrb[6].mxu1 }
 0x1af   :  { %v762_v27 = vpop.f32.mrb[7].mxu0  ;;  %v803_v50 = vpop.f32.mrb[7].mxu1  ;;  %v10616_v25 = vld [vmem:[#allocation14 + $0x600] ss:$16 sps:$4 sm:$0xff]   ;;  %v10621_v26 = vld [vmem:[#allocation14 + $0x424] ss:$16 sps:$4 sm:$0xff]  }
 0x1bc   :  { %v12565_v28 = vpop.f32.mrb[8].mxu0  ;;  %v12567_v29 = vpop.f32.mrb[8].mxu1 }
 0x1bd   :  { %v12569_v30 = vpop.f32.mrb[9].mxu0  ;;  %v12571_v31 = vpop.f32.mrb[9].mxu1 }
 0x1be   :  { %v843_v32 = vpop.f32.mrb[10].mxu0  ;;  %v884_v33 = vpop.f32.mrb[10].mxu1 }
 0x1bf   :  { %v844_v34 = vpop.f32.mrb[11].mxu0  ;;  %v885_v43 = vpop.f32.mrb[11].mxu1 }
 0x1c0   :  { %v10624_v43 = vld [vmem:[#allocation14 + $0x624] ss:$16 sps:$4 sm:$0xff]  }
 0x1cc   :  { %v921_v47 = vpop.f32.mrb[12].mxu0  ;;  %v962_v49 = vpop.f32.mrb[12].mxu1 }
 0x1cd   :  { %v12585_v48 = vadd.f32 %v921_v47, %v288_v42  ;;  %v923_v51 = vpop.f32.mrb[13].mxu0  ;;  %v12587_v52 = vadd.f32 %v962_v49, %v296_v44  ;;  %v964_v54 = vpop.f32.mrb[13].mxu1  ;;  %v10625_v42 = vld [vmem:[#allocation14 + $0x440] ss:$16 sps:$4 sm:$0xff]   ;;  %v10630_v44 = vld [vmem:[#allocation14 + $0x644] ss:$16 sps:$4 sm:$0xff]  }
 0x1ce   :  { %v12589_v53 = vadd.f32 %v923_v51, %v292_v45  ;;  %v925_v55 = vpop.f32.mrb[14].mxu0  ;;  %v12591_v56 = vadd.f32 %v964_v54, %v300_v46  ;;  %v966_v57 = vpop.f32.mrb[14].mxu1  ;;  %v10628_v45 = vld [vmem:[#allocation14 + $0x640] ss:$16 sps:$4 sm:$0xff]   ;;  %v10633_v46 = vld [vmem:[#allocation14 + $0x464] ss:$16 sps:$4 sm:$0xff]   ;;  %v1060_v51 = vrot.slane %v12593_v60, %v12577_v40  ;;  %v1068_v54 = vrot.slane %v12593_v60, %v12579_v41 }
 0x1cf   :  { %v926_v58 = vpop.f32.mrb[15].mxu0  ;;  %v967_v59 = vpop.f32.mrb[15].mxu1  ;;  %v10631_v47 = vld [vmem:[#allocation14 + $0x460] ss:$16 sps:$4 sm:$0xff]   ;;  %v10636_v49 = vld [vmem:[#allocation14 + $0x664] ss:$16 sps:$4 sm:$0xff]  }
 0x1d0   :  { %v10634_v57 = vld [vmem:[#allocation14 + $0x660] ss:$16 sps:$4 sm:$0xff]   ;;  %v10639_v58 = vld [vmem:[#allocation14 + $0x484] ss:$16 sps:$4 sm:$0xff]  }
 0x1dc   :  { %v1474_v6 = vpop.f32.mrb[16].mxu0  ;;  %v1515_v8 = vpop.f32.mrb[16].mxu1 }
 0x1dd   :  { %v1475_v7 = vadd.f32 %v1474_v6, %v1040_v2  ;;  %v1476_v9 = vpop.f32.mrb[17].mxu0  ;;  %v1516_v10 = vadd.f32 %v1515_v8, %v1048_v3  ;;  %v1517_v12 = vpop.f32.mrb[17].mxu1  ;;  %v10637_v3 = vld [vmem:[#allocation14 + $0x480] ss:$16 sps:$4 sm:$0xff]  }
 0x1de   :  { %v1477_v11 = vadd.f32 %v1476_v9, %v1044_v4  ;;  %v1478_v13 = vpop.f32.mrb[18].mxu0  ;;  %v1518_v18 = vadd.f32 %v1517_v12, %v1052_v5  ;;  %v1519_v19 = vpop.f32.mrb[18].mxu1  ;;  %v10642_v4 = vld [vmem:[#allocation14 + $0x684] ss:$16 sps:$4 sm:$0xff]  }
 0x1df   :  { %v1479_v20 = vpop.f32.mrb[19].mxu0  ;;  %v12611_v27 = vpack.c.bf16 %v1516_v10, %v1516_v10  ;;  %v1520_v32 = vpop.f32.mrb[19].mxu1  ;;  %v12615_v33 = vpack.c.bf16 %v1475_v7, %v1475_v7  ;;  %v10640_v13 = vld [vmem:[#allocation14 + $0x680] ss:$16 sps:$4 sm:$0xff]  }
 0x1e0   :  { %v12613_v50 = vpack.c.bf16 %v1477_v11, %v1477_v11  ;;  %v12617_v34 = vpack.c.bf16 %v1518_v18, %v1518_v18  ;;  %v10643_v19 = vld [vmem:[#allocation14 + $0x4a0] ss:$16 sps:$4 sm:$0xff]   ;;  %v10648_v20 = vld [vmem:[#allocation14 + $0x6a4] ss:$16 sps:$4 sm:$0xff]  }
 0x1e1   :  { %v10649_v32 = vld [vmem:[#allocation14 + $0x4c0] ss:$16 sps:$4 sm:$0xff]  }
 0x1e2   :  { %5416 = vmatprep.mubr.bf16.mxu0 %v12613_v50  ;;  %5457 = vmatprep.mubr.bf16.mxu1 %v12617_v34 }
 0x1e3   :  { %5417 = vmatmul.mubr.bf16.vlgmr.msra.gmra.mrb[32].mxu0 %v12615_v33  ;;  %5458 = vmatmul.mubr.bf16.vlgmr.msra.gmra.mrb[32].mxu1 %v12611_v27 }
 0x1e4   :  { %5467 = vmatpush1.bf16.msra.mxu0 %v10613_v17  ;;  %5508 = vmatpush1.bf16.msra.mxu1 %v10616_v25  ;;  %v10645_v17 = vld [vmem:[#allocation14 + $0x4a4] ss:$16 sps:$4 sm:$0xff]   ;;  %v10646_v25 = vld [vmem:[#allocation14 + $0x6a0] ss:$16 sps:$4 sm:$0xff]  }
 0x1e5   :  { %5468 = vmatprep.subr.bf16.mxu0 %v10621_v26  ;;  %5509 = vmatprep.subr.bf16.mxu1 %v10624_v43  ;;  %v10651_v26 = vld [vmem:[#allocation14 + $0x4c4] ss:$16 sps:$4 sm:$0xff]  }
 0x1e6   :  { %v10654_v43 = vld [vmem:[#allocation14 + $0x6c4] ss:$16 sps:$4 sm:$0xff]  }
 0x1e8   :  { %5469 = vmatpush1.bf16.msra.mxu0 %v10619_v35  ;;  %5510 = vmatpush1.bf16.msra.mxu1 %v10622_v36  ;;  %v10652_v35 = vld [vmem:[#allocation14 + $0x6c0] ss:$16 sps:$4 sm:$0xff]   ;;  %v10657_v36 = vld [vmem:[#allocation14 + $0x4e4] ss:$16 sps:$4 sm:$0xff]  }
 0x1e9   :  { %5470 = vmatprep.subr.bf16.mxu0 %v10627_v37  ;;  %5511 = vmatprep.subr.bf16.mxu1 %v10630_v44  ;;  %v10655_v37 = vld [vmem:[#allocation14 + $0x4e0] ss:$16 sps:$4 sm:$0xff]  }
 0x1ec   :  { %5471 = vmatpush1.bf16.msra.mxu0 %v10625_v42  ;;  %v12627_v55 = vpop.f32.mrb[20].mxu0  ;;  %5512 = vmatpush1.bf16.msra.mxu1 %v10628_v45  ;;  %v12629_v2 = vpop.f32.mrb[20].mxu1  ;;  %v10660_v42 = vld [vmem:[#allocation14 + $0x6e4] ss:$16 sps:$4 sm:$0xff]   ;;  %v10658_v45 = vld [vmem:[#allocation14 + $0x6e0] ss:$16 sps:$4 sm:$0xff]  }
 0x1ed   :  { %5472 = vmatprep.subr.bf16.mxu0 %v10633_v46  ;;  %v1558_v59 = vpop.f32.mrb[21].mxu0  ;;  %5513 = vmatprep.subr.bf16.mxu1 %v10636_v49  ;;  %v1599_v7 = vpop.f32.mrb[21].mxu1  ;;  %v10663_v46 = vld [vmem:[#allocation14 + $0x504] ss:$16 sps:$4 sm:$0xff]  }
 0x1ee   :  { %v1559_v5 = vadd.f32 %v1558_v59, %v1060_v51  ;;  %v1560_v6 = vpop.f32.mrb[22].mxu0  ;;  %v1600_v9 = vadd.f32 %v1599_v7, %v1068_v54  ;;  %v1601_v10 = vpop.f32.mrb[22].mxu1  ;;  %v10661_v51 = vld [vmem:[#allocation14 + $0x500] ss:$16 sps:$4 sm:$0xff]   ;;  %v10666_v54 = vld [vmem:[#allocation14 + $0x704] ss:$16 sps:$4 sm:$0xff]  }
 0x1ef   :  { %v1561_v8 = vpop.f32.mrb[23].mxu0  ;;  %v1602_v12 = vpop.f32.mrb[23].mxu1  ;;  %v10669_v6 = vld [vmem:[#allocation14 + $0x524] ss:$16 sps:$4 sm:$0xff]   ;;  %v10667_v7 = vld [vmem:[#allocation14 + $0x520] ss:$16 sps:$4 sm:$0xff]  }
 0x1f0   :  { %5473 = vmatpush1.bf16.msra.mxu0 %v10631_v47  ;;  %v12631_v11 = vpack.c.bf16 %v1559_v5, %v1559_v5  ;;  %5514 = vmatpush1.bf16.msra.mxu1 %v10634_v57  ;;  %v12633_v18 = vpack.c.bf16 %v1600_v9, %v1600_v9  ;;  %v10664_v5 = vld [vmem:[#allocation14 + $0x700] ss:$16 sps:$4 sm:$0xff]   ;;  %v10672_v8 = vld [vmem:[#allocation14 + $0x724] ss:$16 sps:$4 sm:$0xff]  }
 0x1f1   :  { %5474 = vmatprep.subr.bf16.mxu0 %v10639_v58  ;;  %5515 = vmatprep.subr.bf16.mxu1 %v10642_v4  ;;  %v10670_v9 = vld [vmem:[#allocation14 + $0x720] ss:$16 sps:$4 sm:$0xff]   ;;  %v10675_v10 = vld [vmem:[#allocation14 + $0x544] ss:$16 sps:$4 sm:$0xff]  }
 0x1f2   :  { %5498 = vmatprep.mubr.bf16.mxu0 %v12631_v11  ;;  %5539 = vmatprep.mubr.bf16.mxu1 %v12633_v18  ;;  %v10678_v12 = vld [vmem:[#allocation14 + $0x744] ss:$16 sps:$4 sm:$0xff]  }
 0x1f4   :  { %5475 = vmatpush1.bf16.msra.mxu0 %v10637_v3  ;;  %5516 = vmatpush1.bf16.msra.mxu1 %v10640_v13  ;;  %v10673_v13 = vld [vmem:[#allocation14 + $0x540] ss:$16 sps:$4 sm:$0xff]  }
 0x1f5   :  { %5476 = vmatprep.subr.bf16.mxu0 %v10645_v17  ;;  %5517 = vmatprep.subr.bf16.mxu1 %v10648_v20  ;;  %v12645_v17 = vld [vmem:[#allocation11 + $0x8] sm:$0xff]  ;;  %v10681_v20 = vld [vmem:[#allocation14 + $0x564] ss:$16 sps:$4 sm:$0xff]  }
 0x1f8   :  { %5477 = vmatpush1.bf16.msra.mxu0 %v10643_v19  ;;  %5518 = vmatpush1.bf16.msra.mxu1 %v10646_v25  ;;  %v10676_v19 = vld [vmem:[#allocation14 + $0x740] ss:$16 sps:$4 sm:$0xff]   ;;  %v1088_v25 = vrot.slane %v12645_v17, %v12573_v38 }
 0x1f9   :  { %5478 = vmatprep.subr.bf16.mxu0 %v10651_v26  ;;  %5519 = vmatprep.subr.bf16.mxu1 %v10654_v43  ;;  %v10679_v26 = vld [vmem:[#allocation14 + $0x560] ss:$16 sps:$4 sm:$0xff]   ;;  %v1092_v43 = vrot.slane %v12645_v17, %v12577_v40 }
 0x1fc   :  { %5479 = vmatpush1.bf16.msra.mxu0 %v10649_v32  ;;  %v12637_v44 = vpop.f32.mrb[24].mxu0  ;;  %5520 = vmatpush1.bf16.msra.mxu1 %v10652_v35  ;;  %v12641_v49 = vpop.f32.mrb[24].mxu1  ;;  %v10684_v32 = vld [vmem:[#allocation14 + $0x764] ss:$16 sps:$4 sm:$0xff]   ;;  %v1096_v35 = vrot.slane %v12645_v17, %v12575_v39 }
 0x1fd   :  { %5480 = vmatprep.subr.bf16.mxu0 %v10657_v36  ;;  %v12639_v47 = vpop.f32.mrb[25].mxu0  ;;  %5521 = vmatprep.subr.bf16.mxu1 %v10660_v42  ;;  %v12643_v58 = vpop.f32.mrb[25].mxu1  ;;  %v1100_v36 = vrot.slane %v12645_v17, %v12579_v41  ;;  %v10682_v42 = vld [vmem:[#allocation14 + $0x760] ss:$16 sps:$4 sm:$0xff]  }
 0x1fe   :  { %v1642_v57 = vpop.f32.mrb[26].mxu0  ;;  %v1683_v3 = vpop.f32.mrb[26].mxu1 }
 0x1ff   :  { %v1643_v59 = vpop.f32.mrb[27].mxu0  ;;  %v1684_v4 = vpop.f32.mrb[27].mxu1  ;;  %v10685_v57 = vld [vmem:[#allocation14 + $0x580] ss:$16 sps:$4 sm:$0xff]  }
 0x200   :  { %5481 = vmatpush1.bf16.msra.mxu0 %v10655_v37  ;;  %5522 = vmatpush1.bf16.msra.mxu1 %v10658_v45  ;;  %v10687_v45 = vld [vmem:[#allocation14 + $0x584] ss:$16 sps:$4 sm:$0xff]  }
 0x201   :  { %5482 = vmatprep.subr.bf16.mxu0 %v10663_v46  ;;  %5523 = vmatprep.subr.bf16.mxu1 %v10666_v54  ;;  %v10690_v59 = vld [vmem:[#allocation14 + $0x784] ss:$16 sps:$4 sm:$0xff]  }
 0x204   :  { %5483 = vmatpush1.bf16.msra.mxu0 %v10661_v51  ;;  %5524 = vmatpush1.bf16.msra.mxu1 %v10664_v5 }
 0x205   :  { %5484 = vmatprep.subr.bf16.mxu0 %v10669_v6  ;;  %5525 = vmatprep.subr.bf16.mxu1 %v10672_v8 }
 0x208   :  { %5485 = vmatpush1.bf16.msra.mxu0 %v10667_v7  ;;  %5526 = vmatpush1.bf16.msra.mxu1 %v10670_v9 }
 0x209   :  { %5486 = vmatprep.subr.bf16.mxu0 %v10675_v10  ;;  %5527 = vmatprep.subr.bf16.mxu1 %v10678_v12  ;;  %v10688_v12 = vld [vmem:[#allocation14 + $0x780] ss:$16 sps:$4 sm:$0xff]  }
 0x20c   :  { %5487 = vmatpush1.bf16.msra.mxu0 %v10673_v13  ;;  %v1720_v37 = vpop.f32.mrb[28].mxu0  ;;  %5528 = vmatpush1.bf16.msra.mxu1 %v10676_v19  ;;  %v1761_v54 = vpop.f32.mrb[28].mxu1  ;;  %v10693_v13 = vld [vmem:[#allocation14 + $0x5a4] ss:$16 sps:$4 sm:$0xff]   ;;  %v10691_v19 = vld [vmem:[#allocation14 + $0x5a0] ss:$16 sps:$4 sm:$0xff]  }
 0x20d   :  { %5488 = vmatprep.subr.bf16.mxu0 %v10681_v20  ;;  %v12655_v46 = vadd.f32 %v1720_v37, %v1088_v25  ;;  %v1722_v51 = vpop.f32.mrb[29].mxu0  ;;  %5529 = vmatprep.subr.bf16.mxu1 %v10684_v32  ;;  %v12659_v5 = vadd.f32 %v1761_v54, %v1096_v35  ;;  %v1763_v6 = vpop.f32.mrb[29].mxu1  ;;  %v10696_v20 = vld [vmem:[#allocation14 + $0x7a4] ss:$16 sps:$4 sm:$0xff]   ;;  %v10694_v25 = vld [vmem:[#allocation14 + $0x7a0] ss:$16 sps:$4 sm:$0xff]   ;;  %v1076_v54 = vrot.slane %v12645_v17, %v12599_v63 }
 0x20e   :  { %v12657_v3 = vadd.f32 %v1722_v51, %v1092_v43  ;;  %v1724_v4 = vpop.f32.mrb[30].mxu0  ;;  %v12661_v8 = vadd.f32 %v1763_v6, %v1100_v36  ;;  %v1765_v9 = vpop.f32.mrb[30].mxu1  ;;  %v10699_v32 = vld [vmem:[#allocation14 + $0x5c4] ss:$16 sps:$4 sm:$0xff]   ;;  %v10697_v43 = vld [vmem:[#allocation14 + $0x5c0] ss:$16 sps:$4 sm:$0xff]   ;;  %v1056_v36 = vrot.slane %v12593_v60, %v12573_v38 }
 0x20f   :  { %v1725_v7 = vpop.f32.mrb[31].mxu0  ;;  %v1766_v10 = vpop.f32.mrb[31].mxu1  ;;  %v10702_v35 = vld [vmem:[#allocation14 + $0x7c4] ss:$16 sps:$4 sm:$0xff]   ;;  %v10700_v37 = vld [vmem:[#allocation14 + $0x7c0] ss:$16 sps:$4 sm:$0xff]  }
 0x210   :  { %5489 = vmatpush1.bf16.msra.mxu0 %v10679_v26  ;;  %5530 = vmatpush1.bf16.msra.mxu1 %v10682_v42  ;;  %v1064_v26 = vrot.slane %v12593_v60, %v12575_v39  ;;  %v10705_v42 = vld [vmem:[#allocation14 + $0x5e4] ss:$16 sps:$4 sm:$0xff]   ;;  %v10706_v60 = vld [vmem:[#allocation14 + $0x7e0] ss:$16 sps:$4 sm:$0xff]   ;;  %v1641_v10 = vadd.f32 %v12639_v47, %v1076_v54 }
 0x211   :  { %5490 = vmatprep.subr.bf16.mxu0 %v10687_v45  ;;  %5531 = vmatprep.subr.bf16.mxu1 %v10690_v59  ;;  %v10703_v45 = vld [vmem:[#allocation14 + $0x5e0] ss:$16 sps:$4 sm:$0xff]   ;;  %v10708_v51 = vld [vmem:[#allocation14 + $0x7e4] ss:$16 sps:$4 sm:$0xff]   ;;  %v1084_v59 = vrot.slane %v12645_v17, %v12601_v0 }
 0x212   :  { %v1598_v4 = vadd.f32 %v12629_v2, %v1064_v26  ;;  %v10711_v6 = vld [vmem:[#allocation14 + $0x804] ss:$16 sps:$4 sm:$0xff]   ;;  %v10709_v9 = vld [vmem:[#allocation14 + $0x800] ss:$16 sps:$4 sm:$0xff]  }
 0x213   :  { %v10714_v7 = vld [vmem:[#allocation14 + $0xa04] ss:$16 sps:$4 sm:$0xff]   ;;  %v10715_v2 = vld [vmem:[#allocation14 + $0x820] ss:$16 sps:$4 sm:$0xff]  }
 0x214   :  { %5491 = vmatpush1.bf16.msra.mxu0 %v10685_v57  ;;  %5532 = vmatpush1.bf16.msra.mxu1 %v10688_v12  ;;  %v1557_v57 = vadd.f32 %v12627_v55, %v1056_v36  ;;  %v1682_v55 = vadd.f32 %v12643_v58, %v1084_v59  ;;  %v10723_v47 = vld [vmem:[#allocation14 + $0x844] ss:$16 sps:$4 sm:$0xff]   ;;  %v10721_v36 = vld [vmem:[#allocation14 + $0x840] ss:$16 sps:$4 sm:$0xff]  }
 0x215   :  { %5492 = vmatprep.subr.bf16.mxu0 %v10693_v13  ;;  %5533 = vmatprep.subr.bf16.mxu1 %v10696_v20  ;;  %v10712_v13 = vld [vmem:[#allocation14 + $0xa00] ss:$16 sps:$4 sm:$0xff]   ;;  %v12677_v20 = vpack.c.bf16 %v1598_v4, %v1598_v4  ;;  %v10726_v58 = vld [vmem:[#allocation14 + $0xa44] ss:$16 sps:$4 sm:$0xff]  }
 0x216   :  { %v12674_v12 = vpack.c.bf16 %v1557_v57, %v1557_v57  ;;  %v10724_v26 = vld [vmem:[#allocation14 + $0xa40] ss:$16 sps:$4 sm:$0xff]   ;;  %v10735_v54 = vld [vmem:[#allocation14 + $0x884] ss:$16 sps:$4 sm:$0xff]  }
 0x217   :  { %v10733_v57 = vld [vmem:[#allocation14 + $0x880] ss:$16 sps:$4 sm:$0xff]   ;;  %v10738_v59 = vld [vmem:[#allocation14 + $0xa84] ss:$16 sps:$4 sm:$0xff]  }
 0x218   :  { %5493 = vmatpush1.bf16.msra.mxu0 %v10691_v19  ;;  %5534 = vmatpush1.bf16.msra.mxu1 %v10694_v25  ;;  %v10717_v19 = vld [vmem:[#allocation14 + $0x824] ss:$16 sps:$4 sm:$0xff]   ;;  %v10736_v4 = vld [vmem:[#allocation14 + $0xa80] ss:$16 sps:$4 sm:$0xff]  }
 0x219   :  { %5494 = vmatprep.subr.bf16.mxu0 %v10699_v32  ;;  %5535 = vmatprep.subr.bf16.mxu1 %v10702_v35  ;;  %v10720_v25 = vld [vmem:[#allocation14 + $0xa24] ss:$16 sps:$4 sm:$0xff]   ;;  %v12679_v32 = vpack.c.bf16 %v1641_v10, %v1641_v10  ;;  %v12682_v35 = vpack.c.bf16 %v1682_v55, %v1682_v55  ;;  %v10748_v55 = vld [vmem:[#allocation14 + $0xac0] ss:$16 sps:$4 sm:$0xff]  }
 0x21a   :  { %v10747_v10 = vld [vmem:[#allocation14 + $0x8c4] ss:$16 sps:$4 sm:$0xff]  }
 0x21c   :  { %5495 = vmatpush1.bf16.msra.mxu0 %v10697_v43  ;;  %5536 = vmatpush1.bf16.msra.mxu1 %v10700_v37  ;;  %v10718_v43 = vld [vmem:[#allocation14 + $0xa20] ss:$16 sps:$4 sm:$0xff]   ;;  %v10729_v37 = vld [vmem:[#allocation14 + $0x864] ss:$16 sps:$4 sm:$0xff]  }
 0x21d   :  { %5496 = vmatprep.subr.bf16.mxu0 %v10705_v42  ;;  %5537 = vmatprep.subr.bf16.mxu1 %v10708_v51  ;;  %v10727_v42 = vld [vmem:[#allocation14 + $0x860] ss:$16 sps:$4 sm:$0xff]  }
 0x21e   :  { %v10730_v51 = vld [vmem:[#allocation14 + $0xa60] ss:$16 sps:$4 sm:$0xff]  }
 0x220   :  { %5497 = vmatpush1.bf16.msra.mxu0 %v10703_v45  ;;  %5538 = vmatpush1.bf16.msra.mxu1 %v10706_v60  ;;  %v10732_v45 = vld [vmem:[#allocation14 + $0xa64] ss:$16 sps:$4 sm:$0xff]  }
 0x221   :  { %5548 = vmatprep.subr.bf16.mxu0 %v10711_v6  ;;  %5589 = vmatprep.subr.bf16.mxu1 %v10714_v7  ;;  %v10741_v60 = vld [vmem:[#allocation14 + $0x8a4] ss:$16 sps:$4 sm:$0xff]   ;;  %v10739_v6 = vld [vmem:[#allocation14 + $0x8a0] ss:$16 sps:$4 sm:$0xff]  }
 0x222   :  { %v10744_v7 = vld [vmem:[#allocation14 + $0xaa4] ss:$16 sps:$4 sm:$0xff]  }
 0x223   :  { %5499 = vmatmul.mubr.bf16.vlgmr.msra.gmra.mrb[36].mxu0 %v12674_v12  ;;  %5540 = vmatmul.mubr.bf16.vlgmr.msra.gmra.mrb[36].mxu1 %v12677_v20 }
 0x224   :  { %5549 = vmatpush1.bf16.msra.mxu0 %v10709_v9  ;;  %5590 = vmatpush1.bf16.msra.mxu1 %v10712_v13  ;;  %v10742_v9 = vld [vmem:[#allocation14 + $0xaa0] ss:$16 sps:$4 sm:$0xff]   ;;  %v10750_v13 = vld [vmem:[#allocation14 + $0xac4] ss:$16 sps:$4 sm:$0xff]  }
 0x225   :  { %5550 = vmatprep.subr.bf16.mxu0 %v10717_v19  ;;  %5591 = vmatprep.subr.bf16.mxu1 %v10720_v25  ;;  %v10745_v19 = vld [vmem:[#allocation14 + $0x8c0] ss:$16 sps:$4 sm:$0xff]   ;;  %v10756_v25 = vld [vmem:[#allocation14 + $0xae4] ss:$16 sps:$4 sm:$0xff]  }
 0x226   :  { %5580 = vmatprep.mubr.bf16.mxu0 %v12679_v32  ;;  %5621 = vmatprep.mubr.bf16.mxu1 %v12682_v35 }
 0x228   :  { %5551 = vmatpush1.bf16.msra.mxu0 %v10715_v2  ;;  %5592 = vmatpush1.bf16.msra.mxu1 %v10718_v43  ;;  %v10753_v2 = vld [vmem:[#allocation14 + $0x8e4] ss:$16 sps:$4 sm:$0xff]   ;;  %v10751_v43 = vld [vmem:[#allocation14 + $0x8e0] ss:$16 sps:$4 sm:$0xff]  }
 0x229   :  { %5552 = vmatprep.subr.bf16.mxu0 %v10723_v47  ;;  %5593 = vmatprep.subr.bf16.mxu1 %v10726_v58  ;;  %v10754_v47 = vld [vmem:[#allocation14 + $0xae0] ss:$16 sps:$4 sm:$0xff]   ;;  %v10759_v58 = vld [vmem:[#allocation14 + $0x904] ss:$16 sps:$4 sm:$0xff]  }
 0x22c   :  { %5553 = vmatpush1.bf16.msra.mxu0 %v10721_v36  ;;  %5594 = vmatpush1.bf16.msra.mxu1 %v10724_v26  ;;  %v10757_v36 = vld [vmem:[#allocation14 + $0x900] ss:$16 sps:$4 sm:$0xff]   ;;  %v10762_v26 = vld [vmem:[#allocation14 + $0xb04] ss:$16 sps:$4 sm:$0xff]  }
 0x22d   :  { %5554 = vmatprep.subr.bf16.mxu0 %v10729_v37  ;;  %5595 = vmatprep.subr.bf16.mxu1 %v10732_v45  ;;  %v10760_v37 = vld [vmem:[#allocation14 + $0xb00] ss:$16 sps:$4 sm:$0xff]  }
 0x22e   :  { %v10763_v45 = vld [vmem:[#allocation14 + $0x920] ss:$16 sps:$4 sm:$0xff]  }
 0x230   :  { %5555 = vmatpush1.bf16.msra.mxu0 %v10727_v42  ;;  %5596 = vmatpush1.bf16.msra.mxu1 %v10730_v51  ;;  %v10765_v42 = vld [vmem:[#allocation14 + $0x924] ss:$16 sps:$4 sm:$0xff]  }
 0x231   :  { %5556 = vmatprep.subr.bf16.mxu0 %v10735_v54  ;;  %5597 = vmatprep.subr.bf16.mxu1 %v10738_v59  ;;  %v10768_v51 = vld [vmem:[#allocation14 + $0xb24] ss:$16 sps:$4 sm:$0xff]   ;;  %v10766_v54 = vld [vmem:[#allocation14 + $0xb20] ss:$16 sps:$4 sm:$0xff]  }
 0x232   :  { %v10769_v59 = vld [vmem:[#allocation14 + $0x940] ss:$16 sps:$4 sm:$0xff]  }
 0x234   :  { %5557 = vmatpush1.bf16.msra.mxu0 %v10733_v57  ;;  %5598 = vmatpush1.bf16.msra.mxu1 %v10736_v4  ;;  %v10771_v57 = vld [vmem:[#allocation14 + $0x944] ss:$16 sps:$4 sm:$0xff]  }
 0x235   :  { %5558 = vmatprep.subr.bf16.mxu0 %v10741_v60  ;;  %5599 = vmatprep.subr.bf16.mxu1 %v10744_v7  ;;  %v10774_v4 = vld [vmem:[#allocation14 + $0xb44] ss:$16 sps:$4 sm:$0xff]   ;;  %v10772_v60 = vld [vmem:[#allocation14 + $0xb40] ss:$16 sps:$4 sm:$0xff]  }
 0x236   :  { %v10775_v7 = vld [vmem:[#allocation14 + $0x960] ss:$16 sps:$4 sm:$0xff]  }
 0x238   :  { %5559 = vmatpush1.bf16.msra.mxu0 %v10739_v6  ;;  %5600 = vmatpush1.bf16.msra.mxu1 %v10742_v9  ;;  %v10777_v6 = vld [vmem:[#allocation14 + $0x964] ss:$16 sps:$4 sm:$0xff]  }
 0x239   :  { %5560 = vmatprep.subr.bf16.mxu0 %v10747_v10  ;;  %5601 = vmatprep.subr.bf16.mxu1 %v10750_v13  ;;  %v10780_v9 = vld [vmem:[#allocation14 + $0xb64] ss:$16 sps:$4 sm:$0xff]   ;;  %v10778_v10 = vld [vmem:[#allocation14 + $0xb60] ss:$16 sps:$4 sm:$0xff]  }
 0x23a   :  { %v10783_v13 = vld [vmem:[#allocation14 + $0x984] ss:$16 sps:$4 sm:$0xff]  }
 0x23c   :  { %5561 = vmatpush1.bf16.msra.mxu0 %v10745_v19  ;;  %5602 = vmatpush1.bf16.msra.mxu1 %v10748_v55  ;;  %v10781_v19 = vld [vmem:[#allocation14 + $0x980] ss:$16 sps:$4 sm:$0xff]   ;;  %v10786_v55 = vld [vmem:[#allocation14 + $0xb84] ss:$16 sps:$4 sm:$0xff]  }
 0x23d   :  { %5562 = vmatprep.subr.bf16.mxu0 %v10753_v2  ;;  %5603 = vmatprep.subr.bf16.mxu1 %v10756_v25  ;;  %v10784_v2 = vld [vmem:[#allocation14 + $0xb80] ss:$16 sps:$4 sm:$0xff]   ;;  %v10789_v25 = vld [vmem:[#allocation14 + $0x9a4] ss:$16 sps:$4 sm:$0xff]  }
 0x240   :  { %5563 = vmatpush1.bf16.msra.mxu0 %v10751_v43  ;;  %5604 = vmatpush1.bf16.msra.mxu1 %v10754_v47  ;;  %v10787_v43 = vld [vmem:[#allocation14 + $0x9a0] ss:$16 sps:$4 sm:$0xff]   ;;  %v10792_v47 = vld [vmem:[#allocation14 + $0xba4] ss:$16 sps:$4 sm:$0xff]  }
 0x241   :  { %5564 = vmatprep.subr.bf16.mxu0 %v10759_v58  ;;  %5605 = vmatprep.subr.bf16.mxu1 %v10762_v26  ;;  %v10790_v58 = vld [vmem:[#allocation14 + $0xba0] ss:$16 sps:$4 sm:$0xff]  }
 0x242   :  { %v10793_v26 = vld [vmem:[#allocation14 + $0x9c0] ss:$16 sps:$4 sm:$0xff]  }
 0x244   :  { %5565 = vmatpush1.bf16.msra.mxu0 %v10757_v36  ;;  %5606 = vmatpush1.bf16.msra.mxu1 %v10760_v37  ;;  %v10795_v36 = vld [vmem:[#allocation14 + $0x9c4] ss:$16 sps:$4 sm:$0xff]  }
 0x245   :  { %5566 = vmatprep.subr.bf16.mxu0 %v10765_v42  ;;  %5607 = vmatprep.subr.bf16.mxu1 %v10768_v51  ;;  %v10798_v37 = vld [vmem:[#allocation14 + $0xbc4] ss:$16 sps:$4 sm:$0xff]   ;;  %v1072_v42 = vrot.slane %v12645_v17, %v12595_v61  ;;  %v10796_v51 = vld [vmem:[#allocation14 + $0xbc0] ss:$16 sps:$4 sm:$0xff]  }
 0x248   :  { %5567 = vmatpush1.bf16.msra.mxu0 %v10763_v45  ;;  %5608 = vmatpush1.bf16.msra.mxu1 %v10766_v54  ;;  %v1080_v45 = vrot.slane %v12645_v17, %v12597_v62  ;;  %v10801_v54 = vld [vmem:[#allocation14 + $0x9e4] ss:$16 sps:$4 sm:$0xff]  }
 0x249   :  { %5568 = vmatprep.subr.bf16.mxu0 %v10771_v57  ;;  %5609 = vmatprep.subr.bf16.mxu1 %v10774_v4  ;;  %v10799_v57 = vld [vmem:[#allocation14 + $0x9e0] ss:$16 sps:$4 sm:$0xff]   ;;  %v1639_v4 = vadd.f32 %v12637_v44, %v1072_v42  ;;  %v12699_v44 = vpack.c.bf16 %v12657_v3, %v12657_v3 }
 0x24a   :  { %v10817_v3 = vld [vmem:[#allocation14 + $0xc40] ss:$16 sps:$4 sm:$0xff]  }
 0x24b   :  { %v12693_v17 = vpack.c.bf16 %v1639_v4, %v1639_v4  ;;  %v10826_v42 = vld [vmem:[#allocation14 + $0xe60] ss:$16 sps:$4 sm:$0xff]  }
 0x24c   :  { %5569 = vmatpush1.bf16.msra.mxu0 %v10769_v59  ;;  %5610 = vmatpush1.bf16.msra.mxu1 %v10772_v60  ;;  %v10804_v59 = vld [vmem:[#allocation14 + $0xbe4] ss:$16 sps:$4 sm:$0xff]   ;;  %v1680_v60 = vadd.f32 %v12641_v49, %v1080_v45  ;;  %v10811_v49 = vld [vmem:[#allocation14 + $0xc20] ss:$16 sps:$4 sm:$0xff]  }
 0x24d   :  { %5570 = vmatprep.subr.bf16.mxu0 %v10777_v6  ;;  %5611 = vmatprep.subr.bf16.mxu1 %v10780_v9  ;;  %v10802_v6 = vld [vmem:[#allocation14 + $0xbe0] ss:$16 sps:$4 sm:$0xff]   ;;  %v10810_v9 = vld [vmem:[#allocation14 + $0xe04] ss:$16 sps:$4 sm:$0xff]  }
 0x24e   :  { %v10831_v45 = vld [vmem:[#allocation14 + $0xc84] ss:$16 sps:$4 sm:$0xff]   ;;  %v10835_v4 = vld [vmem:[#allocation14 + $0xca0] ss:$16 sps:$4 sm:$0xff]  }
 0x250   :  { %5571 = vmatpush1.bf16.msra.mxu0 %v10775_v7  ;;  %5612 = vmatpush1.bf16.msra.mxu1 %v10778_v10  ;;  %v10807_v7 = vld [vmem:[#allocation14 + $0xc04] ss:$16 sps:$4 sm:$0xff]   ;;  %v10805_v10 = vld [vmem:[#allocation14 + $0xc00] ss:$16 sps:$4 sm:$0xff]  }
 0x251   :  { %5572 = vmatprep.subr.bf16.mxu0 %v10783_v13  ;;  %5613 = vmatprep.subr.bf16.mxu1 %v10786_v55  ;;  %v10808_v13 = vld [vmem:[#allocation14 + $0xe00] ss:$16 sps:$4 sm:$0xff]   ;;  %v12695_v55 = vpack.c.bf16 %v1680_v60, %v1680_v60  ;;  %v10840_v60 = vld [vmem:[#allocation14 + $0xea4] ss:$16 sps:$4 sm:$0xff]  }
 0x254   :  { %5573 = vmatpush1.bf16.msra.mxu0 %v10781_v19  ;;  %5614 = vmatpush1.bf16.msra.mxu1 %v10784_v2  ;;  %v10813_v19 = vld [vmem:[#allocation14 + $0xc24] ss:$16 sps:$4 sm:$0xff]  }
 0x255   :  { %5574 = vmatprep.subr.bf16.mxu0 %v10789_v25  ;;  %5615 = vmatprep.subr.bf16.mxu1 %v10792_v47  ;;  %v10816_v2 = vld [vmem:[#allocation14 + $0xe24] ss:$16 sps:$4 sm:$0xff]   ;;  %v12704_v25 = vpack.c.bf16 %v12661_v8, %v12661_v8 }
 0x256   :  { %v10819_v47 = vld [vmem:[#allocation14 + $0xc44] ss:$16 sps:$4 sm:$0xff]  }
 0x257   :  { %v10825_v8 = vld [vmem:[#allocation14 + $0xc64] ss:$16 sps:$4 sm:$0xff]  }
 0x258   :  { %5575 = vmatpush1.bf16.msra.mxu0 %v10787_v43  ;;  %5616 = vmatpush1.bf16.msra.mxu1 %v10790_v58  ;;  %v10814_v43 = vld [vmem:[#allocation14 + $0xe20] ss:$16 sps:$4 sm:$0xff]   ;;  %v10822_v58 = vld [vmem:[#allocation14 + $0xe44] ss:$16 sps:$4 sm:$0xff]  }
 0x259   :  { %5576 = vmatprep.subr.bf16.mxu0 %v10795_v36  ;;  %5617 = vmatprep.subr.bf16.mxu1 %v10798_v37  ;;  %v10820_v36 = vld [vmem:[#allocation14 + $0xe40] ss:$16 sps:$4 sm:$0xff]   ;;  %v10828_v37 = vld [vmem:[#allocation14 + $0xe64] ss:$16 sps:$4 sm:$0xff]  }
 0x25c   :  { %5577 = vmatpush1.bf16.msra.mxu0 %v10793_v26  ;;  %5618 = vmatpush1.bf16.msra.mxu1 %v10796_v51  ;;  %v10823_v26 = vld [vmem:[#allocation14 + $0xc60] ss:$16 sps:$4 sm:$0xff]  }
 0x25d   :  { %5578 = vmatprep.subr.bf16.mxu0 %v10801_v54  ;;  %5619 = vmatprep.subr.bf16.mxu1 %v10804_v59  ;;  %v10829_v51 = vld [vmem:[#allocation14 + $0xc80] ss:$16 sps:$4 sm:$0xff]   ;;  %v10834_v54 = vld [vmem:[#allocation14 + $0xe84] ss:$16 sps:$4 sm:$0xff]  }
 0x25e   :  { %v10837_v59 = vld [vmem:[#allocation14 + $0xca4] ss:$16 sps:$4 sm:$0xff]  }
 0x260   :  { %5579 = vmatpush1.bf16.msra.mxu0 %v10799_v57  ;;  %5620 = vmatpush1.bf16.msra.mxu1 %v10802_v6  ;;  %v10832_v57 = vld [vmem:[#allocation14 + $0xe80] ss:$16 sps:$4 sm:$0xff]  }
 0x261   :  { %5630 = vmatprep.subr.bf16.mxu0 %v10807_v7  ;;  %5671 = vmatprep.subr.bf16.mxu1 %v10810_v9  ;;  %v10838_v6 = vld [vmem:[#allocation14 + $0xea0] ss:$16 sps:$4 sm:$0xff]   ;;  %v10843_v7 = vld [vmem:[#allocation14 + $0xcc4] ss:$16 sps:$4 sm:$0xff]  }
 0x262   :  { %v10846_v9 = vld [vmem:[#allocation14 + $0xec4] ss:$16 sps:$4 sm:$0xff]  }
 0x263   :  { %5581 = vmatmul.mubr.bf16.vlgmr.msra.gmra.mrb[40].mxu0 %v12693_v17  ;;  %5622 = vmatmul.mubr.bf16.vlgmr.msra.gmra.mrb[40].mxu1 %v12695_v55 }
 0x264   :  { %5631 = vmatpush1.bf16.msra.mxu0 %v10805_v10  ;;  %5672 = vmatpush1.bf16.msra.mxu1 %v10808_v13  ;;  %v10841_v10 = vld [vmem:[#allocation14 + $0xcc0] ss:$16 sps:$4 sm:$0xff]  }
 0x265   :  { %5632 = vmatprep.subr.bf16.mxu0 %v10813_v19  ;;  %5673 = vmatprep.subr.bf16.mxu1 %v10816_v2  ;;  %v10844_v13 = vld [vmem:[#allocation14 + $0xec0] ss:$16 sps:$4 sm:$0xff]   ;;  %v10849_v19 = vld [vmem:[#allocation14 + $0xce4] ss:$16 sps:$4 sm:$0xff]  }
 0x266   :  { %5662 = vmatprep.mubr.bf16.mxu0 %v12699_v44  ;;  %5703 = vmatprep.mubr.bf16.mxu1 %v12704_v25  ;;  %v10852_v2 = vld [vmem:[#allocation14 + $0xee4] ss:$16 sps:$4 sm:$0xff]  }
 0x268   :  { %5633 = vmatpush1.bf16.msra.mxu0 %v10811_v49  ;;  %5674 = vmatpush1.bf16.msra.mxu1 %v10814_v43  ;;  %v10847_v49 = vld [vmem:[#allocation14 + $0xce0] ss:$16 sps:$4 sm:$0xff]  }
 0x269   :  { %5634 = vmatprep.subr.bf16.mxu0 %v10819_v47  ;;  %5675 = vmatprep.subr.bf16.mxu1 %v10822_v58  ;;  %v10850_v43 = vld [vmem:[#allocation14 + $0xee0] ss:$16 sps:$4 sm:$0xff]   ;;  %v10855_v47 = vld [vmem:[#allocation14 + $0xd04] ss:$16 sps:$4 sm:$0xff]  }
 0x26a   :  { %v10853_v58 = vld [vmem:[#allocation14 + $0xd00] ss:$16 sps:$4 sm:$0xff]  }
 0x26c   :  { %5635 = vmatpush1.bf16.msra.mxu0 %v10817_v3  ;;  %5676 = vmatpush1.bf16.msra.mxu1 %v10820_v36  ;;  %v10858_v3 = vld [vmem:[#allocation14 + $0xf04] ss:$16 sps:$4 sm:$0xff]   ;;  %v10856_v36 = vld [vmem:[#allocation14 + $0xf00] ss:$16 sps:$4 sm:$0xff]  }
 0x26d   :  { %5636 = vmatprep.subr.bf16.mxu0 %v10825_v8  ;;  %5677 = vmatprep.subr.bf16.mxu1 %v10828_v37  ;;  %v10861_v8 = vld [vmem:[#allocation14 + $0xd24] ss:$16 sps:$4 sm:$0xff]  }
 0x26e   :  { %v10864_v37 = vld [vmem:[#allocation14 + $0xf24] ss:$16 sps:$4 sm:$0xff]  }
 0x270   :  { %5637 = vmatpush1.bf16.msra.mxu0 %v10823_v26  ;;  %5678 = vmatpush1.bf16.msra.mxu1 %v10826_v42  ;;  %v10859_v26 = vld [vmem:[#allocation14 + $0xd20] ss:$16 sps:$4 sm:$0xff]  }
 0x271   :  { %5638 = vmatprep.subr.bf16.mxu0 %v10831_v45  ;;  %5679 = vmatprep.subr.bf16.mxu1 %v10834_v54  ;;  %v10862_v42 = vld [vmem:[#allocation14 + $0xf20] ss:$16 sps:$4 sm:$0xff]   ;;  %v10867_v45 = vld [vmem:[#allocation14 + $0xd44] ss:$16 sps:$4 sm:$0xff]  }
 0x272   :  { %v10870_v54 = vld [vmem:[#allocation14 + $0xf44] ss:$16 sps:$4 sm:$0xff]  }
 0x274   :  { %5639 = vmatpush1.bf16.msra.mxu0 %v10829_v51  ;;  %5680 = vmatpush1.bf16.msra.mxu1 %v10832_v57  ;;  %v10865_v51 = vld [vmem:[#allocation14 + $0xd40] ss:$16 sps:$4 sm:$0xff]  }
 0x275   :  { %5640 = vmatprep.subr.bf16.mxu0 %v10837_v59  ;;  %5681 = vmatprep.subr.bf16.mxu1 %v10840_v60  ;;  %v10868_v57 = vld [vmem:[#allocation14 + $0xf40] ss:$16 sps:$4 sm:$0xff]   ;;  %v10873_v59 = vld [vmem:[#allocation14 + $0xd64] ss:$16 sps:$4 sm:$0xff]  }
 0x276   :  { %v10876_v60 = vld [vmem:[#allocation14 + $0xf64] ss:$16 sps:$4 sm:$0xff]  }
 0x278   :  { %5641 = vmatpush1.bf16.msra.mxu0 %v10835_v4  ;;  %5682 = vmatpush1.bf16.msra.mxu1 %v10838_v6  ;;  %v10871_v4 = vld [vmem:[#allocation14 + $0xd60] ss:$16 sps:$4 sm:$0xff]  }
 0x279   :  { %5642 = vmatprep.subr.bf16.mxu0 %v10843_v7  ;;  %5683 = vmatprep.subr.bf16.mxu1 %v10846_v9  ;;  %v10874_v6 = vld [vmem:[#allocation14 + $0xf60] ss:$16 sps:$4 sm:$0xff]   ;;  %v10879_v7 = vld [vmem:[#allocation14 + $0xd84] ss:$16 sps:$4 sm:$0xff]  }
 0x27a   :  { %v10877_v9 = vld [vmem:[#allocation14 + $0xd80] ss:$16 sps:$4 sm:$0xff]  }
 0x27c   :  { %5643 = vmatpush1.bf16.msra.mxu0 %v10841_v10  ;;  %5684 = vmatpush1.bf16.msra.mxu1 %v10844_v13  ;;  %v10882_v10 = vld [vmem:[#allocation14 + $0xf84] ss:$16 sps:$4 sm:$0xff]   ;;  %v10880_v13 = vld [vmem:[#allocation14 + $0xf80] ss:$16 sps:$4 sm:$0xff]  }
 0x27d   :  { %5644 = vmatprep.subr.bf16.mxu0 %v10849_v19  ;;  %5685 = vmatprep.subr.bf16.mxu1 %v10852_v2  ;;  %v10885_v19 = vld [vmem:[#allocation14 + $0xda4] ss:$16 sps:$4 sm:$0xff]   ;;  %v10883_v2 = vld [vmem:[#allocation14 + $0xda0] ss:$16 sps:$4 sm:$0xff]  }
 0x280   :  { %5645 = vmatpush1.bf16.msra.mxu0 %v10847_v49  ;;  %5686 = vmatpush1.bf16.msra.mxu1 %v10850_v43  ;;  %v10888_v49 = vld [vmem:[#allocation14 + $0xfa4] ss:$16 sps:$4 sm:$0xff]   ;;  %v10886_v43 = vld [vmem:[#allocation14 + $0xfa0] ss:$16 sps:$4 sm:$0xff]  }
 0x281   :  { %5646 = vmatprep.subr.bf16.mxu0 %v10855_v47  ;;  %5687 = vmatprep.subr.bf16.mxu1 %v10858_v3  ;;  %v10891_v47 = vld [vmem:[#allocation14 + $0xdc4] ss:$16 sps:$4 sm:$0xff]  }
 0x282   :  { %v10894_v3 = vld [vmem:[#allocation14 + $0xfc4] ss:$16 sps:$4 sm:$0xff]  }
 0x284   :  { %5647 = vmatpush1.bf16.msra.mxu0 %v10853_v58  ;;  %5688 = vmatpush1.bf16.msra.mxu1 %v10856_v36  ;;  %v10889_v58 = vld [vmem:[#allocation14 + $0xdc0] ss:$16 sps:$4 sm:$0xff]  }
 0x285   :  { %5648 = vmatprep.subr.bf16.mxu0 %v10861_v8  ;;  %5689 = vmatprep.subr.bf16.mxu1 %v10864_v37  ;;  %v10892_v36 = vld [vmem:[#allocation14 + $0xfc0] ss:$16 sps:$4 sm:$0xff]   ;;  %v10897_v8 = vld [vmem:[#allocation14 + $0xde4] ss:$16 sps:$4 sm:$0xff]  }
 0x286   :  { %v10900_v37 = vld [vmem:[#allocation14 + $0xfe4] ss:$16 sps:$4 sm:$0xff]  }
 0x288   :  { %5649 = vmatpush1.bf16.msra.mxu0 %v10859_v26  ;;  %5690 = vmatpush1.bf16.msra.mxu1 %v10862_v42  ;;  %v10895_v26 = vld [vmem:[#allocation14 + $0xde0] ss:$16 sps:$4 sm:$0xff]  }
 0x289   :  { %5650 = vmatprep.subr.bf16.mxu0 %v10867_v45  ;;  %5691 = vmatprep.subr.bf16.mxu1 %v10870_v54  ;;  %v10898_v42 = vld [vmem:[#allocation14 + $0xfe0] ss:$16 sps:$4 sm:$0xff]   ;;  %v10903_v45 = vld [vmem:[#allocation14 + $0xc] ss:$16 sps:$4 sm:$0xff]   ;;  %v10901_v54 = vld [vmem:[#allocation14 + $0x8] ss:$16 sps:$4 sm:$0xff]  }
 0x28c   :  { %5651 = vmatpush1.bf16.msra.mxu0 %v10865_v51  ;;  %5692 = vmatpush1.bf16.msra.mxu1 %v10868_v57  ;;  %v10906_v51 = vld [vmem:[#allocation14 + $0x20c] ss:$16 sps:$4 sm:$0xff]   ;;  %v10904_v57 = vld [vmem:[#allocation14 + $0x208] ss:$16 sps:$4 sm:$0xff]  }
 0x28d   :  { %5652 = vmatprep.subr.bf16.mxu0 %v10873_v59  ;;  %5693 = vmatprep.subr.bf16.mxu1 %v10876_v60  ;;  %v10909_v59 = vld [vmem:[#allocation14 + $0x2c] ss:$16 sps:$4 sm:$0xff]   ;;  %v12715_v60 = vpack.c.bf16 %v12659_v5, %v12659_v5  ;;  %v10913_v5 = vld [vmem:[#allocation14 + $0x48] ss:$16 sps:$4 sm:$0xff]  }
 0x290   :  { %5653 = vmatpush1.bf16.msra.mxu0 %v10871_v4  ;;  %5694 = vmatpush1.bf16.msra.mxu1 %v10874_v6  ;;  %v12711_v4 = vpack.c.bf16 %v12655_v46, %v12655_v46  ;;  %v10907_v6 = vld [vmem:[#allocation14 + $0x28] ss:$16 sps:$4 sm:$0xff]   ;;  %v10918_v46 = vld [vmem:[#allocation14 + $0x24c] ss:$16 sps:$4 sm:$0xff]  }
 0x291   :  { %5654 = vmatprep.subr.bf16.mxu0 %v10879_v7  ;;  %5695 = vmatprep.subr.bf16.mxu1 %v10882_v10  ;;  %v10912_v7 = vld [vmem:[#allocation14 + $0x22c] ss:$16 sps:$4 sm:$0xff]  }
 0x292   :  { %v10915_v10 = vld [vmem:[#allocation14 + $0x4c] ss:$16 sps:$4 sm:$0xff]  }
 0x294   :  { %5655 = vmatpush1.bf16.msra.mxu0 %v10877_v9  ;;  %5696 = vmatpush1.bf16.msra.mxu1 %v10880_v13  ;;  %v10910_v9 = vld [vmem:[#allocation14 + $0x228] ss:$16 sps:$4 sm:$0xff]  }
 0x295   :  { %5656 = vmatprep.subr.bf16.mxu0 %v10885_v19  ;;  %5697 = vmatprep.subr.bf16.mxu1 %v10888_v49  ;;  %v10916_v13 = vld [vmem:[#allocation14 + $0x248] ss:$16 sps:$4 sm:$0xff]   ;;  %v10921_v19 = vld [vmem:[#allocation14 + $0x6c] ss:$16 sps:$4 sm:$0xff]  }
 0x296   :  { %v10924_v49 = vld [vmem:[#allocation14 + $0x26c] ss:$16 sps:$4 sm:$0xff]  }
 0x298   :  { %5657 = vmatpush1.bf16.msra.mxu0 %v10883_v2  ;;  %5698 = vmatpush1.bf16.msra.mxu1 %v10886_v43  ;;  %v10919_v2 = vld [vmem:[#allocation14 + $0x68] ss:$16 sps:$4 sm:$0xff]  }
 0x299   :  { %5658 = vmatprep.subr.bf16.mxu0 %v10891_v47  ;;  %5699 = vmatprep.subr.bf16.mxu1 %v10894_v3  ;;  %v10922_v43 = vld [vmem:[#allocation14 + $0x268] ss:$16 sps:$4 sm:$0xff]   ;;  %v10933_v3 = vld [vmem:[#allocation14 + $0xac] ss:$16 sps:$4 sm:$0xff]  }
 0x29a   :  { %v10925_v47 = vld [vmem:[#allocation14 + $0x88] ss:$16 sps:$4 sm:$0xff]  }
 0x29c   :  { %5659 = vmatpush1.bf16.msra.mxu0 %v10889_v58  ;;  %5700 = vmatpush1.bf16.msra.mxu1 %v10892_v36  ;;  %v10928_v58 = vld [vmem:[#allocation14 + $0x288] ss:$16 sps:$4 sm:$0xff]   ;;  %v10936_v36 = vld [vmem:[#allocation14 + $0x2ac] ss:$16 sps:$4 sm:$0xff]  }
 0x29d   :  { %5660 = vmatprep.subr.bf16.mxu0 %v10897_v8  ;;  %5701 = vmatprep.subr.bf16.mxu1 %v10900_v37  ;;  %v10931_v8 = vld [vmem:[#allocation14 + $0xa8] ss:$16 sps:$4 sm:$0xff]   ;;  %v10939_v37 = vld [vmem:[#allocation14 + $0xcc] ss:$16 sps:$4 sm:$0xff]  }
 0x2a0   :  { %5661 = vmatpush1.bf16.msra.mxu0 %v10895_v26  ;;  %5702 = vmatpush1.bf16.msra.mxu1 %v10898_v42  ;;  %v10934_v26 = vld [vmem:[#allocation14 + $0x2a8] ss:$16 sps:$4 sm:$0xff]   ;;  %v10942_v42 = vld [vmem:[#allocation14 + $0x2cc] ss:$16 sps:$4 sm:$0xff]  }
 0x2a1   :  { %5712 = vmatprep.subr.bf16.mxu0 %v10903_v45  ;;  %5753 = vmatprep.subr.bf16.mxu1 %v10906_v51 }
 0x2a3   :  { %5663 = vmatmul.mubr.bf16.vlgmr.msra.gmra.mrb[44].mxu0 %v12711_v4  ;;  %5704 = vmatmul.mubr.bf16.vlgmr.msra.gmra.mrb[44].mxu1 %v12715_v60 }
 0x2a4   :  { %5713 = vmatpush1.bf16.msra.mxu0 %v10901_v54  ;;  %5744 = vmatprep.mubr.bf16.mxu0 %v12613_v50  ;;  %v10927_v50 = vld [vmem:[#allocation14 + $0x8c] ss:$16 sps:$4 sm:$0xff]  }
 0x2a5   :  { %5754 = vmatpush1.bf16.msra.mxu1 %v10904_v57  ;;  %5785 = vmatprep.mubr.bf16.mxu1 %v12617_v34  ;;  %v10930_v34 = vld [vmem:[#allocation14 + $0x28c] ss:$16 sps:$4 sm:$0xff]   ;;  %v10937_v57 = vld [vmem:[#allocation14 + $0xc8] ss:$16 sps:$4 sm:$0xff]  }
 0x2a6   :  { %5714 = vmatprep.subr.bf16.mxu0 %v10909_v59  ;;  %5755 = vmatprep.subr.bf16.mxu1 %v10912_v7 }
 0x2a8   :  { %5715 = vmatpush1.bf16.msra.mxu0 %v10907_v6 }
 0x2a9   :  { %5756 = vmatpush1.bf16.msra.mxu1 %v10910_v9  ;;  %5716 = vmatprep.subr.bf16.mxu0 %v10915_v10  ;;  %v10940_v9 = vld [vmem:[#allocation14 + $0x2c8] ss:$16 sps:$4 sm:$0xff]   ;;  %v10945_v10 = vld [vmem:[#allocation14 + $0xec] ss:$16 sps:$4 sm:$0xff]  }
 0x2aa   :  { %5757 = vmatprep.subr.bf16.mxu1 %v10918_v46 }
 0x2ac   :  { %5717 = vmatpush1.bf16.msra.mxu0 %v10913_v5 }
 0x2ad   :  { %5758 = vmatpush1.bf16.msra.mxu1 %v10916_v13  ;;  %5718 = vmatprep.subr.bf16.mxu0 %v10921_v19 }
 0x2ae   :  { %5759 = vmatprep.subr.bf16.mxu1 %v10924_v49  ;;  %v10943_v49 = vld [vmem:[#allocation14 + $0xe8] ss:$16 sps:$4 sm:$0xff]  }
 0x2b0   :  { %5719 = vmatpush1.bf16.msra.mxu0 %v10919_v2  ;;  %v10948_v2 = vld [vmem:[#allocation14 + $0x2ec] ss:$16 sps:$4 sm:$0xff]  }
 0x2b1   :  { %5760 = vmatpush1.bf16.msra.mxu1 %v10922_v43  ;;  %5720 = vmatprep.subr.bf16.mxu0 %v10927_v50  ;;  %v10946_v43 = vld [vmem:[#allocation14 + $0x2e8] ss:$16 sps:$4 sm:$0xff]   ;;  %v10951_v50 = vld [vmem:[#allocation14 + $0x10c] ss:$16 sps:$4 sm:$0xff]  }
 0x2b2   :  { %5761 = vmatprep.subr.bf16.mxu1 %v10930_v34  ;;  %v10954_v34 = vld [vmem:[#allocation14 + $0x30c] ss:$16 sps:$4 sm:$0xff]  }
 0x2b4   :  { %5721 = vmatpush1.bf16.msra.mxu0 %v10925_v47  ;;  %v10949_v47 = vld [vmem:[#allocation14 + $0x108] ss:$16 sps:$4 sm:$0xff]  }
 0x2b5   :  { %5762 = vmatpush1.bf16.msra.mxu1 %v10928_v58  ;;  %5722 = vmatprep.subr.bf16.mxu0 %v10933_v3  ;;  %v10952_v58 = vld [vmem:[#allocation14 + $0x308] ss:$16 sps:$4 sm:$0xff]   ;;  %v10957_v3 = vld [vmem:[#allocation14 + $0x12c] ss:$16 sps:$4 sm:$0xff]  }
 0x2b6   :  { %v5418_v45 = vpop.f32.mrb[32].mxu0  ;;  %5763 = vmatprep.subr.bf16.mxu1 %v10936_v36  ;;  %v5459_v51 = vpop.f32.mrb[32].mxu1  ;;  %v10955_v36 = vld [vmem:[#allocation14 + $0x128] ss:$16 sps:$4 sm:$0xff]  }
 0x2b7   :  { %v5420_v54 = vpop.f32.mrb[33].mxu0  ;;  %v12721_v59 = vadd.f32 %v5459_v51, %v5418_v45  ;;  %v5461_v6 = vpop.f32.mrb[33].mxu1  ;;  %v10966_v45 = vld [vmem:[#allocation14 + $0x34c] ss:$16 sps:$4 sm:$0xff]   ;;  %v10964_v51 = vld [vmem:[#allocation14 + $0x348] ss:$16 sps:$4 sm:$0xff]  }
 0x2b8   :  { %5723 = vmatpush1.bf16.msra.mxu0 %v10931_v8  ;;  %v5422_v7 = vpop.f32.mrb[34].mxu0  ;;  %v12723_v46 = vadd.f32 %v5461_v6, %v5420_v54  ;;  %v5463_v5 = vpop.f32.mrb[34].mxu1  ;;  %v10960_v8 = vld [vmem:[#allocation14 + $0x32c] ss:$16 sps:$4 sm:$0xff]  }
 0x2b9   :  { %5764 = vmatpush1.bf16.msra.mxu1 %v10934_v26  ;;  %v5423_v13 = vpop.f32.mrb[35].mxu0  ;;  %5724 = vmatprep.subr.bf16.mxu0 %v10939_v37  ;;  %v5464_v19 = vpop.f32.mrb[35].mxu1  ;;  %v10958_v26 = vld [vmem:[#allocation14 + $0x328] ss:$16 sps:$4 sm:$0xff]   ;;  %v10963_v37 = vld [vmem:[#allocation14 + $0x14c] ss:$16 sps:$4 sm:$0xff]  }
 0x2ba   :  { %5765 = vmatprep.subr.bf16.mxu1 %v10942_v42  ;;  %v10961_v42 = vld [vmem:[#allocation14 + $0x148] ss:$16 sps:$4 sm:$0xff]   ;;  %v10969_v54 = vld [vmem:[#allocation14 + $0x16c] ss:$16 sps:$4 sm:$0xff]  }
 0x2bb   :  { %v10972_v6 = vld [vmem:[#allocation14 + $0x36c] ss:$16 sps:$4 sm:$0xff]   ;;  %v10970_v7 = vld [vmem:[#allocation14 + $0x368] ss:$16 sps:$4 sm:$0xff]  }
 0x2bc   :  { %5725 = vmatpush1.bf16.msra.mxu0 %v10937_v57  ;;  %v10967_v57 = vld [vmem:[#allocation14 + $0x168] ss:$16 sps:$4 sm:$0xff]   ;;  %v10981_v19 = vld [vmem:[#allocation14 + $0x1ac] ss:$16 sps:$4 sm:$0xff]  }
 0x2bd   :  { %5766 = vmatpush1.bf16.msra.mxu1 %v10940_v9  ;;  %5726 = vmatprep.subr.bf16.mxu0 %v10945_v10  ;;  %v10975_v9 = vld [vmem:[#allocation14 + $0x18c] ss:$16 sps:$4 sm:$0xff]   ;;  %v10973_v5 = vld [vmem:[#allocation14 + $0x188] ss:$16 sps:$4 sm:$0xff]  }
 0x2be   :  { %5767 = vmatprep.subr.bf16.mxu1 %v10948_v2  ;;  %v10978_v10 = vld [vmem:[#allocation14 + $0x38c] ss:$16 sps:$4 sm:$0xff]   ;;  %v10976_v13 = vld [vmem:[#allocation14 + $0x388] ss:$16 sps:$4 sm:$0xff]  }
 0x2bf   :  { %v10984_v2 = vld [vmem:[#allocation14 + $0x3ac] ss:$16 sps:$4 sm:$0xff]  }
 0x2c0   :  { %5727 = vmatpush1.bf16.msra.mxu0 %v10943_v49  ;;  %v10979_v49 = vld [vmem:[#allocation14 + $0x1a8] ss:$16 sps:$4 sm:$0xff]  }
 0x2c1   :  { %5768 = vmatpush1.bf16.msra.mxu1 %v10946_v43  ;;  %5728 = vmatprep.subr.bf16.mxu0 %v10951_v50  ;;  %v10982_v43 = vld [vmem:[#allocation14 + $0x3a8] ss:$16 sps:$4 sm:$0xff]   ;;  %v10987_v50 = vld [vmem:[#allocation14 + $0x1cc] ss:$16 sps:$4 sm:$0xff]  }
 0x2c2   :  { %5769 = vmatprep.subr.bf16.mxu1 %v10954_v34  ;;  %v10985_v34 = vld [vmem:[#allocation14 + $0x1c8] ss:$16 sps:$4 sm:$0xff]  }
 0x2c4   :  { %5729 = vmatpush1.bf16.msra.mxu0 %v10949_v47  ;;  %v10990_v47 = vld [vmem:[#allocation14 + $0x3cc] ss:$16 sps:$4 sm:$0xff]  }
 0x2c5   :  { %5770 = vmatpush1.bf16.msra.mxu1 %v10952_v58  ;;  %5730 = vmatprep.subr.bf16.mxu0 %v10957_v3  ;;  %v10988_v58 = vld [vmem:[#allocation14 + $0x3c8] ss:$16 sps:$4 sm:$0xff]   ;;  %v10993_v3 = vld [vmem:[#allocation14 + $0x1ec] ss:$16 sps:$4 sm:$0xff]  }
 0x2c6   :  { %5771 = vmatprep.subr.bf16.mxu1 %v10960_v8  ;;  %v10991_v8 = vld [vmem:[#allocation14 + $0x1e8] ss:$16 sps:$4 sm:$0xff]  }
 0x2c8   :  { %5731 = vmatpush1.bf16.msra.mxu0 %v10955_v36  ;;  %v10996_v36 = vld [vmem:[#allocation14 + $0x3ec] ss:$16 sps:$4 sm:$0xff]  }
 0x2c9   :  { %5772 = vmatpush1.bf16.msra.mxu1 %v10958_v26  ;;  %5732 = vmatprep.subr.bf16.mxu0 %v10963_v37  ;;  %v10994_v26 = vld [vmem:[#allocation14 + $0x3e8] ss:$16 sps:$4 sm:$0xff]   ;;  %v10999_v37 = vld [vmem:[#allocation14 + $0x40c] ss:$16 sps:$4 sm:$0xff]  }
 0x2ca   :  { %5773 = vmatprep.subr.bf16.mxu1 %v10966_v45  ;;  %v10997_v45 = vld [vmem:[#allocation14 + $0x408] ss:$16 sps:$4 sm:$0xff]  }
 0x2cc   :  { %5733 = vmatpush1.bf16.msra.mxu0 %v10961_v42  ;;  %v11002_v42 = vld [vmem:[#allocation14 + $0x60c] ss:$16 sps:$4 sm:$0xff]  }
 0x2cd   :  { %5774 = vmatpush1.bf16.msra.mxu1 %v10964_v51  ;;  %5734 = vmatprep.subr.bf16.mxu0 %v10969_v54  ;;  %v11000_v51 = vld [vmem:[#allocation14 + $0x608] ss:$16 sps:$4 sm:$0xff]   ;;  %v11005_v54 = vld [vmem:[#allocation14 + $0x42c] ss:$16 sps:$4 sm:$0xff]  }
 0x2ce   :  { %5775 = vmatprep.subr.bf16.mxu1 %v10972_v6  ;;  %v11003_v6 = vld [vmem:[#allocation14 + $0x428] ss:$16 sps:$4 sm:$0xff]  }
 0x2d0   :  { %5735 = vmatpush1.bf16.msra.mxu0 %v10967_v57  ;;  %v11008_v57 = vld [vmem:[#allocation14 + $0x62c] ss:$16 sps:$4 sm:$0xff]  }
 0x2d1   :  { %5776 = vmatpush1.bf16.msra.mxu1 %v10970_v7  ;;  %5736 = vmatprep.subr.bf16.mxu0 %v10975_v9  ;;  %v11006_v7 = vld [vmem:[#allocation14 + $0x628] ss:$16 sps:$4 sm:$0xff]   ;;  %v11011_v9 = vld [vmem:[#allocation14 + $0x44c] ss:$16 sps:$4 sm:$0xff]  }
 0x2d2   :  { %5777 = vmatprep.subr.bf16.mxu1 %v10978_v10  ;;  %v11014_v10 = vld [vmem:[#allocation14 + $0x64c] ss:$16 sps:$4 sm:$0xff]  }
 0x2d4   :  { %5737 = vmatpush1.bf16.msra.mxu0 %v10973_v5  ;;  %v11009_v5 = vld [vmem:[#allocation14 + $0x448] ss:$16 sps:$4 sm:$0xff]  }
 0x2d5   :  { %5778 = vmatpush1.bf16.msra.mxu1 %v10976_v13  ;;  %5738 = vmatprep.subr.bf16.mxu0 %v10981_v19  ;;  %v11017_v13 = vld [vmem:[#allocation14 + $0x46c] ss:$16 sps:$4 sm:$0xff]   ;;  %v11015_v19 = vld [vmem:[#allocation14 + $0x468] ss:$16 sps:$4 sm:$0xff]  }
 0x2d6   :  { %5779 = vmatprep.subr.bf16.mxu1 %v10984_v2  ;;  %v11023_v2 = vld [vmem:[#allocation14 + $0x48c] ss:$16 sps:$4 sm:$0xff]  }
 0x2d8   :  { %5739 = vmatpush1.bf16.msra.mxu0 %v10979_v49  ;;  %v11026_v49 = vld [vmem:[#allocation14 + $0x68c] ss:$16 sps:$4 sm:$0xff]  }
 0x2d9   :  { %5780 = vmatpush1.bf16.msra.mxu1 %v10982_v43  ;;  %5740 = vmatprep.subr.bf16.mxu0 %v10987_v50  ;;  %v11024_v43 = vld [vmem:[#allocation14 + $0x688] ss:$16 sps:$4 sm:$0xff]   ;;  %v11029_v50 = vld [vmem:[#allocation14 + $0x4ac] ss:$16 sps:$4 sm:$0xff]  }
 0x2da   :  { %5781 = vmatprep.subr.bf16.mxu1 %v10990_v47  ;;  %v11032_v47 = vld [vmem:[#allocation14 + $0x6ac] ss:$16 sps:$4 sm:$0xff]  }
 0x2dc   :  { %5741 = vmatpush1.bf16.msra.mxu0 %v10985_v34  ;;  %v11027_v34 = vld [vmem:[#allocation14 + $0x4a8] ss:$16 sps:$4 sm:$0xff]  }
 0x2dd   :  { %5782 = vmatpush1.bf16.msra.mxu1 %v10988_v58  ;;  %5742 = vmatprep.subr.bf16.mxu0 %v10993_v3  ;;  %v11030_v58 = vld [vmem:[#allocation14 + $0x6a8] ss:$16 sps:$4 sm:$0xff]   ;;  %v11035_v3 = vld [vmem:[#allocation14 + $0x4cc] ss:$16 sps:$4 sm:$0xff]  }
 0x2de   :  { %5783 = vmatprep.subr.bf16.mxu1 %v10996_v36 }
 0x2e0   :  { %5743 = vmatpush1.bf16.msra.mxu0 %v10991_v8  ;;  %v11038_v8 = vld [vmem:[#allocation14 + $0x6cc] ss:$16 sps:$4 sm:$0xff]  }
 0x2e1   :  { %5784 = vmatpush1.bf16.msra.mxu1 %v10994_v26  ;;  %5794 = vmatprep.subr.bf16.mxu0 %v10999_v37 }
 0x2e2   :  { %5835 = vmatprep.subr.bf16.mxu1 %v11002_v42 }
 0x2e3   :  { %5745 = vmatmul.mubr.bf16.vlgmr.msra.gmra.mrb[48].mxu0 %v12615_v33  ;;  %v11012_v33 = vld [vmem:[#allocation14 + $0x648] ss:$16 sps:$4 sm:$0xff]  }
 0x2e4   :  { %5786 = vmatmul.mubr.bf16.vlgmr.msra.gmra.mrb[48].mxu1 %v12611_v27  ;;  %5795 = vmatpush1.bf16.msra.mxu0 %v10997_v45  ;;  %v11020_v27 = vld [vmem:[#allocation14 + $0x66c] ss:$16 sps:$4 sm:$0xff]  }
 0x2e5   :  { %5826 = vmatprep.mubr.bf16.mxu0 %v12631_v11  ;;  %5836 = vmatpush1.bf16.msra.mxu1 %v11000_v51  ;;  %v11018_v11 = vld [vmem:[#allocation14 + $0x668] ss:$16 sps:$4 sm:$0xff]  }
 0x2e6   :  { %5867 = vmatprep.mubr.bf16.mxu1 %v12633_v18  ;;  %5796 = vmatprep.subr.bf16.mxu0 %v11005_v54  ;;  %v11021_v18 = vld [vmem:[#allocation14 + $0x488] ss:$16 sps:$4 sm:$0xff]  }
 0x2e7   :  { %5837 = vmatprep.subr.bf16.mxu1 %v11008_v57  ;;  %v11033_v57 = vld [vmem:[#allocation14 + $0x4c8] ss:$16 sps:$4 sm:$0xff]  }
 0x2e8   :  { %5797 = vmatpush1.bf16.msra.mxu0 %v11003_v6 }
 0x2e9   :  { %5838 = vmatpush1.bf16.msra.mxu1 %v11006_v7  ;;  %5798 = vmatprep.subr.bf16.mxu0 %v11011_v9 }
 0x2ea   :  { %5839 = vmatprep.subr.bf16.mxu1 %v11014_v10  ;;  %v11036_v10 = vld [vmem:[#allocation14 + $0x6c8] ss:$16 sps:$4 sm:$0xff]  }
 0x2ec   :  { %5799 = vmatpush1.bf16.msra.mxu0 %v11009_v5  ;;  %v11041_v5 = vld [vmem:[#allocation14 + $0x4ec] ss:$16 sps:$4 sm:$0xff]  }
 0x2ed   :  { %5840 = vmatpush1.bf16.msra.mxu1 %v11012_v33  ;;  %5800 = vmatprep.subr.bf16.mxu0 %v11017_v13 }
 0x2ee   :  { %5841 = vmatprep.subr.bf16.mxu1 %v11020_v27  ;;  %v11039_v27 = vld [vmem:[#allocation14 + $0x4e8] ss:$16 sps:$4 sm:$0xff]  }
 0x2f0   :  { %5801 = vmatpush1.bf16.msra.mxu0 %v11015_v19  ;;  %v11047_v19 = vld [vmem:[#allocation14 + $0x50c] ss:$16 sps:$4 sm:$0xff]  }
 0x2f1   :  { %5842 = vmatpush1.bf16.msra.mxu1 %v11018_v11  ;;  %5802 = vmatprep.subr.bf16.mxu0 %v11023_v2  ;;  %v11050_v11 = vld [vmem:[#allocation14 + $0x70c] ss:$16 sps:$4 sm:$0xff]   ;;  %v11045_v2 = vld [vmem:[#allocation14 + $0x508] ss:$16 sps:$4 sm:$0xff]  }
 0x2f2   :  { %5843 = vmatprep.subr.bf16.mxu1 %v11026_v49  ;;  %v11048_v49 = vld [vmem:[#allocation14 + $0x708] ss:$16 sps:$4 sm:$0xff]  }
 0x2f4   :  { %5803 = vmatpush1.bf16.msra.mxu0 %v11021_v18  ;;  %v11053_v18 = vld [vmem:[#allocation14 + $0x52c] ss:$16 sps:$4 sm:$0xff]  }
 0x2f5   :  { %5844 = vmatpush1.bf16.msra.mxu1 %v11024_v43  ;;  %5804 = vmatprep.subr.bf16.mxu0 %v11029_v50  ;;  %v11056_v43 = vld [vmem:[#allocation14 + $0x72c] ss:$16 sps:$4 sm:$0xff]   ;;  %v11051_v50 = vld [vmem:[#allocation14 + $0x528] ss:$16 sps:$4 sm:$0xff]  }
 0x2f6   :  { %v5500_v36 = vpop.f32.mrb[36].mxu0  ;;  %5845 = vmatprep.subr.bf16.mxu1 %v11032_v47  ;;  %v5541_v37 = vpop.f32.mrb[36].mxu1  ;;  %v11054_v47 = vld [vmem:[#allocation14 + $0x728] ss:$16 sps:$4 sm:$0xff]  }
 0x2f7   :  { %v5501_v26 = vadd.f32 %v5500_v36, %v12721_v59  ;;  %v5502_v42 = vpop.f32.mrb[37].mxu0  ;;  %v5543_v51 = vpop.f32.mrb[37].mxu1  ;;  %v11044_v59 = vld [vmem:[#allocation14 + $0x6ec] ss:$16 sps:$4 sm:$0xff]   ;;  %v11060_v36 = vld [vmem:[#allocation14 + $0x748] ss:$16 sps:$4 sm:$0xff]  }
 0x2f8   :  { %v5503_v45 = vadd.f32 %v5502_v42, %v12723_v46  ;;  %v5504_v54 = vpop.f32.mrb[38].mxu0  ;;  %5805 = vmatpush1.bf16.msra.mxu0 %v11027_v34  ;;  %v5545_v7 = vpop.f32.mrb[38].mxu1  ;;  %v11042_v46 = vld [vmem:[#allocation14 + $0x6e8] ss:$16 sps:$4 sm:$0xff]   ;;  %v11059_v34 = vld [vmem:[#allocation14 + $0x54c] ss:$16 sps:$4 sm:$0xff]  }
 0x2f9   :  { %v12731_v6 = vadd.f32 %v5541_v37, %v5501_v26  ;;  %5846 = vmatpush1.bf16.msra.mxu1 %v11030_v58  ;;  %v5505_v9 = vpop.f32.mrb[39].mxu0  ;;  %5806 = vmatprep.subr.bf16.mxu0 %v11035_v3  ;;  %v5546_v13 = vpop.f32.mrb[39].mxu1  ;;  %v11062_v58 = vld [vmem:[#allocation14 + $0x74c] ss:$16 sps:$4 sm:$0xff]   ;;  %v11057_v3 = vld [vmem:[#allocation14 + $0x548] ss:$16 sps:$4 sm:$0xff]  }
 0x2fa   :  { %v12733_v33 = vadd.f32 %v5543_v51, %v5503_v45  ;;  %5847 = vmatprep.subr.bf16.mxu1 %v11038_v8  ;;  %v11065_v8 = vld [vmem:[#allocation14 + $0x56c] ss:$16 sps:$4 sm:$0xff]   ;;  %v11063_v37 = vld [vmem:[#allocation14 + $0x568] ss:$16 sps:$4 sm:$0xff]  }
 0x2fb   :  { %v11068_v26 = vld [vmem:[#allocation14 + $0x76c] ss:$16 sps:$4 sm:$0xff]   ;;  %v11066_v42 = vld [vmem:[#allocation14 + $0x768] ss:$16 sps:$4 sm:$0xff]  }
 0x2fc   :  { %5807 = vmatpush1.bf16.msra.mxu0 %v11033_v57  ;;  %v11071_v45 = vld [vmem:[#allocation14 + $0x58c] ss:$16 sps:$4 sm:$0xff]   ;;  %v11069_v54 = vld [vmem:[#allocation14 + $0x588] ss:$16 sps:$4 sm:$0xff]  }
 0x2fd   :  { %5848 = vmatpush1.bf16.msra.mxu1 %v11036_v10  ;;  %5808 = vmatprep.subr.bf16.mxu0 %v11041_v5  ;;  %v11074_v51 = vld [vmem:[#allocation14 + $0x78c] ss:$16 sps:$4 sm:$0xff]   ;;  %v11072_v57 = vld [vmem:[#allocation14 + $0x788] ss:$16 sps:$4 sm:$0xff]  }
 0x2fe   :  { %5849 = vmatprep.subr.bf16.mxu1 %v11044_v59  ;;  %v11077_v7 = vld [vmem:[#allocation14 + $0x5ac] ss:$16 sps:$4 sm:$0xff]   ;;  %v11075_v10 = vld [vmem:[#allocation14 + $0x5a8] ss:$16 sps:$4 sm:$0xff]  }
 0x2ff   :  { %v11080_v9 = vld [vmem:[#allocation14 + $0x7ac] ss:$16 sps:$4 sm:$0xff]   ;;  %v11078_v5 = vld [vmem:[#allocation14 + $0x7a8] ss:$16 sps:$4 sm:$0xff]  }
 0x300   :  { %5809 = vmatpush1.bf16.msra.mxu0 %v11039_v27  ;;  %v11083_v13 = vld [vmem:[#allocation14 + $0x5cc] ss:$16 sps:$4 sm:$0xff]   ;;  %v11081_v27 = vld [vmem:[#allocation14 + $0x5c8] ss:$16 sps:$4 sm:$0xff]  }
 0x301   :  { %5850 = vmatpush1.bf16.msra.mxu1 %v11042_v46  ;;  %5810 = vmatprep.subr.bf16.mxu0 %v11047_v19  ;;  %v11086_v59 = vld [vmem:[#allocation14 + $0x7cc] ss:$16 sps:$4 sm:$0xff]   ;;  %v11084_v46 = vld [vmem:[#allocation14 + $0x7c8] ss:$16 sps:$4 sm:$0xff]  }
 0x302   :  { %5851 = vmatprep.subr.bf16.mxu1 %v11050_v11  ;;  %v11089_v19 = vld [vmem:[#allocation14 + $0x5ec] ss:$16 sps:$4 sm:$0xff]  }
 0x303   :  { %v11092_v11 = vld [vmem:[#allocation14 + $0x7ec] ss:$16 sps:$4 sm:$0xff]  }
 0x304   :  { %5811 = vmatpush1.bf16.msra.mxu0 %v11045_v2  ;;  %v11087_v2 = vld [vmem:[#allocation14 + $0x5e8] ss:$16 sps:$4 sm:$0xff]  }
 0x305   :  { %5852 = vmatpush1.bf16.msra.mxu1 %v11048_v49  ;;  %5812 = vmatprep.subr.bf16.mxu0 %v11053_v18  ;;  %v11090_v49 = vld [vmem:[#allocation14 + $0x7e8] ss:$16 sps:$4 sm:$0xff]   ;;  %v11095_v18 = vld [vmem:[#allocation14 + $0x80c] ss:$16 sps:$4 sm:$0xff]  }
 0x306   :  { %5853 = vmatprep.subr.bf16.mxu1 %v11056_v43  ;;  %v11098_v43 = vld [vmem:[#allocation14 + $0xa0c] ss:$16 sps:$4 sm:$0xff]  }
 0x308   :  { %5813 = vmatpush1.bf16.msra.mxu0 %v11051_v50  ;;  %v11093_v50 = vld [vmem:[#allocation14 + $0x808] ss:$16 sps:$4 sm:$0xff]  }
 0x309   :  { %5854 = vmatpush1.bf16.msra.mxu1 %v11054_v47  ;;  %5814 = vmatprep.subr.bf16.mxu0 %v11059_v34  ;;  %v11096_v47 = vld [vmem:[#allocation14 + $0xa08] ss:$16 sps:$4 sm:$0xff]   ;;  %v11101_v34 = vld [vmem:[#allocation14 + $0x82c] ss:$16 sps:$4 sm:$0xff]  }
 0x30a   :  { %5855 = vmatprep.subr.bf16.mxu1 %v11062_v58  ;;  %v11104_v58 = vld [vmem:[#allocation14 + $0xa2c] ss:$16 sps:$4 sm:$0xff]  }
 0x30c   :  { %5815 = vmatpush1.bf16.msra.mxu0 %v11057_v3  ;;  %v11099_v3 = vld [vmem:[#allocation14 + $0x828] ss:$16 sps:$4 sm:$0xff]  }
 0x30d   :  { %5856 = vmatpush1.bf16.msra.mxu1 %v11060_v36  ;;  %5816 = vmatprep.subr.bf16.mxu0 %v11065_v8  ;;  %v11102_v36 = vld [vmem:[#allocation14 + $0xa28] ss:$16 sps:$4 sm:$0xff]   ;;  %v11107_v8 = vld [vmem:[#allocation14 + $0x84c] ss:$16 sps:$4 sm:$0xff]  }
 0x30e   :  { %5857 = vmatprep.subr.bf16.mxu1 %v11068_v26  ;;  %v11110_v26 = vld [vmem:[#allocation14 + $0xa4c] ss:$16 sps:$4 sm:$0xff]  }
 0x310   :  { %5817 = vmatpush1.bf16.msra.mxu0 %v11063_v37  ;;  %v11105_v37 = vld [vmem:[#allocation14 + $0x848] ss:$16 sps:$4 sm:$0xff]  }
 0x311   :  { %5858 = vmatpush1.bf16.msra.mxu1 %v11066_v42  ;;  %5818 = vmatprep.subr.bf16.mxu0 %v11071_v45  ;;  %v11113_v42 = vld [vmem:[#allocation14 + $0x86c] ss:$16 sps:$4 sm:$0xff]   ;;  %v11111_v45 = vld [vmem:[#allocation14 + $0x868] ss:$16 sps:$4 sm:$0xff]  }
 0x312   :  { %5859 = vmatprep.subr.bf16.mxu1 %v11074_v51  ;;  %v11119_v51 = vld [vmem:[#allocation14 + $0x88c] ss:$16 sps:$4 sm:$0xff]  }
 0x314   :  { %5819 = vmatpush1.bf16.msra.mxu0 %v11069_v54  ;;  %v11122_v54 = vld [vmem:[#allocation14 + $0xa8c] ss:$16 sps:$4 sm:$0xff]  }
 0x315   :  { %5860 = vmatpush1.bf16.msra.mxu1 %v11072_v57  ;;  %5820 = vmatprep.subr.bf16.mxu0 %v11077_v7  ;;  %v11120_v57 = vld [vmem:[#allocation14 + $0xa88] ss:$16 sps:$4 sm:$0xff]   ;;  %v11125_v7 = vld [vmem:[#allocation14 + $0x8ac] ss:$16 sps:$4 sm:$0xff]  }
 0x316   :  { %5861 = vmatprep.subr.bf16.mxu1 %v11080_v9  ;;  %v11128_v9 = vld [vmem:[#allocation14 + $0xaac] ss:$16 sps:$4 sm:$0xff]  }
 0x318   :  { %5821 = vmatpush1.bf16.msra.mxu0 %v11075_v10  ;;  %v11123_v10 = vld [vmem:[#allocation14 + $0x8a8] ss:$16 sps:$4 sm:$0xff]  }
 0x319   :  { %5862 = vmatpush1.bf16.msra.mxu1 %v11078_v5  ;;  %5822 = vmatprep.subr.bf16.mxu0 %v11083_v13  ;;  %v11126_v5 = vld [vmem:[#allocation14 + $0xaa8] ss:$16 sps:$4 sm:$0xff]   ;;  %v11131_v13 = vld [vmem:[#allocation14 + $0x8cc] ss:$16 sps:$4 sm:$0xff]  }
 0x31a   :  { %5863 = vmatprep.subr.bf16.mxu1 %v11086_v59 }
 0x31c   :  { %5823 = vmatpush1.bf16.msra.mxu0 %v11081_v27  ;;  %v11134_v27 = vld [vmem:[#allocation14 + $0xacc] ss:$16 sps:$4 sm:$0xff]  }
 0x31d   :  { %5864 = vmatpush1.bf16.msra.mxu1 %v11084_v46  ;;  %5824 = vmatprep.subr.bf16.mxu0 %v11089_v19 }
 0x31e   :  { %5865 = vmatprep.subr.bf16.mxu1 %v11092_v11 }
 0x320   :  { %5825 = vmatpush1.bf16.msra.mxu0 %v11087_v2 }
 0x321   :  { %5866 = vmatpush1.bf16.msra.mxu1 %v11090_v49  ;;  %5876 = vmatprep.subr.bf16.mxu0 %v11095_v18 }
 0x322   :  { %5917 = vmatprep.subr.bf16.mxu1 %v11098_v43  ;;  %v11129_v43 = vld [vmem:[#allocation14 + $0x8c8] ss:$16 sps:$4 sm:$0xff]  }
 0x323   :  { %5827 = vmatmul.mubr.bf16.vlgmr.msra.gmra.mrb[52].mxu0 %v12674_v12  ;;  %v11108_v12 = vld [vmem:[#allocation14 + $0xa48] ss:$16 sps:$4 sm:$0xff]  }
 0x324   :  { %5868 = vmatmul.mubr.bf16.vlgmr.msra.gmra.mrb[52].mxu1 %v12677_v20  ;;  %5877 = vmatpush1.bf16.msra.mxu0 %v11093_v50  ;;  %v11116_v20 = vld [vmem:[#allocation14 + $0xa6c] ss:$16 sps:$4 sm:$0xff]  }
 0x325   :  { %5908 = vmatprep.mubr.bf16.mxu0 %v12679_v32  ;;  %5918 = vmatpush1.bf16.msra.mxu1 %v11096_v47  ;;  %v11114_v32 = vld [vmem:[#allocation14 + $0xa68] ss:$16 sps:$4 sm:$0xff]  }
 0x326   :  { %5949 = vmatprep.mubr.bf16.mxu1 %v12682_v35  ;;  %5878 = vmatprep.subr.bf16.mxu0 %v11101_v34  ;;  %v11117_v35 = vld [vmem:[#allocation14 + $0x888] ss:$16 sps:$4 sm:$0xff]  }
 0x327   :  { %5919 = vmatprep.subr.bf16.mxu1 %v11104_v58  ;;  %v11132_v58 = vld [vmem:[#allocation14 + $0xac8] ss:$16 sps:$4 sm:$0xff]  }
 0x328   :  { %5879 = vmatpush1.bf16.msra.mxu0 %v11099_v3  ;;  %v11137_v3 = vld [vmem:[#allocation14 + $0x8ec] ss:$16 sps:$4 sm:$0xff]  }
 0x329   :  { %5920 = vmatpush1.bf16.msra.mxu1 %v11102_v36  ;;  %5880 = vmatprep.subr.bf16.mxu0 %v11107_v8 }
 0x32a   :  { %5921 = vmatprep.subr.bf16.mxu1 %v11110_v26  ;;  %v11135_v26 = vld [vmem:[#allocation14 + $0x8e8] ss:$16 sps:$4 sm:$0xff]  }
 0x32c   :  { %5881 = vmatpush1.bf16.msra.mxu0 %v11105_v37  ;;  %v11143_v37 = vld [vmem:[#allocation14 + $0x90c] ss:$16 sps:$4 sm:$0xff]  }
 0x32d   :  { %5922 = vmatpush1.bf16.msra.mxu1 %v11108_v12  ;;  %5882 = vmatprep.subr.bf16.mxu0 %v11113_v42  ;;  %v11146_v12 = vld [vmem:[#allocation14 + $0xb0c] ss:$16 sps:$4 sm:$0xff]   ;;  %v11141_v42 = vld [vmem:[#allocation14 + $0x908] ss:$16 sps:$4 sm:$0xff]  }
 0x32e   :  { %5923 = vmatprep.subr.bf16.mxu1 %v11116_v20  ;;  %v11144_v20 = vld [vmem:[#allocation14 + $0xb08] ss:$16 sps:$4 sm:$0xff]  }
 0x330   :  { %5883 = vmatpush1.bf16.msra.mxu0 %v11111_v45  ;;  %v11149_v45 = vld [vmem:[#allocation14 + $0x92c] ss:$16 sps:$4 sm:$0xff]  }
 0x331   :  { %5924 = vmatpush1.bf16.msra.mxu1 %v11114_v32  ;;  %5884 = vmatprep.subr.bf16.mxu0 %v11119_v51  ;;  %v11152_v32 = vld [vmem:[#allocation14 + $0xb2c] ss:$16 sps:$4 sm:$0xff]   ;;  %v11147_v51 = vld [vmem:[#allocation14 + $0x928] ss:$16 sps:$4 sm:$0xff]  }
 0x332   :  { %5925 = vmatprep.subr.bf16.mxu1 %v11122_v54  ;;  %v11150_v54 = vld [vmem:[#allocation14 + $0xb28] ss:$16 sps:$4 sm:$0xff]  }
 0x334   :  { %5885 = vmatpush1.bf16.msra.mxu0 %v11117_v35  ;;  %v11155_v35 = vld [vmem:[#allocation14 + $0x94c] ss:$16 sps:$4 sm:$0xff]  }
 0x335   :  { %5926 = vmatpush1.bf16.msra.mxu1 %v11120_v57  ;;  %5886 = vmatprep.subr.bf16.mxu0 %v11125_v7  ;;  %v11158_v57 = vld [vmem:[#allocation14 + $0xb4c] ss:$16 sps:$4 sm:$0xff]   ;;  %v11153_v7 = vld [vmem:[#allocation14 + $0x948] ss:$16 sps:$4 sm:$0xff]  }
 0x336   :  { %v5582_v59 = vpop.f32.mrb[40].mxu0  ;;  %5927 = vmatprep.subr.bf16.mxu1 %v11128_v9  ;;  %v5623_v19 = vpop.f32.mrb[40].mxu1  ;;  %v11156_v9 = vld [vmem:[#allocation14 + $0xb48] ss:$16 sps:$4 sm:$0xff]  }
 0x337   :  { %v5583_v46 = vadd.f32 %v5582_v59, %v12731_v6  ;;  %v5584_v11 = vpop.f32.mrb[41].mxu0  ;;  %v5625_v49 = vpop.f32.mrb[41].mxu1  ;;  %v11140_v6 = vld [vmem:[#allocation14 + $0xaec] ss:$16 sps:$4 sm:$0xff]   ;;  %v11162_v59 = vld [vmem:[#allocation14 + $0xb68] ss:$16 sps:$4 sm:$0xff]  }
 0x338   :  { %v5585_v2 = vadd.f32 %v5584_v11, %v12733_v33  ;;  %v5586_v18 = vpop.f32.mrb[42].mxu0  ;;  %5887 = vmatpush1.bf16.msra.mxu0 %v11123_v10  ;;  %v5627_v47 = vpop.f32.mrb[42].mxu1  ;;  %v11138_v33 = vld [vmem:[#allocation14 + $0xae8] ss:$16 sps:$4 sm:$0xff]   ;;  %v11161_v10 = vld [vmem:[#allocation14 + $0x96c] ss:$16 sps:$4 sm:$0xff]  }
 0x339   :  { %v12741_v50 = vadd.f32 %v5623_v19, %v5583_v46  ;;  %5928 = vmatpush1.bf16.msra.mxu1 %v11126_v5  ;;  %v5587_v34 = vpop.f32.mrb[43].mxu0  ;;  %5888 = vmatprep.subr.bf16.mxu0 %v11131_v13  ;;  %v5628_v8 = vpop.f32.mrb[43].mxu1  ;;  %v11164_v5 = vld [vmem:[#allocation14 + $0xb6c] ss:$16 sps:$4 sm:$0xff]   ;;  %v11159_v13 = vld [vmem:[#allocation14 + $0x968] ss:$16 sps:$4 sm:$0xff]  }
 0x33a   :  { %v12743_v36 = vadd.f32 %v5625_v49, %v5585_v2  ;;  %5929 = vmatprep.subr.bf16.mxu1 %v11134_v27  ;;  %v11167_v27 = vld [vmem:[#allocation14 + $0x98c] ss:$16 sps:$4 sm:$0xff]   ;;  %v11165_v19 = vld [vmem:[#allocation14 + $0x988] ss:$16 sps:$4 sm:$0xff]  }
 0x33b   :  { %v11170_v46 = vld [vmem:[#allocation14 + $0xb8c] ss:$16 sps:$4 sm:$0xff]   ;;  %v11168_v11 = vld [vmem:[#allocation14 + $0xb88] ss:$16 sps:$4 sm:$0xff]  }
 0x33c   :  { %5889 = vmatpush1.bf16.msra.mxu0 %v11129_v43  ;;  %v11173_v2 = vld [vmem:[#allocation14 + $0x9ac] ss:$16 sps:$4 sm:$0xff]   ;;  %v11171_v18 = vld [vmem:[#allocation14 + $0x9a8] ss:$16 sps:$4 sm:$0xff]  }
 0x33d   :  { %5930 = vmatpush1.bf16.msra.mxu1 %v11132_v58  ;;  %5890 = vmatprep.subr.bf16.mxu0 %v11137_v3  ;;  %v11176_v49 = vld [vmem:[#allocation14 + $0xbac] ss:$16 sps:$4 sm:$0xff]   ;;  %v11174_v43 = vld [vmem:[#allocation14 + $0xba8] ss:$16 sps:$4 sm:$0xff]  }
 0x33e   :  { %5931 = vmatprep.subr.bf16.mxu1 %v11140_v6  ;;  %v11179_v47 = vld [vmem:[#allocation14 + $0x9cc] ss:$16 sps:$4 sm:$0xff]   ;;  %v11177_v58 = vld [vmem:[#allocation14 + $0x9c8] ss:$16 sps:$4 sm:$0xff]  }
 0x33f   :  { %v11182_v34 = vld [vmem:[#allocation14 + $0xbcc] ss:$16 sps:$4 sm:$0xff]   ;;  %v11180_v3 = vld [vmem:[#allocation14 + $0xbc8] ss:$16 sps:$4 sm:$0xff]  }
 0x340   :  { %5891 = vmatpush1.bf16.msra.mxu0 %v11135_v26  ;;  %v11185_v8 = vld [vmem:[#allocation14 + $0x9ec] ss:$16 sps:$4 sm:$0xff]   ;;  %v11183_v26 = vld [vmem:[#allocation14 + $0x9e8] ss:$16 sps:$4 sm:$0xff]  }
 0x341   :  { %5932 = vmatpush1.bf16.msra.mxu1 %v11138_v33  ;;  %5892 = vmatprep.subr.bf16.mxu0 %v11143_v37  ;;  %v11188_v6 = vld [vmem:[#allocation14 + $0xbec] ss:$16 sps:$4 sm:$0xff]   ;;  %v11186_v33 = vld [vmem:[#allocation14 + $0xbe8] ss:$16 sps:$4 sm:$0xff]  }
 0x342   :  { %5933 = vmatprep.subr.bf16.mxu1 %v11146_v12  ;;  %v11191_v37 = vld [vmem:[#allocation14 + $0xc0c] ss:$16 sps:$4 sm:$0xff]  }
 0x343   :  { %v11194_v12 = vld [vmem:[#allocation14 + $0xe0c] ss:$16 sps:$4 sm:$0xff]  }
 0x344   :  { %5893 = vmatpush1.bf16.msra.mxu0 %v11141_v42  ;;  %v11189_v42 = vld [vmem:[#allocation14 + $0xc08] ss:$16 sps:$4 sm:$0xff]  }
 0x345   :  { %5934 = vmatpush1.bf16.msra.mxu1 %v11144_v20  ;;  %5894 = vmatprep.subr.bf16.mxu0 %v11149_v45  ;;  %v11192_v20 = vld [vmem:[#allocation14 + $0xe08] ss:$16 sps:$4 sm:$0xff]   ;;  %v11197_v45 = vld [vmem:[#allocation14 + $0xc2c] ss:$16 sps:$4 sm:$0xff]  }
 0x346   :  { %5935 = vmatprep.subr.bf16.mxu1 %v11152_v32  ;;  %v11200_v32 = vld [vmem:[#allocation14 + $0xe2c] ss:$16 sps:$4 sm:$0xff]  }
 0x348   :  { %5895 = vmatpush1.bf16.msra.mxu0 %v11147_v51  ;;  %v11195_v51 = vld [vmem:[#allocation14 + $0xc28] ss:$16 sps:$4 sm:$0xff]  }
 0x349   :  { %5936 = vmatpush1.bf16.msra.mxu1 %v11150_v54  ;;  %5896 = vmatprep.subr.bf16.mxu0 %v11155_v35  ;;  %v11198_v54 = vld [vmem:[#allocation14 + $0xe28] ss:$16 sps:$4 sm:$0xff]   ;;  %v11203_v35 = vld [vmem:[#allocation14 + $0xc4c] ss:$16 sps:$4 sm:$0xff]  }
 0x34a   :  { %5937 = vmatprep.subr.bf16.mxu1 %v11158_v57  ;;  %v11206_v57 = vld [vmem:[#allocation14 + $0xe4c] ss:$16 sps:$4 sm:$0xff]  }
 0x34c   :  { %5897 = vmatpush1.bf16.msra.mxu0 %v11153_v7  ;;  %v11201_v7 = vld [vmem:[#allocation14 + $0xc48] ss:$16 sps:$4 sm:$0xff]  }
 0x34d   :  { %5938 = vmatpush1.bf16.msra.mxu1 %v11156_v9  ;;  %5898 = vmatprep.subr.bf16.mxu0 %v11161_v10  ;;  %v11209_v9 = vld [vmem:[#allocation14 + $0xc6c] ss:$16 sps:$4 sm:$0xff]   ;;  %v11207_v10 = vld [vmem:[#allocation14 + $0xc68] ss:$16 sps:$4 sm:$0xff]  }
 0x34e   :  { %5939 = vmatprep.subr.bf16.mxu1 %v11164_v5  ;;  %v11215_v5 = vld [vmem:[#allocation14 + $0xc8c] ss:$16 sps:$4 sm:$0xff]  }
 0x350   :  { %5899 = vmatpush1.bf16.msra.mxu0 %v11159_v13  ;;  %v11218_v13 = vld [vmem:[#allocation14 + $0xe8c] ss:$16 sps:$4 sm:$0xff]  }
 0x351   :  { %5940 = vmatpush1.bf16.msra.mxu1 %v11162_v59  ;;  %5900 = vmatprep.subr.bf16.mxu0 %v11167_v27  ;;  %v11216_v59 = vld [vmem:[#allocation14 + $0xe88] ss:$16 sps:$4 sm:$0xff]   ;;  %v11221_v27 = vld [vmem:[#allocation14 + $0xcac] ss:$16 sps:$4 sm:$0xff]  }
 0x352   :  { %5941 = vmatprep.subr.bf16.mxu1 %v11170_v46  ;;  %v11224_v46 = vld [vmem:[#allocation14 + $0xeac] ss:$16 sps:$4 sm:$0xff]  }
 0x354   :  { %5901 = vmatpush1.bf16.msra.mxu0 %v11165_v19  ;;  %v11219_v19 = vld [vmem:[#allocation14 + $0xca8] ss:$16 sps:$4 sm:$0xff]  }
 0x355   :  { %5942 = vmatpush1.bf16.msra.mxu1 %v11168_v11  ;;  %5902 = vmatprep.subr.bf16.mxu0 %v11173_v2  ;;  %v11222_v11 = vld [vmem:[#allocation14 + $0xea8] ss:$16 sps:$4 sm:$0xff]   ;;  %v11227_v2 = vld [vmem:[#allocation14 + $0xccc] ss:$16 sps:$4 sm:$0xff]  }
 0x356   :  { %5943 = vmatprep.subr.bf16.mxu1 %v11176_v49 }
 0x358   :  { %5903 = vmatpush1.bf16.msra.mxu0 %v11171_v18  ;;  %v11230_v18 = vld [vmem:[#allocation14 + $0xecc] ss:$16 sps:$4 sm:$0xff]  }
 0x359   :  { %5944 = vmatpush1.bf16.msra.mxu1 %v11174_v43  ;;  %5904 = vmatprep.subr.bf16.mxu0 %v11179_v47 }
 0x35a   :  { %5945 = vmatprep.subr.bf16.mxu1 %v11182_v34 }
 0x35c   :  { %5905 = vmatpush1.bf16.msra.mxu0 %v11177_v58 }
 0x35d   :  { %5946 = vmatpush1.bf16.msra.mxu1 %v11180_v3  ;;  %5906 = vmatprep.subr.bf16.mxu0 %v11185_v8 }
 0x35e   :  { %5947 = vmatprep.subr.bf16.mxu1 %v11188_v6  ;;  %v11225_v6 = vld [vmem:[#allocation14 + $0xcc8] ss:$16 sps:$4 sm:$0xff]  }
 0x360   :  { %5907 = vmatpush1.bf16.msra.mxu0 %v11183_v26 }
 0x361   :  { %5948 = vmatpush1.bf16.msra.mxu1 %v11186_v33  ;;  %5958 = vmatprep.subr.bf16.mxu0 %v11191_v37 }
 0x362   :  { %5999 = vmatprep.subr.bf16.mxu1 %v11194_v12  ;;  %v11228_v12 = vld [vmem:[#allocation14 + $0xec8] ss:$16 sps:$4 sm:$0xff]  }
 0x363   :  { %5909 = vmatmul.mubr.bf16.vlgmr.msra.gmra.mrb[56].mxu0 %v12693_v17  ;;  %v11204_v17 = vld [vmem:[#allocation14 + $0xe48] ss:$16 sps:$4 sm:$0xff]  }
 0x364   :  { %5950 = vmatmul.mubr.bf16.vlgmr.msra.gmra.mrb[56].mxu1 %v12695_v55  ;;  %5959 = vmatpush1.bf16.msra.mxu0 %v11189_v42  ;;  %v11212_v55 = vld [vmem:[#allocation14 + $0xe6c] ss:$16 sps:$4 sm:$0xff]  }
 0x365   :  { %5990 = vmatprep.mubr.bf16.mxu0 %v12699_v44  ;;  %6000 = vmatpush1.bf16.msra.mxu1 %v11192_v20  ;;  %v11210_v44 = vld [vmem:[#allocation14 + $0xe68] ss:$16 sps:$4 sm:$0xff]   ;;  %v11233_v42 = vld [vmem:[#allocation14 + $0xcec] ss:$16 sps:$4 sm:$0xff]  }
 0x366   :  { %6031 = vmatprep.mubr.bf16.mxu1 %v12704_v25  ;;  %5960 = vmatprep.subr.bf16.mxu0 %v11197_v45  ;;  %v11213_v25 = vld [vmem:[#allocation14 + $0xc88] ss:$16 sps:$4 sm:$0xff]  }
 0x367   :  { %6001 = vmatprep.subr.bf16.mxu1 %v11200_v32  ;;  %v11231_v32 = vld [vmem:[#allocation14 + $0xce8] ss:$16 sps:$4 sm:$0xff]  }
 0x368   :  { %5961 = vmatpush1.bf16.msra.mxu0 %v11195_v51  ;;  %v11239_v51 = vld [vmem:[#allocation14 + $0xd0c] ss:$16 sps:$4 sm:$0xff]  }
 0x369   :  { %6002 = vmatpush1.bf16.msra.mxu1 %v11198_v54  ;;  %5962 = vmatprep.subr.bf16.mxu0 %v11203_v35  ;;  %v11242_v54 = vld [vmem:[#allocation14 + $0xf0c] ss:$16 sps:$4 sm:$0xff]   ;;  %v11237_v35 = vld [vmem:[#allocation14 + $0xd08] ss:$16 sps:$4 sm:$0xff]  }
 0x36a   :  { %6003 = vmatprep.subr.bf16.mxu1 %v11206_v57  ;;  %v11240_v57 = vld [vmem:[#allocation14 + $0xf08] ss:$16 sps:$4 sm:$0xff]  }
 0x36c   :  { %5963 = vmatpush1.bf16.msra.mxu0 %v11201_v7  ;;  %v11245_v7 = vld [vmem:[#allocation14 + $0xd2c] ss:$16 sps:$4 sm:$0xff]  }
 0x36d   :  { %6004 = vmatpush1.bf16.msra.mxu1 %v11204_v17  ;;  %5964 = vmatprep.subr.bf16.mxu0 %v11209_v9  ;;  %v11248_v17 = vld [vmem:[#allocation14 + $0xf2c] ss:$16 sps:$4 sm:$0xff]   ;;  %v11243_v9 = vld [vmem:[#allocation14 + $0xd28] ss:$16 sps:$4 sm:$0xff]  }
 0x36e   :  { %6005 = vmatprep.subr.bf16.mxu1 %v11212_v55  ;;  %v11246_v55 = vld [vmem:[#allocation14 + $0xf28] ss:$16 sps:$4 sm:$0xff]  }
 0x370   :  { %5965 = vmatpush1.bf16.msra.mxu0 %v11207_v10  ;;  %v11251_v10 = vld [vmem:[#allocation14 + $0xd4c] ss:$16 sps:$4 sm:$0xff]  }
 0x371   :  { %6006 = vmatpush1.bf16.msra.mxu1 %v11210_v44  ;;  %5966 = vmatprep.subr.bf16.mxu0 %v11215_v5  ;;  %v11254_v44 = vld [vmem:[#allocation14 + $0xf4c] ss:$16 sps:$4 sm:$0xff]   ;;  %v11249_v5 = vld [vmem:[#allocation14 + $0xd48] ss:$16 sps:$4 sm:$0xff]  }
 0x372   :  { %6007 = vmatprep.subr.bf16.mxu1 %v11218_v13  ;;  %v11252_v13 = vld [vmem:[#allocation14 + $0xf48] ss:$16 sps:$4 sm:$0xff]  }
 0x374   :  { %5967 = vmatpush1.bf16.msra.mxu0 %v11213_v25  ;;  %v11257_v25 = vld [vmem:[#allocation14 + $0xd6c] ss:$16 sps:$4 sm:$0xff]  }
 0x375   :  { %6008 = vmatpush1.bf16.msra.mxu1 %v11216_v59  ;;  %5968 = vmatprep.subr.bf16.mxu0 %v11221_v27  ;;  %v11260_v59 = vld [vmem:[#allocation14 + $0xf6c] ss:$16 sps:$4 sm:$0xff]   ;;  %v11255_v27 = vld [vmem:[#allocation14 + $0xd68] ss:$16 sps:$4 sm:$0xff]  }
 0x376   :  { %v5664_v49 = vpop.f32.mrb[44].mxu0  ;;  %6009 = vmatprep.subr.bf16.mxu1 %v11224_v46  ;;  %v5705_v47 = vpop.f32.mrb[44].mxu1  ;;  %v11258_v46 = vld [vmem:[#allocation14 + $0xf68] ss:$16 sps:$4 sm:$0xff]  }
 0x377   :  { %v5665_v43 = vadd.f32 %v5664_v49, %v12741_v50  ;;  %v5666_v34 = vpop.f32.mrb[45].mxu0  ;;  %v5707_v3 = vpop.f32.mrb[45].mxu1  ;;  %v11236_v50 = vld [vmem:[#allocation14 + $0xeec] ss:$16 sps:$4 sm:$0xff]   ;;  %v11264_v49 = vld [vmem:[#allocation14 + $0xf88] ss:$16 sps:$4 sm:$0xff]  }
 0x378   :  { %v5667_v58 = vadd.f32 %v5666_v34, %v12743_v36  ;;  %v5668_v8 = vpop.f32.mrb[46].mxu0  ;;  %5969 = vmatpush1.bf16.msra.mxu0 %v11219_v19  ;;  %v5709_v33 = vpop.f32.mrb[46].mxu1  ;;  %v11234_v36 = vld [vmem:[#allocation14 + $0xee8] ss:$16 sps:$4 sm:$0xff]   ;;  %v11263_v19 = vld [vmem:[#allocation14 + $0xd8c] ss:$16 sps:$4 sm:$0xff]  }
 0x379   :  { %v12751_v26 = vadd.f32 %v5705_v47, %v5665_v43  ;;  %6010 = vmatpush1.bf16.msra.mxu1 %v11222_v11  ;;  %v5669_v37 = vpop.f32.mrb[47].mxu0  ;;  %5970 = vmatprep.subr.bf16.mxu0 %v11227_v2  ;;  %v5710_v45 = vpop.f32.mrb[47].mxu1  ;;  %v11266_v11 = vld [vmem:[#allocation14 + $0xf8c] ss:$16 sps:$4 sm:$0xff]   ;;  %v11261_v2 = vld [vmem:[#allocation14 + $0xd88] ss:$16 sps:$4 sm:$0xff]  }
 0x37a   :  { %v12753_v20 = vadd.f32 %v5707_v3, %v5667_v58  ;;  %6011 = vmatprep.subr.bf16.mxu1 %v11230_v18  ;;  %v11269_v18 = vld [vmem:[#allocation14 + $0xdac] ss:$16 sps:$4 sm:$0xff]   ;;  %v11267_v47 = vld [vmem:[#allocation14 + $0xda8] ss:$16 sps:$4 sm:$0xff]   ;;  %v12755_v8 = vld [vmem:[#allocation8] sm:$0xff] }
 0x37b   :  { %v11272_v43 = vld [vmem:[#allocation14 + $0xfac] ss:$16 sps:$4 sm:$0xff]   ;;  %v11270_v34 = vld [vmem:[#allocation14 + $0xfa8] ss:$16 sps:$4 sm:$0xff]   ;;  %v252_v45 = vrot.slane %v12755_v8, %v12601_v0 }
 0x37c   :  { %5971 = vmatpush1.bf16.msra.mxu0 %v11225_v6  ;;  %v11275_v58 = vld [vmem:[#allocation14 + $0xdcc] ss:$16 sps:$4 sm:$0xff]   ;;  %v11273_v6 = vld [vmem:[#allocation14 + $0xdc8] ss:$16 sps:$4 sm:$0xff]  }
 0x37d   :  { %6012 = vmatpush1.bf16.msra.mxu1 %v11228_v12  ;;  %5972 = vmatprep.subr.bf16.mxu0 %v11233_v42  ;;  %v11278_v3 = vld [vmem:[#allocation14 + $0xfcc] ss:$16 sps:$4 sm:$0xff]   ;;  %v11276_v33 = vld [vmem:[#allocation14 + $0xfc8] ss:$16 sps:$4 sm:$0xff]   ;;  %v244_v42 = vrot.slane %v12755_v8, %v12599_v63 }
 0x37e   :  { %6013 = vmatprep.subr.bf16.mxu1 %v11236_v50  ;;  %v11281_v37 = vld [vmem:[#allocation14 + $0xdec] ss:$16 sps:$4 sm:$0xff]   ;;  %v11279_v50 = vld [vmem:[#allocation14 + $0xde8] ss:$16 sps:$4 sm:$0xff]  }
 0x37f   :  { %v11284_v12 = vld [vmem:[#allocation14 + $0xfec] ss:$16 sps:$4 sm:$0xff]  }
 0x380   :  { %5973 = vmatpush1.bf16.msra.mxu0 %v11231_v32  ;;  %v11282_v32 = vld [vmem:[#allocation14 + $0xfe8] ss:$16 sps:$4 sm:$0xff]  }
 0x381   :  { %6014 = vmatpush1.bf16.msra.mxu1 %v11234_v36  ;;  %5974 = vmatprep.subr.bf16.mxu0 %v11239_v51  ;;  %v11287_v36 = vld [vmem:[#allocation13 + $0x4] ss:$16 sps:$4 sm:$0xff]  }
 0x382   :  { %6015 = vmatprep.subr.bf16.mxu1 %v11242_v54  ;;  %v11290_v51 = vld [vmem:[#allocation13 + $0x204] ss:$16 sps:$4 sm:$0xff]   ;;  %v678_v54 = vadd.f32 %v12553_v16, %v244_v42  ;;  %v11291_v16 = vld [vmem:[#allocation13 + $0x20] ss:$16 sps:$4 sm:$0xff]  }
 0x384   :  { %5975 = vmatpush1.bf16.msra.mxu0 %v11237_v35  ;;  %v719_v35 = vadd.f32 %v12555_v1, %v252_v45  ;;  %v11294_v1 = vld [vmem:[#allocation13 + $0x220] ss:$16 sps:$4 sm:$0xff]  }
 0x385   :  { %6016 = vmatpush1.bf16.msra.mxu1 %v11240_v57  ;;  %5976 = vmatprep.subr.bf16.mxu0 %v11245_v7  ;;  %v11285_v57 = vld [vmem:[#allocation13] ss:$16 sps:$4 sm:$0xff]  }
 0x386   :  { %6017 = vmatprep.subr.bf16.mxu1 %v11248_v17  ;;  %v11288_v7 = vld [vmem:[#allocation13 + $0x200] ss:$16 sps:$4 sm:$0xff]   ;;  %v11293_v17 = vld [vmem:[#allocation13 + $0x24] ss:$16 sps:$4 sm:$0xff]  }
 0x387   :  { %v11321_v45 = vld [vmem:[#allocation13 + $0xc0] ss:$16 sps:$4 sm:$0xff]  }
 0x388   :  { %5977 = vmatpush1.bf16.msra.mxu0 %v11243_v9  ;;  %v12763_v9 = vpack.c.bf16 %v678_v54, %v678_v54  ;;  %v11329_v54 = vld [vmem:[#allocation13 + $0xe4] ss:$16 sps:$4 sm:$0xff]  }
 0x389   :  { %6018 = vmatpush1.bf16.msra.mxu1 %v11246_v55  ;;  %5978 = vmatprep.subr.bf16.mxu0 %v11251_v10  ;;  %v11296_v55 = vld [vmem:[#allocation13 + $0x224] ss:$16 sps:$4 sm:$0xff]   ;;  %v12766_v10 = vpack.c.bf16 %v719_v35, %v719_v35 }
 0x38a   :  { %6019 = vmatprep.subr.bf16.mxu1 %v11254_v44  ;;  %v11299_v44 = vld [vmem:[#allocation13 + $0x44] ss:$16 sps:$4 sm:$0xff]  }
 0x38c   :  { %5979 = vmatpush1.bf16.msra.mxu0 %v11249_v5  ;;  %v11302_v5 = vld [vmem:[#allocation13 + $0x244] ss:$16 sps:$4 sm:$0xff]  }
 0x38d   :  { %6020 = vmatpush1.bf16.msra.mxu1 %v11252_v13  ;;  %5980 = vmatprep.subr.bf16.mxu0 %v11257_v25  ;;  %v11297_v13 = vld [vmem:[#allocation13 + $0x40] ss:$16 sps:$4 sm:$0xff]   ;;  %v11305_v25 = vld [vmem:[#allocation13 + $0x64] ss:$16 sps:$4 sm:$0xff]  }
 0x38e   :  { %6021 = vmatprep.subr.bf16.mxu1 %v11260_v59  ;;  %v11303_v59 = vld [vmem:[#allocation13 + $0x60] ss:$16 sps:$4 sm:$0xff]  }
 0x390   :  { %5981 = vmatpush1.bf16.msra.mxu0 %v11255_v27  ;;  %v11306_v27 = vld [vmem:[#allocation13 + $0x260] ss:$16 sps:$4 sm:$0xff]  }
 0x391   :  { %6022 = vmatpush1.bf16.msra.mxu1 %v11258_v46  ;;  %5982 = vmatprep.subr.bf16.mxu0 %v11263_v19  ;;  %v11311_v46 = vld [vmem:[#allocation13 + $0x84] ss:$16 sps:$4 sm:$0xff]  }
 0x392   :  { %6023 = vmatprep.subr.bf16.mxu1 %v11266_v11  ;;  %v11314_v19 = vld [vmem:[#allocation13 + $0x284] ss:$16 sps:$4 sm:$0xff]   ;;  %v11309_v11 = vld [vmem:[#allocation13 + $0x80] ss:$16 sps:$4 sm:$0xff]  }
 0x394   :  { %5983 = vmatpush1.bf16.msra.mxu0 %v11261_v2  ;;  %v11312_v2 = vld [vmem:[#allocation13 + $0x280] ss:$16 sps:$4 sm:$0xff]  }
 0x395   :  { %6024 = vmatpush1.bf16.msra.mxu1 %v11264_v49  ;;  %5984 = vmatprep.subr.bf16.mxu0 %v11269_v18  ;;  %v11317_v49 = vld [vmem:[#allocation13 + $0xa4] ss:$16 sps:$4 sm:$0xff]  }
 0x396   :  { %6025 = vmatprep.subr.bf16.mxu1 %v11272_v43  ;;  %v11320_v18 = vld [vmem:[#allocation13 + $0x2a4] ss:$16 sps:$4 sm:$0xff]   ;;  %v11315_v43 = vld [vmem:[#allocation13 + $0xa0] ss:$16 sps:$4 sm:$0xff]  }
 0x398   :  { %5985 = vmatpush1.bf16.msra.mxu0 %v11267_v47  ;;  %v11318_v47 = vld [vmem:[#allocation13 + $0x2a0] ss:$16 sps:$4 sm:$0xff]  }
 0x399   :  { %6026 = vmatpush1.bf16.msra.mxu1 %v11270_v34  ;;  %5986 = vmatprep.subr.bf16.mxu0 %v11275_v58  ;;  %v11323_v34 = vld [vmem:[#allocation13 + $0xc4] ss:$16 sps:$4 sm:$0xff]  }
 0x39a   :  { %6027 = vmatprep.subr.bf16.mxu1 %v11278_v3  ;;  %v11326_v3 = vld [vmem:[#allocation13 + $0x2c4] ss:$16 sps:$4 sm:$0xff]  }
 0x39c   :  { %5987 = vmatpush1.bf16.msra.mxu0 %v11273_v6 }
 0x39d   :  { %6028 = vmatpush1.bf16.msra.mxu1 %v11276_v33  ;;  %5988 = vmatprep.subr.bf16.mxu0 %v11281_v37 }
 0x39e   :  { %6029 = vmatprep.subr.bf16.mxu1 %v11284_v12 }
 0x3a0   :  { %5989 = vmatpush1.bf16.msra.mxu0 %v11279_v50 }
 0x3a1   :  { %6030 = vmatpush1.bf16.msra.mxu1 %v11282_v32  ;;  %8600 = vmatprep.subr.bf16.mxu0 %v11287_v36 }
 0x3a2   :  { %8641 = vmatprep.subr.bf16.mxu1 %v11290_v51  ;;  %v11324_v51 = vld [vmem:[#allocation13 + $0x2c0] ss:$16 sps:$4 sm:$0xff]  }
 0x3a3   :  { %5991 = vmatmul.mubr.bf16.vlgmr.msra.gmra.mrb[60].mxu0 %v12711_v4  ;;  %v11300_v4 = vld [vmem:[#allocation13 + $0x240] ss:$16 sps:$4 sm:$0xff]  }
 0x3a4   :  { %6032 = vmatmul.mubr.bf16.vlgmr.msra.gmra.mrb[60].mxu1 %v12715_v60  ;;  %8601 = vmatpush1.bf16.msra.mxu0 %v11285_v57  ;;  %v11308_v60 = vld [vmem:[#allocation13 + $0x264] ss:$16 sps:$4 sm:$0xff]  }
 0x3a5   :  { %8632 = vmatprep.mubr.bf16.mxu0 %v12763_v9  ;;  %8642 = vmatpush1.bf16.msra.mxu1 %v11288_v7  ;;  %v11332_v57 = vld [vmem:[#allocation13 + $0x2e4] ss:$16 sps:$4 sm:$0xff]   ;;  %v11327_v7 = vld [vmem:[#allocation13 + $0xe0] ss:$16 sps:$4 sm:$0xff]  }
 0x3a6   :  { %8673 = vmatprep.mubr.bf16.mxu1 %v12766_v10  ;;  %8602 = vmatprep.subr.bf16.mxu0 %v11293_v17  ;;  %v11330_v17 = vld [vmem:[#allocation13 + $0x2e0] ss:$16 sps:$4 sm:$0xff]  }
 0x3a7   :  { %8643 = vmatprep.subr.bf16.mxu1 %v11296_v55  ;;  %v11335_v55 = vld [vmem:[#allocation13 + $0x104] ss:$16 sps:$4 sm:$0xff]  }
 0x3a8   :  { %8603 = vmatpush1.bf16.msra.mxu0 %v11291_v16  ;;  %v11338_v16 = vld [vmem:[#allocation13 + $0x304] ss:$16 sps:$4 sm:$0xff]  }
 0x3a9   :  { %8644 = vmatpush1.bf16.msra.mxu1 %v11294_v1  ;;  %8604 = vmatprep.subr.bf16.mxu0 %v11299_v44  ;;  %v11333_v1 = vld [vmem:[#allocation13 + $0x100] ss:$16 sps:$4 sm:$0xff]  }
 0x3aa   :  { %8645 = vmatprep.subr.bf16.mxu1 %v11302_v5  ;;  %v11336_v44 = vld [vmem:[#allocation13 + $0x300] ss:$16 sps:$4 sm:$0xff]   ;;  %v11341_v5 = vld [vmem:[#allocation13 + $0x124] ss:$16 sps:$4 sm:$0xff]  }
 0x3ac   :  { %8605 = vmatpush1.bf16.msra.mxu0 %v11297_v13  ;;  %v11344_v13 = vld [vmem:[#allocation13 + $0x324] ss:$16 sps:$4 sm:$0xff]  }
 0x3ad   :  { %8646 = vmatpush1.bf16.msra.mxu1 %v11300_v4  ;;  %8606 = vmatprep.subr.bf16.mxu0 %v11305_v25  ;;  %v11339_v4 = vld [vmem:[#allocation13 + $0x120] ss:$16 sps:$4 sm:$0xff]  }
 0x3ae   :  { %8647 = vmatprep.subr.bf16.mxu1 %v11308_v60  ;;  %v11342_v25 = vld [vmem:[#allocation13 + $0x320] ss:$16 sps:$4 sm:$0xff]   ;;  %v11347_v60 = vld [vmem:[#allocation13 + $0x144] ss:$16 sps:$4 sm:$0xff]  }
 0x3b0   :  { %8607 = vmatpush1.bf16.msra.mxu0 %v11303_v59  ;;  %v11350_v59 = vld [vmem:[#allocation13 + $0x344] ss:$16 sps:$4 sm:$0xff]  }
 0x3b1   :  { %8648 = vmatpush1.bf16.msra.mxu1 %v11306_v27  ;;  %8608 = vmatprep.subr.bf16.mxu0 %v11311_v46  ;;  %v11345_v27 = vld [vmem:[#allocation13 + $0x140] ss:$16 sps:$4 sm:$0xff]  }
 0x3b2   :  { %8649 = vmatprep.subr.bf16.mxu1 %v11314_v19  ;;  %v11348_v46 = vld [vmem:[#allocation13 + $0x340] ss:$16 sps:$4 sm:$0xff]   ;;  %v11353_v19 = vld [vmem:[#allocation13 + $0x164] ss:$16 sps:$4 sm:$0xff]  }
 0x3b4   :  { %8609 = vmatpush1.bf16.msra.mxu0 %v11309_v11  ;;  %v11356_v11 = vld [vmem:[#allocation13 + $0x364] ss:$16 sps:$4 sm:$0xff]  }
 0x3b5   :  { %8650 = vmatpush1.bf16.msra.mxu1 %v11312_v2  ;;  %8610 = vmatprep.subr.bf16.mxu0 %v11317_v49  ;;  %v11351_v2 = vld [vmem:[#allocation13 + $0x160] ss:$16 sps:$4 sm:$0xff]  }
 0x3b6   :  { %v5746_v58 = vpop.f32.mrb[48].mxu0  ;;  %8651 = vmatprep.subr.bf16.mxu1 %v11320_v18  ;;  %v11354_v49 = vld [vmem:[#allocation13 + $0x360] ss:$16 sps:$4 sm:$0xff]   ;;  %v11359_v18 = vld [vmem:[#allocation13 + $0x184] ss:$16 sps:$4 sm:$0xff]  }
 0x3b7   :  { %v5787_v6 = vpop.f32.mrb[48].mxu1  ;;  %v5748_v33 = vpop.f32.mrb[49].mxu0 }
 0x3b8   :  { %v12771_v37 = vadd.f32 %v5787_v6, %v5746_v58  ;;  %v5789_v12 = vpop.f32.mrb[49].mxu1  ;;  %v5750_v42 = vpop.f32.mrb[50].mxu0  ;;  %8611 = vmatpush1.bf16.msra.mxu0 %v11315_v43  ;;  %v11362_v43 = vld [vmem:[#allocation13 + $0x384] ss:$16 sps:$4 sm:$0xff]   ;;  %v11363_v6 = vld [vmem:[#allocation13 + $0x1a0] ss:$16 sps:$4 sm:$0xff]  }
 0x3b9   :  { %v12773_v50 = vadd.f32 %v5789_v12, %v5748_v33  ;;  %v5791_v32 = vpop.f32.mrb[50].mxu1  ;;  %8652 = vmatpush1.bf16.msra.mxu1 %v11318_v47  ;;  %v5751_v36 = vpop.f32.mrb[51].mxu0  ;;  %8612 = vmatprep.subr.bf16.mxu0 %v11323_v34  ;;  %v11357_v47 = vld [vmem:[#allocation13 + $0x180] ss:$16 sps:$4 sm:$0xff]   ;;  %v11365_v58 = vld [vmem:[#allocation13 + $0x1a4] ss:$16 sps:$4 sm:$0xff]  }
 0x3ba   :  { %v5792_v35 = vpop.f32.mrb[51].mxu1  ;;  %8653 = vmatprep.subr.bf16.mxu1 %v11326_v3  ;;  %v11360_v34 = vld [vmem:[#allocation13 + $0x380] ss:$16 sps:$4 sm:$0xff]   ;;  %v11368_v3 = vld [vmem:[#allocation13 + $0x3a4] ss:$16 sps:$4 sm:$0xff]   ;;  %v240_v32 = vrot.slane %v12755_v8, %v12595_v61 }
 0x3bb   :  { %v11366_v33 = vld [vmem:[#allocation13 + $0x3a0] ss:$16 sps:$4 sm:$0xff]   ;;  %v11371_v12 = vld [vmem:[#allocation13 + $0x1c4] ss:$16 sps:$4 sm:$0xff]  }
 0x3bc   :  { %8613 = vmatpush1.bf16.msra.mxu0 %v11321_v45  ;;  %v11374_v42 = vld [vmem:[#allocation13 + $0x3c4] ss:$16 sps:$4 sm:$0xff]   ;;  %v11369_v45 = vld [vmem:[#allocation13 + $0x1c0] ss:$16 sps:$4 sm:$0xff]  }
 0x3bd   :  { %8654 = vmatpush1.bf16.msra.mxu1 %v11324_v51  ;;  %8614 = vmatprep.subr.bf16.mxu0 %v11329_v54  ;;  %v11372_v36 = vld [vmem:[#allocation13 + $0x3c0] ss:$16 sps:$4 sm:$0xff]   ;;  %v11377_v51 = vld [vmem:[#allocation13 + $0x1e4] ss:$16 sps:$4 sm:$0xff]   ;;  %v248_v54 = vrot.slane %v12755_v8, %v12597_v62 }
 0x3be   :  { %8655 = vmatprep.subr.bf16.mxu1 %v11332_v57  ;;  %v11380_v35 = vld [vmem:[#allocation13 + $0x3e4] ss:$16 sps:$4 sm:$0xff]   ;;  %v260_v57 = vrot.slane %v12755_v8, %v12577_v40  ;;  %v11381_v40 = vld [vmem:[#allocation13 + $0x400] ss:$16 sps:$4 sm:$0xff]  }
 0x3c0   :  { %8615 = vmatpush1.bf16.msra.mxu0 %v11327_v7  ;;  %v268_v7 = vrot.slane %v12755_v8, %v12579_v41  ;;  %v11384_v41 = vld [vmem:[#allocation13 + $0x600] ss:$16 sps:$4 sm:$0xff]  }
 0x3c1   :  { %8656 = vmatpush1.bf16.msra.mxu1 %v11330_v17  ;;  %8616 = vmatprep.subr.bf16.mxu0 %v11335_v55  ;;  %v11375_v17 = vld [vmem:[#allocation13 + $0x1e0] ss:$16 sps:$4 sm:$0xff]   ;;  %v676_v55 = vadd.f32 %v12549_v14, %v240_v32  ;;  %v11419_v32 = vld [vmem:[#allocation13 + $0x4c4] ss:$16 sps:$4 sm:$0xff]  }
 0x3c2   :  { %8657 = vmatprep.subr.bf16.mxu1 %v11338_v16  ;;  %v11378_v16 = vld [vmem:[#allocation13 + $0x3e0] ss:$16 sps:$4 sm:$0xff]  }
 0x3c4   :  { %8617 = vmatpush1.bf16.msra.mxu0 %v11333_v1  ;;  %v11383_v1 = vld [vmem:[#allocation13 + $0x404] ss:$16 sps:$4 sm:$0xff]  }
 0x3c5   :  { %8658 = vmatpush1.bf16.msra.mxu1 %v11336_v44  ;;  %8618 = vmatprep.subr.bf16.mxu0 %v11341_v5  ;;  %v717_v44 = vadd.f32 %v12551_v15, %v248_v54  ;;  %v11386_v5 = vld [vmem:[#allocation13 + $0x604] ss:$16 sps:$4 sm:$0xff]  }
 0x3c6   :  { %8659 = vmatprep.subr.bf16.mxu1 %v11344_v13  ;;  %v760_v13 = vadd.f32 %v12561_v23, %v260_v57  ;;  %v11392_v15 = vld [vmem:[#allocation13 + $0x624] ss:$16 sps:$4 sm:$0xff]   ;;  %v11387_v23 = vld [vmem:[#allocation13 + $0x420] ss:$16 sps:$4 sm:$0xff]  }
 0x3c7   :  { %v12789_v14 = vpack.c.bf16 %v717_v44, %v717_v44 }
 0x3c8   :  { %8619 = vmatpush1.bf16.msra.mxu0 %v11339_v4  ;;  %v801_v4 = vadd.f32 %v12563_v24, %v268_v7  ;;  %v11390_v24 = vld [vmem:[#allocation13 + $0x620] ss:$16 sps:$4 sm:$0xff]  }
 0x3c9   :  { %8660 = vmatpush1.bf16.msra.mxu1 %v11342_v25  ;;  %8620 = vmatprep.subr.bf16.mxu0 %v11347_v60  ;;  %v12787_v25 = vpack.c.bf16 %v676_v55, %v676_v55  ;;  %v11389_v60 = vld [vmem:[#allocation13 + $0x424] ss:$16 sps:$4 sm:$0xff]  }
 0x3ca   :  { %8661 = vmatprep.subr.bf16.mxu1 %v11350_v59  ;;  %v12791_v59 = vpack.c.bf16 %v760_v13, %v760_v13  ;;  %v11420_v13 = vld [vmem:[#allocation13 + $0x6c0] ss:$16 sps:$4 sm:$0xff]  }
 0x3cc   :  { %8621 = vmatpush1.bf16.msra.mxu0 %v11345_v27  ;;  %v12794_v27 = vpack.c.bf16 %v801_v4, %v801_v4  ;;  %v11425_v4 = vld [vmem:[#allocation13 + $0x4e4] ss:$16 sps:$4 sm:$0xff]  }
 0x3cd   :  { %8662 = vmatpush1.bf16.msra.mxu1 %v11348_v46  ;;  %8622 = vmatprep.subr.bf16.mxu0 %v11353_v19  ;;  %v11395_v46 = vld [vmem:[#allocation13 + $0x444] ss:$16 sps:$4 sm:$0xff]  }
 0x3ce   :  { %8663 = vmatprep.subr.bf16.mxu1 %v11356_v11  ;;  %v11398_v19 = vld [vmem:[#allocation13 + $0x644] ss:$16 sps:$4 sm:$0xff]   ;;  %v11393_v11 = vld [vmem:[#allocation13 + $0x440] ss:$16 sps:$4 sm:$0xff]  }
 0x3d0   :  { %8623 = vmatpush1.bf16.msra.mxu0 %v11351_v2  ;;  %v11396_v2 = vld [vmem:[#allocation13 + $0x640] ss:$16 sps:$4 sm:$0xff]  }
 0x3d1   :  { %8664 = vmatpush1.bf16.msra.mxu1 %v11354_v49  ;;  %8624 = vmatprep.subr.bf16.mxu0 %v11359_v18  ;;  %v11401_v49 = vld [vmem:[#allocation13 + $0x464] ss:$16 sps:$4 sm:$0xff]  }
 0x3d2   :  { %8665 = vmatprep.subr.bf16.mxu1 %v11362_v43  ;;  %v11404_v18 = vld [vmem:[#allocation13 + $0x664] ss:$16 sps:$4 sm:$0xff]   ;;  %v11399_v43 = vld [vmem:[#allocation13 + $0x460] ss:$16 sps:$4 sm:$0xff]  }
 0x3d4   :  { %8625 = vmatpush1.bf16.msra.mxu0 %v11357_v47  ;;  %v11402_v47 = vld [vmem:[#allocation13 + $0x660] ss:$16 sps:$4 sm:$0xff]  }
 0x3d5   :  { %8666 = vmatpush1.bf16.msra.mxu1 %v11360_v34  ;;  %8626 = vmatprep.subr.bf16.mxu0 %v11365_v58  ;;  %v11407_v34 = vld [vmem:[#allocation13 + $0x484] ss:$16 sps:$4 sm:$0xff]  }
 0x3d6   :  { %8667 = vmatprep.subr.bf16.mxu1 %v11368_v3  ;;  %v11410_v58 = vld [vmem:[#allocation13 + $0x684] ss:$16 sps:$4 sm:$0xff]   ;;  %v11405_v3 = vld [vmem:[#allocation13 + $0x480] ss:$16 sps:$4 sm:$0xff]  }
 0x3d8   :  { %8627 = vmatpush1.bf16.msra.mxu0 %v11363_v6  ;;  %v11408_v6 = vld [vmem:[#allocation13 + $0x680] ss:$16 sps:$4 sm:$0xff]  }
 0x3d9   :  { %8668 = vmatpush1.bf16.msra.mxu1 %v11366_v33  ;;  %8628 = vmatprep.subr.bf16.mxu0 %v11371_v12  ;;  %v11413_v33 = vld [vmem:[#allocation13 + $0x4a4] ss:$16 sps:$4 sm:$0xff]  }
 0x3da   :  { %8669 = vmatprep.subr.bf16.mxu1 %v11374_v42  ;;  %v11416_v12 = vld [vmem:[#allocation13 + $0x6a4] ss:$16 sps:$4 sm:$0xff]   ;;  %v11411_v42 = vld [vmem:[#allocation13 + $0x4a0] ss:$16 sps:$4 sm:$0xff]  }
 0x3dc   :  { %8629 = vmatpush1.bf16.msra.mxu0 %v11369_v45  ;;  %v11414_v45 = vld [vmem:[#allocation13 + $0x6a0] ss:$16 sps:$4 sm:$0xff]  }
 0x3dd   :  { %8670 = vmatpush1.bf16.msra.mxu1 %v11372_v36  ;;  %8630 = vmatprep.subr.bf16.mxu0 %v11377_v51  ;;  %v11422_v51 = vld [vmem:[#allocation13 + $0x6c4] ss:$16 sps:$4 sm:$0xff]  }
 0x3de   :  { %8671 = vmatprep.subr.bf16.mxu1 %v11380_v35 }
 0x3e0   :  { %8631 = vmatpush1.bf16.msra.mxu0 %v11375_v17 }
 0x3e1   :  { %8672 = vmatpush1.bf16.msra.mxu1 %v11378_v16  ;;  %8682 = vmatprep.subr.bf16.mxu0 %v11383_v1  ;;  %v11417_v16 = vld [vmem:[#allocation13 + $0x4c0] ss:$16 sps:$4 sm:$0xff]  }
 0x3e2   :  { %8723 = vmatprep.subr.bf16.mxu1 %v11386_v5 }
 0x3e3   :  { %8633 = vmatmul.mubr.bf16.vlgmr.msra.gmra.mrb[64].mxu0 %v12787_v25 }
 0x3e4   :  { %8674 = vmatmul.mubr.bf16.vlgmr.msra.gmra.mrb[64].mxu1 %v12789_v14  ;;  %8683 = vmatpush1.bf16.msra.mxu0 %v11381_v40 }
 0x3e5   :  { %8714 = vmatprep.mubr.bf16.mxu0 %v12791_v59  ;;  %8724 = vmatpush1.bf16.msra.mxu1 %v11384_v41 }
 0x3e6   :  { %8755 = vmatprep.mubr.bf16.mxu1 %v12794_v27  ;;  %8684 = vmatprep.subr.bf16.mxu0 %v11389_v60  ;;  %v11423_v60 = vld [vmem:[#allocation13 + $0x4e0] ss:$16 sps:$4 sm:$0xff]  }
 0x3e7   :  { %8725 = vmatprep.subr.bf16.mxu1 %v11392_v15  ;;  %v11431_v15 = vld [vmem:[#allocation13 + $0x504] ss:$16 sps:$4 sm:$0xff]  }
 0x3e8   :  { %8685 = vmatpush1.bf16.msra.mxu0 %v11387_v23  ;;  %v11434_v23 = vld [vmem:[#allocation13 + $0x704] ss:$16 sps:$4 sm:$0xff]  }
 0x3e9   :  { %8726 = vmatpush1.bf16.msra.mxu1 %v11390_v24  ;;  %8686 = vmatprep.subr.bf16.mxu0 %v11395_v46  ;;  %v11429_v24 = vld [vmem:[#allocation13 + $0x500] ss:$16 sps:$4 sm:$0xff]  }
 0x3ea   :  { %8727 = vmatprep.subr.bf16.mxu1 %v11398_v19  ;;  %v11432_v46 = vld [vmem:[#allocation13 + $0x700] ss:$16 sps:$4 sm:$0xff]   ;;  %v11437_v19 = vld [vmem:[#allocation13 + $0x524] ss:$16 sps:$4 sm:$0xff]  }
 0x3ec   :  { %8687 = vmatpush1.bf16.msra.mxu0 %v11393_v11  ;;  %v11440_v11 = vld [vmem:[#allocation13 + $0x724] ss:$16 sps:$4 sm:$0xff]  }
 0x3ed   :  { %8728 = vmatpush1.bf16.msra.mxu1 %v11396_v2  ;;  %8688 = vmatprep.subr.bf16.mxu0 %v11401_v49  ;;  %v11435_v2 = vld [vmem:[#allocation13 + $0x520] ss:$16 sps:$4 sm:$0xff]  }
 0x3ee   :  { %8729 = vmatprep.subr.bf16.mxu1 %v11404_v18  ;;  %v11438_v49 = vld [vmem:[#allocation13 + $0x720] ss:$16 sps:$4 sm:$0xff]   ;;  %v11443_v18 = vld [vmem:[#allocation13 + $0x544] ss:$16 sps:$4 sm:$0xff]  }
 0x3f0   :  { %8689 = vmatpush1.bf16.msra.mxu0 %v11399_v43  ;;  %v11446_v43 = vld [vmem:[#allocation13 + $0x744] ss:$16 sps:$4 sm:$0xff]  }
 0x3f1   :  { %8730 = vmatpush1.bf16.msra.mxu1 %v11402_v47  ;;  %8690 = vmatprep.subr.bf16.mxu0 %v11407_v34  ;;  %v11441_v47 = vld [vmem:[#allocation13 + $0x540] ss:$16 sps:$4 sm:$0xff]  }
 0x3f2   :  { %8731 = vmatprep.subr.bf16.mxu1 %v11410_v58  ;;  %v11444_v34 = vld [vmem:[#allocation13 + $0x740] ss:$16 sps:$4 sm:$0xff]   ;;  %v11449_v58 = vld [vmem:[#allocation13 + $0x564] ss:$16 sps:$4 sm:$0xff]  }
 0x3f4   :  { %8691 = vmatpush1.bf16.msra.mxu0 %v11405_v3  ;;  %v11452_v3 = vld [vmem:[#allocation13 + $0x764] ss:$16 sps:$4 sm:$0xff]  }
 0x3f5   :  { %8732 = vmatpush1.bf16.msra.mxu1 %v11408_v6  ;;  %8692 = vmatprep.subr.bf16.mxu0 %v11413_v33  ;;  %v11447_v6 = vld [vmem:[#allocation13 + $0x560] ss:$16 sps:$4 sm:$0xff]  }
 0x3f6   :  { %v5828_v36 = vpop.f32.mrb[52].mxu0  ;;  %8733 = vmatprep.subr.bf16.mxu1 %v11416_v12  ;;  %v11450_v33 = vld [vmem:[#allocation13 + $0x760] ss:$16 sps:$4 sm:$0xff]   ;;  %v11455_v12 = vld [vmem:[#allocation13 + $0x584] ss:$16 sps:$4 sm:$0xff]  }
 0x3f7   :  { %v5829_v54 = vadd.f32 %v5828_v36, %v12771_v37  ;;  %v5869_v35 = vpop.f32.mrb[52].mxu1  ;;  %v5830_v57 = vpop.f32.mrb[53].mxu0  ;;  %v11428_v37 = vld [vmem:[#allocation13 + $0x6e4] ss:$16 sps:$4 sm:$0xff]  }
 0x3f8   :  { %v5831_v7 = vadd.f32 %v5830_v57, %v12773_v50  ;;  %v5871_v17 = vpop.f32.mrb[53].mxu1  ;;  %v5832_v55 = vpop.f32.mrb[54].mxu0  ;;  %8693 = vmatpush1.bf16.msra.mxu0 %v11411_v42  ;;  %v11426_v50 = vld [vmem:[#allocation13 + $0x6e0] ss:$16 sps:$4 sm:$0xff]   ;;  %v11458_v42 = vld [vmem:[#allocation13 + $0x784] ss:$16 sps:$4 sm:$0xff]  }
 0x3f9   :  { %v12801_v1 = vadd.f32 %v5869_v35, %v5829_v54  ;;  %v5873_v44 = vpop.f32.mrb[54].mxu1  ;;  %8734 = vmatpush1.bf16.msra.mxu1 %v11414_v45  ;;  %v5833_v5 = vpop.f32.mrb[55].mxu0  ;;  %8694 = vmatprep.subr.bf16.mxu0 %v11419_v32  ;;  %v11453_v45 = vld [vmem:[#allocation13 + $0x580] ss:$16 sps:$4 sm:$0xff]   ;;  %v11461_v36 = vld [vmem:[#allocation13 + $0x5a4] ss:$16 sps:$4 sm:$0xff]   ;;  %v256_v55 = vrot.slane %v12755_v8, %v12573_v38 }
 0x3fa   :  { %v12803_v40 = vadd.f32 %v5871_v17, %v5831_v7  ;;  %v5874_v41 = vpop.f32.mrb[55].mxu1  ;;  %8735 = vmatprep.subr.bf16.mxu1 %v11422_v51  ;;  %v11456_v32 = vld [vmem:[#allocation13 + $0x780] ss:$16 sps:$4 sm:$0xff]   ;;  %v11464_v51 = vld [vmem:[#allocation13 + $0x7a4] ss:$16 sps:$4 sm:$0xff]   ;;  %v264_v5 = vrot.slane %v12755_v8, %v12575_v39 }
 0x3fb   :  { %v11459_v54 = vld [vmem:[#allocation13 + $0x5a0] ss:$16 sps:$4 sm:$0xff]   ;;  %v11467_v57 = vld [vmem:[#allocation13 + $0x5c4] ss:$16 sps:$4 sm:$0xff]   ;;  %v758_v38 = vadd.f32 %v12557_v21, %v256_v55 }
 0x3fc   :  { %8695 = vmatpush1.bf16.msra.mxu0 %v11417_v16  ;;  %v11462_v35 = vld [vmem:[#allocation13 + $0x7a0] ss:$16 sps:$4 sm:$0xff]   ;;  %v11470_v7 = vld [vmem:[#allocation13 + $0x7c4] ss:$16 sps:$4 sm:$0xff]   ;;  %v799_v39 = vadd.f32 %v12559_v22, %v264_v5 }
 0x3fd   :  { %8736 = vmatpush1.bf16.msra.mxu1 %v11420_v13  ;;  %8696 = vmatprep.subr.bf16.mxu0 %v11425_v4  ;;  %v11465_v17 = vld [vmem:[#allocation13 + $0x5c0] ss:$16 sps:$4 sm:$0xff]   ;;  %v11473_v44 = vld [vmem:[#allocation13 + $0x5e4] ss:$16 sps:$4 sm:$0xff]   ;;  %v12809_v4 = vld [vmem:[#allocation8 + $0x8] sm:$0xff] }
 0x3fe   :  { %8737 = vmatprep.subr.bf16.mxu1 %v11428_v37  ;;  %v11468_v16 = vld [vmem:[#allocation13 + $0x7c0] ss:$16 sps:$4 sm:$0xff]   ;;  %v11476_v13 = vld [vmem:[#allocation13 + $0x7e4] ss:$16 sps:$4 sm:$0xff]   ;;  %v276_v41 = vrot.slane %v12809_v4, %v12599_v63  ;;  %v284_v37 = vrot.slane %v12809_v4, %v12601_v0  ;;  %v12821_v21 = vpack.c.bf16 %v799_v39, %v799_v39 }
 0x3ff   :  { %v11482_v8 = vld [vmem:[#allocation13 + $0xa04] ss:$16 sps:$4 sm:$0xff]   ;;  %v11516_v39 = vld [vmem:[#allocation13 + $0xac0] ss:$16 sps:$4 sm:$0xff]  }
 0x400   :  { %8697 = vmatpush1.bf16.msra.mxu0 %v11423_v60  ;;  %v11471_v60 = vld [vmem:[#allocation13 + $0x5e0] ss:$16 sps:$4 sm:$0xff]   ;;  %v11488_v22 = vld [vmem:[#allocation13 + $0xa24] ss:$16 sps:$4 sm:$0xff]  }
 0x401   :  { %8738 = vmatpush1.bf16.msra.mxu1 %v11426_v50  ;;  %8698 = vmatprep.subr.bf16.mxu0 %v11431_v15  ;;  %v11474_v50 = vld [vmem:[#allocation13 + $0x7e0] ss:$16 sps:$4 sm:$0xff]   ;;  %v11479_v15 = vld [vmem:[#allocation13 + $0x804] ss:$16 sps:$4 sm:$0xff]  }
 0x402   :  { %8739 = vmatprep.subr.bf16.mxu1 %v11434_v23  ;;  %v842_v23 = vadd.f32 %v12569_v30, %v276_v41  ;;  %v11483_v30 = vld [vmem:[#allocation13 + $0x820] ss:$16 sps:$4 sm:$0xff]   ;;  %v11518_v55 = vld [vmem:[#allocation13 + $0xac4] ss:$16 sps:$4 sm:$0xff]  }
 0x404   :  { %8699 = vmatpush1.bf16.msra.mxu0 %v11429_v24  ;;  %v883_v24 = vadd.f32 %v12571_v31, %v284_v37  ;;  %v11486_v31 = vld [vmem:[#allocation13 + $0xa20] ss:$16 sps:$4 sm:$0xff]  }
 0x405   :  { %8740 = vmatpush1.bf16.msra.mxu1 %v11432_v46  ;;  %8700 = vmatprep.subr.bf16.mxu0 %v11437_v19  ;;  %v11477_v46 = vld [vmem:[#allocation13 + $0x800] ss:$16 sps:$4 sm:$0xff]   ;;  %v12819_v19 = vpack.c.bf16 %v758_v38, %v758_v38 }
 0x406   :  { %8741 = vmatprep.subr.bf16.mxu1 %v11440_v11  ;;  %v11480_v11 = vld [vmem:[#allocation13 + $0xa00] ss:$16 sps:$4 sm:$0xff]  }
 0x408   :  { %8701 = vmatpush1.bf16.msra.mxu0 %v11435_v2  ;;  %v11485_v2 = vld [vmem:[#allocation13 + $0x824] ss:$16 sps:$4 sm:$0xff]  }
 0x409   :  { %8742 = vmatpush1.bf16.msra.mxu1 %v11438_v49  ;;  %8702 = vmatprep.subr.bf16.mxu0 %v11443_v18  ;;  %v12823_v49 = vpack.c.bf16 %v842_v23, %v842_v23  ;;  %v12826_v18 = vpack.c.bf16 %v883_v24, %v883_v24 }
 0x40a   :  { %8743 = vmatprep.subr.bf16.mxu1 %v11446_v43  ;;  %v11491_v43 = vld [vmem:[#allocation13 + $0x844] ss:$16 sps:$4 sm:$0xff]  }
 0x40c   :  { %8703 = vmatpush1.bf16.msra.mxu0 %v11441_v47  ;;  %v11494_v47 = vld [vmem:[#allocation13 + $0xa44] ss:$16 sps:$4 sm:$0xff]  }
 0x40d   :  { %8744 = vmatpush1.bf16.msra.mxu1 %v11444_v34  ;;  %8704 = vmatprep.subr.bf16.mxu0 %v11449_v58  ;;  %v11489_v34 = vld [vmem:[#allocation13 + $0x840] ss:$16 sps:$4 sm:$0xff]  }
 0x40e   :  { %8745 = vmatprep.subr.bf16.mxu1 %v11452_v3  ;;  %v11492_v58 = vld [vmem:[#allocation13 + $0xa40] ss:$16 sps:$4 sm:$0xff]   ;;  %v11497_v3 = vld [vmem:[#allocation13 + $0x864] ss:$16 sps:$4 sm:$0xff]  }
 0x410   :  { %8705 = vmatpush1.bf16.msra.mxu0 %v11447_v6  ;;  %v11500_v6 = vld [vmem:[#allocation13 + $0xa64] ss:$16 sps:$4 sm:$0xff]  }
 0x411   :  { %8746 = vmatpush1.bf16.msra.mxu1 %v11450_v33  ;;  %8706 = vmatprep.subr.bf16.mxu0 %v11455_v12  ;;  %v11495_v33 = vld [vmem:[#allocation13 + $0x860] ss:$16 sps:$4 sm:$0xff]  }
 0x412   :  { %8747 = vmatprep.subr.bf16.mxu1 %v11458_v42  ;;  %v11498_v12 = vld [vmem:[#allocation13 + $0xa60] ss:$16 sps:$4 sm:$0xff]   ;;  %v11503_v42 = vld [vmem:[#allocation13 + $0x884] ss:$16 sps:$4 sm:$0xff]  }
 0x414   :  { %8707 = vmatpush1.bf16.msra.mxu0 %v11453_v45  ;;  %v11506_v45 = vld [vmem:[#allocation13 + $0xa84] ss:$16 sps:$4 sm:$0xff]  }
 0x415   :  { %8748 = vmatpush1.bf16.msra.mxu1 %v11456_v32  ;;  %8708 = vmatprep.subr.bf16.mxu0 %v11461_v36  ;;  %v11501_v32 = vld [vmem:[#allocation13 + $0x880] ss:$16 sps:$4 sm:$0xff]  }
 0x416   :  { %8749 = vmatprep.subr.bf16.mxu1 %v11464_v51  ;;  %v11504_v36 = vld [vmem:[#allocation13 + $0xa80] ss:$16 sps:$4 sm:$0xff]   ;;  %v11509_v51 = vld [vmem:[#allocation13 + $0x8a4] ss:$16 sps:$4 sm:$0xff]  }
 0x418   :  { %8709 = vmatpush1.bf16.msra.mxu0 %v11459_v54  ;;  %v11512_v54 = vld [vmem:[#allocation13 + $0xaa4] ss:$16 sps:$4 sm:$0xff]  }
 0x419   :  { %8750 = vmatpush1.bf16.msra.mxu1 %v11462_v35  ;;  %8710 = vmatprep.subr.bf16.mxu0 %v11467_v57  ;;  %v11507_v35 = vld [vmem:[#allocation13 + $0x8a0] ss:$16 sps:$4 sm:$0xff]  }
 0x41a   :  { %8751 = vmatprep.subr.bf16.mxu1 %v11470_v7  ;;  %v11510_v57 = vld [vmem:[#allocation13 + $0xaa0] ss:$16 sps:$4 sm:$0xff]   ;;  %v11515_v7 = vld [vmem:[#allocation13 + $0x8c4] ss:$16 sps:$4 sm:$0xff]  }
 0x41c   :  { %8711 = vmatpush1.bf16.msra.mxu0 %v11465_v17 }
 0x41d   :  { %8752 = vmatpush1.bf16.msra.mxu1 %v11468_v16  ;;  %8712 = vmatprep.subr.bf16.mxu0 %v11473_v44 }
 0x41e   :  { %8753 = vmatprep.subr.bf16.mxu1 %v11476_v13 }
 0x420   :  { %8713 = vmatpush1.bf16.msra.mxu0 %v11471_v60  ;;  %v11513_v60 = vld [vmem:[#allocation13 + $0x8c0] ss:$16 sps:$4 sm:$0xff]  }
 0x421   :  { %8754 = vmatpush1.bf16.msra.mxu1 %v11474_v50  ;;  %8764 = vmatprep.subr.bf16.mxu0 %v11479_v15 }
 0x422   :  { %8805 = vmatprep.subr.bf16.mxu1 %v11482_v8  ;;  %v11521_v8 = vld [vmem:[#allocation13 + $0x8e4] ss:$16 sps:$4 sm:$0xff]  }
 0x423   :  { %8715 = vmatmul.mubr.bf16.vlgmr.msra.gmra.mrb[68].mxu0 %v12819_v19 }
 0x424   :  { %8756 = vmatmul.mubr.bf16.vlgmr.msra.gmra.mrb[68].mxu1 %v12821_v21  ;;  %8765 = vmatpush1.bf16.msra.mxu0 %v11477_v46  ;;  %v11519_v46 = vld [vmem:[#allocation13 + $0x8e0] ss:$16 sps:$4 sm:$0xff]  }
 0x425   :  { %8796 = vmatprep.mubr.bf16.mxu0 %v12823_v49  ;;  %8806 = vmatpush1.bf16.msra.mxu1 %v11480_v11  ;;  %v11527_v11 = vld [vmem:[#allocation13 + $0x904] ss:$16 sps:$4 sm:$0xff]  }
 0x426   :  { %8837 = vmatprep.mubr.bf16.mxu1 %v12826_v18  ;;  %8766 = vmatprep.subr.bf16.mxu0 %v11485_v2  ;;  %v11530_v2 = vld [vmem:[#allocation13 + $0xb04] ss:$16 sps:$4 sm:$0xff]  }
 0x427   :  { %8807 = vmatprep.subr.bf16.mxu1 %v11488_v22  ;;  %v11525_v22 = vld [vmem:[#allocation13 + $0x900] ss:$16 sps:$4 sm:$0xff]  }
 0x428   :  { %8767 = vmatpush1.bf16.msra.mxu0 %v11483_v30  ;;  %v11528_v30 = vld [vmem:[#allocation13 + $0xb00] ss:$16 sps:$4 sm:$0xff]  }
 0x429   :  { %8808 = vmatpush1.bf16.msra.mxu1 %v11486_v31  ;;  %8768 = vmatprep.subr.bf16.mxu0 %v11491_v43  ;;  %v11533_v31 = vld [vmem:[#allocation13 + $0x924] ss:$16 sps:$4 sm:$0xff]  }
 0x42a   :  { %8809 = vmatprep.subr.bf16.mxu1 %v11494_v47  ;;  %v11536_v43 = vld [vmem:[#allocation13 + $0xb24] ss:$16 sps:$4 sm:$0xff]   ;;  %v11531_v47 = vld [vmem:[#allocation13 + $0x920] ss:$16 sps:$4 sm:$0xff]  }
 0x42c   :  { %8769 = vmatpush1.bf16.msra.mxu0 %v11489_v34  ;;  %v11534_v34 = vld [vmem:[#allocation13 + $0xb20] ss:$16 sps:$4 sm:$0xff]  }
 0x42d   :  { %8810 = vmatpush1.bf16.msra.mxu1 %v11492_v58  ;;  %8770 = vmatprep.subr.bf16.mxu0 %v11497_v3  ;;  %v11539_v58 = vld [vmem:[#allocation13 + $0x944] ss:$16 sps:$4 sm:$0xff]  }
 0x42e   :  { %8811 = vmatprep.subr.bf16.mxu1 %v11500_v6  ;;  %v11542_v3 = vld [vmem:[#allocation13 + $0xb44] ss:$16 sps:$4 sm:$0xff]   ;;  %v11537_v6 = vld [vmem:[#allocation13 + $0x940] ss:$16 sps:$4 sm:$0xff]  }
 0x430   :  { %8771 = vmatpush1.bf16.msra.mxu0 %v11495_v33  ;;  %v11540_v33 = vld [vmem:[#allocation13 + $0xb40] ss:$16 sps:$4 sm:$0xff]  }
 0x431   :  { %8812 = vmatpush1.bf16.msra.mxu1 %v11498_v12  ;;  %8772 = vmatprep.subr.bf16.mxu0 %v11503_v42  ;;  %v11545_v12 = vld [vmem:[#allocation13 + $0x964] ss:$16 sps:$4 sm:$0xff]  }
 0x432   :  { %8813 = vmatprep.subr.bf16.mxu1 %v11506_v45  ;;  %v11548_v42 = vld [vmem:[#allocation13 + $0xb64] ss:$16 sps:$4 sm:$0xff]   ;;  %v11543_v45 = vld [vmem:[#allocation13 + $0x960] ss:$16 sps:$4 sm:$0xff]  }
 0x434   :  { %8773 = vmatpush1.bf16.msra.mxu0 %v11501_v32  ;;  %v11546_v32 = vld [vmem:[#allocation13 + $0xb60] ss:$16 sps:$4 sm:$0xff]  }
 0x435   :  { %8814 = vmatpush1.bf16.msra.mxu1 %v11504_v36  ;;  %8774 = vmatprep.subr.bf16.mxu0 %v11509_v51  ;;  %v11551_v36 = vld [vmem:[#allocation13 + $0x984] ss:$16 sps:$4 sm:$0xff]  }
 0x436   :  { %v5910_v17 = vpop.f32.mrb[56].mxu0  ;;  %8815 = vmatprep.subr.bf16.mxu1 %v11512_v54  ;;  %v11554_v51 = vld [vmem:[#allocation13 + $0xb84] ss:$16 sps:$4 sm:$0xff]   ;;  %v11549_v54 = vld [vmem:[#allocation13 + $0x980] ss:$16 sps:$4 sm:$0xff]  }
 0x437   :  { %v5911_v16 = vadd.f32 %v5910_v17, %v12801_v1  ;;  %v5951_v44 = vpop.f32.mrb[56].mxu1  ;;  %v5912_v5 = vpop.f32.mrb[57].mxu0  ;;  %v11524_v1 = vld [vmem:[#allocation13 + $0xae4] ss:$16 sps:$4 sm:$0xff]   ;;  %v11555_v17 = vld [vmem:[#allocation13 + $0x9a0] ss:$16 sps:$4 sm:$0xff]  }
 0x438   :  { %v5913_v13 = vadd.f32 %v5912_v5, %v12803_v40  ;;  %v5953_v41 = vpop.f32.mrb[57].mxu1  ;;  %v5914_v37 = vpop.f32.mrb[58].mxu0  ;;  %8775 = vmatpush1.bf16.msra.mxu0 %v11507_v35  ;;  %v11522_v40 = vld [vmem:[#allocation13 + $0xae0] ss:$16 sps:$4 sm:$0xff]  }
 0x439   :  { %v12833_v38 = vadd.f32 %v5951_v44, %v5911_v16  ;;  %v5955_v50 = vpop.f32.mrb[58].mxu1  ;;  %8816 = vmatpush1.bf16.msra.mxu1 %v11510_v57  ;;  %v5915_v15 = vpop.f32.mrb[59].mxu0  ;;  %8776 = vmatprep.subr.bf16.mxu0 %v11515_v7  ;;  %v11552_v35 = vld [vmem:[#allocation13 + $0xb80] ss:$16 sps:$4 sm:$0xff]   ;;  %v11557_v57 = vld [vmem:[#allocation13 + $0x9a4] ss:$16 sps:$4 sm:$0xff]  }
 0x43a   :  { %v12835_v23 = vadd.f32 %v5953_v41, %v5913_v13  ;;  %v5956_v24 = vpop.f32.mrb[59].mxu1  ;;  %8817 = vmatprep.subr.bf16.mxu1 %v11518_v55  ;;  %v11560_v7 = vld [vmem:[#allocation13 + $0xba4] ss:$16 sps:$4 sm:$0xff]   ;;  %v11558_v55 = vld [vmem:[#allocation13 + $0xba0] ss:$16 sps:$4 sm:$0xff]   ;;  %v272_v13 = vrot.slane %v12809_v4, %v12595_v61 }
 0x43b   :  { %v11563_v16 = vld [vmem:[#allocation13 + $0x9c4] ss:$16 sps:$4 sm:$0xff]   ;;  %v11561_v5 = vld [vmem:[#allocation13 + $0x9c0] ss:$16 sps:$4 sm:$0xff]  }
 0x43c   :  { %8777 = vmatpush1.bf16.msra.mxu0 %v11513_v60  ;;  %v11566_v44 = vld [vmem:[#allocation13 + $0xbc4] ss:$16 sps:$4 sm:$0xff]   ;;  %v11564_v41 = vld [vmem:[#allocation13 + $0xbc0] ss:$16 sps:$4 sm:$0xff]   ;;  %v280_v60 = vrot.slane %v12809_v4, %v12597_v62 }
 0x43d   :  { %8818 = vmatpush1.bf16.msra.mxu1 %v11516_v39  ;;  %8778 = vmatprep.subr.bf16.mxu0 %v11521_v8  ;;  %v11569_v37 = vld [vmem:[#allocation13 + $0x9e4] ss:$16 sps:$4 sm:$0xff]   ;;  %v11567_v15 = vld [vmem:[#allocation13 + $0x9e0] ss:$16 sps:$4 sm:$0xff]   ;;  %v840_v39 = vadd.f32 %v12565_v28, %v272_v13  ;;  %v12849_v28 = vpack.c.bf16 %v12589_v53, %v12589_v53 }
 0x43e   :  { %8819 = vmatprep.subr.bf16.mxu1 %v11524_v1  ;;  %v11572_v50 = vld [vmem:[#allocation13 + $0xbe4] ss:$16 sps:$4 sm:$0xff]   ;;  %v11570_v8 = vld [vmem:[#allocation13 + $0xbe0] ss:$16 sps:$4 sm:$0xff]   ;;  %v881_v1 = vadd.f32 %v12567_v29, %v280_v60 }
 0x43f   :  { %v11575_v24 = vld [vmem:[#allocation13 + $0xc04] ss:$16 sps:$4 sm:$0xff]   ;;  %v11576_v4 = vld [vmem:[#allocation13 + $0xe00] ss:$16 sps:$4 sm:$0xff]  }
 0x440   :  { %8779 = vmatpush1.bf16.msra.mxu0 %v11519_v46  ;;  %v11578_v46 = vld [vmem:[#allocation13 + $0xe04] ss:$16 sps:$4 sm:$0xff]  }
 0x441   :  { %8820 = vmatpush1.bf16.msra.mxu1 %v11522_v40  ;;  %8780 = vmatprep.subr.bf16.mxu0 %v11527_v11  ;;  %v11573_v40 = vld [vmem:[#allocation13 + $0xc00] ss:$16 sps:$4 sm:$0xff]   ;;  %v12843_v11 = vpack.c.bf16 %v840_v39, %v840_v39  ;;  %v11584_v29 = vld [vmem:[#allocation13 + $0xe24] ss:$16 sps:$4 sm:$0xff]  }
 0x442   :  { %8821 = vmatprep.subr.bf16.mxu1 %v11530_v2  ;;  %v12845_v2 = vpack.c.bf16 %v881_v1, %v881_v1  ;;  %v11590_v53 = vld [vmem:[#allocation13 + $0xe44] ss:$16 sps:$4 sm:$0xff]   ;;  %v11612_v39 = vld [vmem:[#allocation13 + $0xec0] ss:$16 sps:$4 sm:$0xff]  }
 0x444   :  { %8781 = vmatpush1.bf16.msra.mxu0 %v11525_v22  ;;  %v11581_v22 = vld [vmem:[#allocation13 + $0xc24] ss:$16 sps:$4 sm:$0xff]  }
 0x445   :  { %8822 = vmatpush1.bf16.msra.mxu1 %v11528_v30  ;;  %8782 = vmatprep.subr.bf16.mxu0 %v11533_v31  ;;  %v12854_v30 = vpack.c.bf16 %v12591_v56, %v12591_v56  ;;  %v11579_v31 = vld [vmem:[#allocation13 + $0xc20] ss:$16 sps:$4 sm:$0xff]  }
 0x446   :  { %8823 = vmatprep.subr.bf16.mxu1 %v11536_v43  ;;  %v11582_v43 = vld [vmem:[#allocation13 + $0xe20] ss:$16 sps:$4 sm:$0xff]  }
 0x447   :  { %v11588_v56 = vld [vmem:[#allocation13 + $0xe40] ss:$16 sps:$4 sm:$0xff]  }
 0x448   :  { %8783 = vmatpush1.bf16.msra.mxu0 %v11531_v47  ;;  %v11587_v47 = vld [vmem:[#allocation13 + $0xc44] ss:$16 sps:$4 sm:$0xff]  }
 0x449   :  { %8824 = vmatpush1.bf16.msra.mxu1 %v11534_v34  ;;  %8784 = vmatprep.subr.bf16.mxu0 %v11539_v58  ;;  %v11585_v34 = vld [vmem:[#allocation13 + $0xc40] ss:$16 sps:$4 sm:$0xff]   ;;  %v11593_v58 = vld [vmem:[#allocation13 + $0xc64] ss:$16 sps:$4 sm:$0xff]  }
 0x44a   :  { %8825 = vmatprep.subr.bf16.mxu1 %v11542_v3  ;;  %v11596_v3 = vld [vmem:[#allocation13 + $0xe64] ss:$16 sps:$4 sm:$0xff]  }
 0x44c   :  { %8785 = vmatpush1.bf16.msra.mxu0 %v11537_v6  ;;  %v11591_v6 = vld [vmem:[#allocation13 + $0xc60] ss:$16 sps:$4 sm:$0xff]  }
 0x44d   :  { %8826 = vmatpush1.bf16.msra.mxu1 %v11540_v33  ;;  %8786 = vmatprep.subr.bf16.mxu0 %v11545_v12  ;;  %v11594_v33 = vld [vmem:[#allocation13 + $0xe60] ss:$16 sps:$4 sm:$0xff]   ;;  %v11599_v12 = vld [vmem:[#allocation13 + $0xc84] ss:$16 sps:$4 sm:$0xff]  }
 0x44e   :  { %8827 = vmatprep.subr.bf16.mxu1 %v11548_v42  ;;  %v11602_v42 = vld [vmem:[#allocation13 + $0xe84] ss:$16 sps:$4 sm:$0xff]  }
 0x450   :  { %8787 = vmatpush1.bf16.msra.mxu0 %v11543_v45  ;;  %v11597_v45 = vld [vmem:[#allocation13 + $0xc80] ss:$16 sps:$4 sm:$0xff]  }
 0x451   :  { %8828 = vmatpush1.bf16.msra.mxu1 %v11546_v32  ;;  %8788 = vmatprep.subr.bf16.mxu0 %v11551_v36  ;;  %v11600_v32 = vld [vmem:[#allocation13 + $0xe80] ss:$16 sps:$4 sm:$0xff]   ;;  %v11605_v36 = vld [vmem:[#allocation13 + $0xca4] ss:$16 sps:$4 sm:$0xff]  }
 0x452   :  { %8829 = vmatprep.subr.bf16.mxu1 %v11554_v51  ;;  %v11608_v51 = vld [vmem:[#allocation13 + $0xea4] ss:$16 sps:$4 sm:$0xff]  }
 0x454   :  { %8789 = vmatpush1.bf16.msra.mxu0 %v11549_v54  ;;  %v11603_v54 = vld [vmem:[#allocation13 + $0xca0] ss:$16 sps:$4 sm:$0xff]  }
 0x455   :  { %8830 = vmatpush1.bf16.msra.mxu1 %v11552_v35  ;;  %8790 = vmatprep.subr.bf16.mxu0 %v11557_v57  ;;  %v11606_v35 = vld [vmem:[#allocation13 + $0xea0] ss:$16 sps:$4 sm:$0xff]   ;;  %v11611_v57 = vld [vmem:[#allocation13 + $0xcc4] ss:$16 sps:$4 sm:$0xff]  }
 0x456   :  { %8831 = vmatprep.subr.bf16.mxu1 %v11560_v7 }
 0x458   :  { %8791 = vmatpush1.bf16.msra.mxu0 %v11555_v17  ;;  %v11614_v17 = vld [vmem:[#allocation13 + $0xec4] ss:$16 sps:$4 sm:$0xff]  }
 0x459   :  { %8832 = vmatpush1.bf16.msra.mxu1 %v11558_v55  ;;  %8792 = vmatprep.subr.bf16.mxu0 %v11563_v16 }
 0x45a   :  { %8833 = vmatprep.subr.bf16.mxu1 %v11566_v44 }
 0x45c   :  { %8793 = vmatpush1.bf16.msra.mxu0 %v11561_v5 }
 0x45d   :  { %8834 = vmatpush1.bf16.msra.mxu1 %v11564_v41  ;;  %8794 = vmatprep.subr.bf16.mxu0 %v11569_v37  ;;  %v11609_v37 = vld [vmem:[#allocation13 + $0xcc0] ss:$16 sps:$4 sm:$0xff]  }
 0x45e   :  { %8835 = vmatprep.subr.bf16.mxu1 %v11572_v50 }
 0x460   :  { %8795 = vmatpush1.bf16.msra.mxu0 %v11567_v15 }
 0x461   :  { %8836 = vmatpush1.bf16.msra.mxu1 %v11570_v8  ;;  %8846 = vmatprep.subr.bf16.mxu0 %v11575_v24  ;;  %v11617_v8 = vld [vmem:[#allocation13 + $0xce4] ss:$16 sps:$4 sm:$0xff]  }
 0x462   :  { %8887 = vmatprep.subr.bf16.mxu1 %v11578_v46  ;;  %v11615_v46 = vld [vmem:[#allocation13 + $0xce0] ss:$16 sps:$4 sm:$0xff]  }
 0x463   :  { %8797 = vmatmul.mubr.bf16.vlgmr.msra.gmra.mrb[72].mxu0 %v12843_v11 }
 0x464   :  { %8838 = vmatmul.mubr.bf16.vlgmr.msra.gmra.mrb[72].mxu1 %v12845_v2  ;;  %8847 = vmatpush1.bf16.msra.mxu0 %v11573_v40  ;;  %v11623_v40 = vld [vmem:[#allocation13 + $0xd04] ss:$16 sps:$4 sm:$0xff]  }
 0x465   :  { %8878 = vmatprep.mubr.bf16.mxu0 %v12849_v28  ;;  %8888 = vmatpush1.bf16.msra.mxu1 %v11576_v4  ;;  %v11626_v4 = vld [vmem:[#allocation13 + $0xf04] ss:$16 sps:$4 sm:$0xff]  }
 0x466   :  { %8919 = vmatprep.mubr.bf16.mxu1 %v12854_v30  ;;  %8848 = vmatprep.subr.bf16.mxu0 %v11581_v22  ;;  %v11621_v22 = vld [vmem:[#allocation13 + $0xd00] ss:$16 sps:$4 sm:$0xff]  }
 0x467   :  { %8889 = vmatprep.subr.bf16.mxu1 %v11584_v29  ;;  %v11624_v29 = vld [vmem:[#allocation13 + $0xf00] ss:$16 sps:$4 sm:$0xff]  }
 0x468   :  { %8849 = vmatpush1.bf16.msra.mxu0 %v11579_v31  ;;  %v11629_v31 = vld [vmem:[#allocation13 + $0xd24] ss:$16 sps:$4 sm:$0xff]  }
 0x469   :  { %8890 = vmatpush1.bf16.msra.mxu1 %v11582_v43  ;;  %8850 = vmatprep.subr.bf16.mxu0 %v11587_v47  ;;  %v11632_v43 = vld [vmem:[#allocation13 + $0xf24] ss:$16 sps:$4 sm:$0xff]   ;;  %v11627_v47 = vld [vmem:[#allocation13 + $0xd20] ss:$16 sps:$4 sm:$0xff]  }
 0x46a   :  { %8891 = vmatprep.subr.bf16.mxu1 %v11590_v53  ;;  %v11630_v53 = vld [vmem:[#allocation13 + $0xf20] ss:$16 sps:$4 sm:$0xff]  }
 0x46c   :  { %8851 = vmatpush1.bf16.msra.mxu0 %v11585_v34  ;;  %v11635_v34 = vld [vmem:[#allocation13 + $0xd44] ss:$16 sps:$4 sm:$0xff]  }
 0x46d   :  { %8892 = vmatpush1.bf16.msra.mxu1 %v11588_v56  ;;  %8852 = vmatprep.subr.bf16.mxu0 %v11593_v58  ;;  %v11638_v56 = vld [vmem:[#allocation13 + $0xf44] ss:$16 sps:$4 sm:$0xff]   ;;  %v11633_v58 = vld [vmem:[#allocation13 + $0xd40] ss:$16 sps:$4 sm:$0xff]  }
 0x46e   :  { %8893 = vmatprep.subr.bf16.mxu1 %v11596_v3  ;;  %v11636_v3 = vld [vmem:[#allocation13 + $0xf40] ss:$16 sps:$4 sm:$0xff]  }
 0x470   :  { %8853 = vmatpush1.bf16.msra.mxu0 %v11591_v6  ;;  %v11641_v6 = vld [vmem:[#allocation13 + $0xd64] ss:$16 sps:$4 sm:$0xff]  }
 0x471   :  { %8894 = vmatpush1.bf16.msra.mxu1 %v11594_v33  ;;  %8854 = vmatprep.subr.bf16.mxu0 %v11599_v12  ;;  %v11644_v33 = vld [vmem:[#allocation13 + $0xf64] ss:$16 sps:$4 sm:$0xff]   ;;  %v11639_v12 = vld [vmem:[#allocation13 + $0xd60] ss:$16 sps:$4 sm:$0xff]  }
 0x472   :  { %8895 = vmatprep.subr.bf16.mxu1 %v11602_v42  ;;  %v11642_v42 = vld [vmem:[#allocation13 + $0xf60] ss:$16 sps:$4 sm:$0xff]  }
 0x474   :  { %8855 = vmatpush1.bf16.msra.mxu0 %v11597_v45  ;;  %v11647_v45 = vld [vmem:[#allocation13 + $0xd84] ss:$16 sps:$4 sm:$0xff]  }
 0x475   :  { %8896 = vmatpush1.bf16.msra.mxu1 %v11600_v32  ;;  %8856 = vmatprep.subr.bf16.mxu0 %v11605_v36  ;;  %v11650_v32 = vld [vmem:[#allocation13 + $0xf84] ss:$16 sps:$4 sm:$0xff]   ;;  %v11645_v36 = vld [vmem:[#allocation13 + $0xd80] ss:$16 sps:$4 sm:$0xff]  }
 0x476   :  { %v5992_v7 = vpop.f32.mrb[60].mxu0  ;;  %8897 = vmatprep.subr.bf16.mxu1 %v11608_v51  ;;  %v11648_v51 = vld [vmem:[#allocation13 + $0xf80] ss:$16 sps:$4 sm:$0xff]  }
 0x477   :  { %v5993_v55 = vadd.f32 %v5992_v7, %v12833_v38  ;;  %v6033_v16 = vpop.f32.mrb[60].mxu1  ;;  %v5994_v44 = vpop.f32.mrb[61].mxu0  ;;  %v11620_v38 = vld [vmem:[#allocation13 + $0xee4] ss:$16 sps:$4 sm:$0xff]   ;;  %v11654_v7 = vld [vmem:[#allocation13 + $0xfa0] ss:$16 sps:$4 sm:$0xff]  }
 0x478   :  { %v5995_v5 = vadd.f32 %v5994_v44, %v12835_v23  ;;  %v6035_v13 = vpop.f32.mrb[61].mxu1  ;;  %v5996_v41 = vpop.f32.mrb[62].mxu0  ;;  %8857 = vmatpush1.bf16.msra.mxu0 %v11603_v54  ;;  %v11618_v23 = vld [vmem:[#allocation13 + $0xee0] ss:$16 sps:$4 sm:$0xff]   ;;  %v11653_v54 = vld [vmem:[#allocation13 + $0xda4] ss:$16 sps:$4 sm:$0xff]  }
 0x479   :  { %v12861_v60 = vadd.f32 %v6033_v16, %v5993_v55  ;;  %v6037_v50 = vpop.f32.mrb[62].mxu1  ;;  %8898 = vmatpush1.bf16.msra.mxu1 %v11606_v35  ;;  %v5997_v15 = vpop.f32.mrb[63].mxu0  ;;  %8858 = vmatprep.subr.bf16.mxu0 %v11611_v57  ;;  %v11656_v35 = vld [vmem:[#allocation13 + $0xfa4] ss:$16 sps:$4 sm:$0xff]   ;;  %v11651_v57 = vld [vmem:[#allocation13 + $0xda0] ss:$16 sps:$4 sm:$0xff]  }
 0x47a   :  { %v12863_v24 = vadd.f32 %v6035_v13, %v5995_v5  ;;  %v6038_v1 = vpop.f32.mrb[63].mxu1  ;;  %8899 = vmatprep.subr.bf16.mxu1 %v11614_v17  ;;  %v11659_v17 = vld [vmem:[#allocation13 + $0xdc4] ss:$16 sps:$4 sm:$0xff]   ;;  %v11657_v16 = vld [vmem:[#allocation13 + $0xdc0] ss:$16 sps:$4 sm:$0xff]  }
 0x47b   :  { %v11662_v55 = vld [vmem:[#allocation13 + $0xfc4] ss:$16 sps:$4 sm:$0xff]   ;;  %v11660_v44 = vld [vmem:[#allocation13 + $0xfc0] ss:$16 sps:$4 sm:$0xff]   ;;  %v11671_v50 = vld [vmem:[#allocation13 + $0xc] ss:$16 sps:$4 sm:$0xff]  }
 0x47c   :  { %8859 = vmatpush1.bf16.msra.mxu0 %v11609_v37  ;;  %v11665_v5 = vld [vmem:[#allocation13 + $0xde4] ss:$16 sps:$4 sm:$0xff]   ;;  %v11663_v41 = vld [vmem:[#allocation13 + $0xde0] ss:$16 sps:$4 sm:$0xff]   ;;  %v11674_v15 = vld [vmem:[#allocation13 + $0x20c] ss:$16 sps:$4 sm:$0xff]  }
 0x47d   :  { %8900 = vmatpush1.bf16.msra.mxu1 %v11612_v39  ;;  %8860 = vmatprep.subr.bf16.mxu0 %v11617_v8  ;;  %v11668_v13 = vld [vmem:[#allocation13 + $0xfe4] ss:$16 sps:$4 sm:$0xff]   ;;  %v11666_v37 = vld [vmem:[#allocation13 + $0xfe0] ss:$16 sps:$4 sm:$0xff]   ;;  %v11669_v39 = vld [vmem:[#allocation13 + $0x8] ss:$16 sps:$4 sm:$0xff]   ;;  %v12867_v8 = vpack.c.bf16 %v12585_v48, %v12585_v48 }
 0x47e   :  { %8901 = vmatprep.subr.bf16.mxu1 %v11620_v38  ;;  %v11672_v1 = vld [vmem:[#allocation13 + $0x208] ss:$16 sps:$4 sm:$0xff]   ;;  %v12871_v38 = vpack.c.bf16 %v12587_v52, %v12587_v52 }
 0x47f   :  { %v11678_v48 = vld [vmem:[#allocation13 + $0x228] ss:$16 sps:$4 sm:$0xff]  }
 0x480   :  { %8861 = vmatpush1.bf16.msra.mxu0 %v11615_v46  ;;  %v11677_v46 = vld [vmem:[#allocation13 + $0x2c] ss:$16 sps:$4 sm:$0xff]   ;;  %v11681_v52 = vld [vmem:[#allocation13 + $0x48] ss:$16 sps:$4 sm:$0xff]  }
 0x481   :  { %8902 = vmatpush1.bf16.msra.mxu1 %v11618_v23  ;;  %8862 = vmatprep.subr.bf16.mxu0 %v11623_v40  ;;  %v11680_v23 = vld [vmem:[#allocation13 + $0x22c] ss:$16 sps:$4 sm:$0xff]   ;;  %v11675_v40 = vld [vmem:[#allocation13 + $0x28] ss:$16 sps:$4 sm:$0xff]  }
 0x482   :  { %8903 = vmatprep.subr.bf16.mxu1 %v11626_v4  ;;  %v11683_v4 = vld [vmem:[#allocation13 + $0x4c] ss:$16 sps:$4 sm:$0xff]  }
 0x484   :  { %8863 = vmatpush1.bf16.msra.mxu0 %v11621_v22  ;;  %v11686_v22 = vld [vmem:[#allocation13 + $0x24c] ss:$16 sps:$4 sm:$0xff]  }
 0x485   :  { %8904 = vmatpush1.bf16.msra.mxu1 %v11624_v29  ;;  %8864 = vmatprep.subr.bf16.mxu0 %v11629_v31  ;;  %v11684_v29 = vld [vmem:[#allocation13 + $0x248] ss:$16 sps:$4 sm:$0xff]   ;;  %v11689_v31 = vld [vmem:[#allocation13 + $0x6c] ss:$16 sps:$4 sm:$0xff]  }
 0x486   :  { %8905 = vmatprep.subr.bf16.mxu1 %v11632_v43  ;;  %v11692_v43 = vld [vmem:[#allocation13 + $0x26c] ss:$16 sps:$4 sm:$0xff]  }
 0x488   :  { %8865 = vmatpush1.bf16.msra.mxu0 %v11627_v47  ;;  %v11687_v47 = vld [vmem:[#allocation13 + $0x68] ss:$16 sps:$4 sm:$0xff]  }
 0x489   :  { %8906 = vmatpush1.bf16.msra.mxu1 %v11630_v53  ;;  %8866 = vmatprep.subr.bf16.mxu0 %v11635_v34  ;;  %v11695_v53 = vld [vmem:[#allocation13 + $0x8c] ss:$16 sps:$4 sm:$0xff]  }
 0x48a   :  { %8907 = vmatprep.subr.bf16.mxu1 %v11638_v56  ;;  %v11698_v34 = vld [vmem:[#allocation13 + $0x28c] ss:$16 sps:$4 sm:$0xff]   ;;  %v11696_v56 = vld [vmem:[#allocation13 + $0x288] ss:$16 sps:$4 sm:$0xff]  }
 0x48c   :  { %8867 = vmatpush1.bf16.msra.mxu0 %v11633_v58  ;;  %v11701_v58 = vld [vmem:[#allocation13 + $0xac] ss:$16 sps:$4 sm:$0xff]  }
 0x48d   :  { %8908 = vmatpush1.bf16.msra.mxu1 %v11636_v3  ;;  %8868 = vmatprep.subr.bf16.mxu0 %v11641_v6  ;;  %v11704_v3 = vld [vmem:[#allocation13 + $0x2ac] ss:$16 sps:$4 sm:$0xff]   ;;  %v11699_v6 = vld [vmem:[#allocation13 + $0xa8] ss:$16 sps:$4 sm:$0xff]  }
 0x48e   :  { %8909 = vmatprep.subr.bf16.mxu1 %v11644_v33  ;;  %v11702_v33 = vld [vmem:[#allocation13 + $0x2a8] ss:$16 sps:$4 sm:$0xff]  }
 0x490   :  { %8869 = vmatpush1.bf16.msra.mxu0 %v11639_v12  ;;  %v11707_v12 = vld [vmem:[#allocation13 + $0xcc] ss:$16 sps:$4 sm:$0xff]  }
 0x491   :  { %8910 = vmatpush1.bf16.msra.mxu1 %v11642_v42  ;;  %8870 = vmatprep.subr.bf16.mxu0 %v11647_v45  ;;  %v11710_v45 = vld [vmem:[#allocation13 + $0x2cc] ss:$16 sps:$4 sm:$0xff]  }
 0x492   :  { %8911 = vmatprep.subr.bf16.mxu1 %v11650_v32 }
 0x494   :  { %8871 = vmatpush1.bf16.msra.mxu0 %v11645_v36 }
 0x495   :  { %8912 = vmatpush1.bf16.msra.mxu1 %v11648_v51  ;;  %8872 = vmatprep.subr.bf16.mxu0 %v11653_v54 }
 0x496   :  { %8913 = vmatprep.subr.bf16.mxu1 %v11656_v35 }
 0x498   :  { %8873 = vmatpush1.bf16.msra.mxu0 %v11651_v57 }
 0x499   :  { %8914 = vmatpush1.bf16.msra.mxu1 %v11654_v7  ;;  %8874 = vmatprep.subr.bf16.mxu0 %v11659_v17  ;;  %v11705_v7 = vld [vmem:[#allocation13 + $0xc8] ss:$16 sps:$4 sm:$0xff]  }
 0x49a   :  { %8915 = vmatprep.subr.bf16.mxu1 %v11662_v55 }
 0x49c   :  { %8875 = vmatpush1.bf16.msra.mxu0 %v11657_v16 }
 0x49d   :  { %8916 = vmatpush1.bf16.msra.mxu1 %v11660_v44  ;;  %8876 = vmatprep.subr.bf16.mxu0 %v11665_v5  ;;  %v11708_v44 = vld [vmem:[#allocation13 + $0x2c8] ss:$16 sps:$4 sm:$0xff]   ;;  %v11713_v5 = vld [vmem:[#allocation13 + $0xec] ss:$16 sps:$4 sm:$0xff]  }
 0x49e   :  { %8917 = vmatprep.subr.bf16.mxu1 %v11668_v13 }
 0x4a0   :  { %8877 = vmatpush1.bf16.msra.mxu0 %v11663_v41 }
 0x4a1   :  { %8918 = vmatpush1.bf16.msra.mxu1 %v11666_v37  ;;  %8928 = vmatprep.subr.bf16.mxu0 %v11671_v50  ;;  %v11711_v37 = vld [vmem:[#allocation13 + $0xe8] ss:$16 sps:$4 sm:$0xff]   ;;  %v11719_v50 = vld [vmem:[#allocation13 + $0x10c] ss:$16 sps:$4 sm:$0xff]  }
 0x4a2   :  { %8969 = vmatprep.subr.bf16.mxu1 %v11674_v15  ;;  %v11722_v15 = vld [vmem:[#allocation13 + $0x30c] ss:$16 sps:$4 sm:$0xff]  }
 0x4a3   :  { %8879 = vmatmul.mubr.bf16.vlgmr.msra.gmra.mrb[76].mxu0 %v12867_v8 }
 0x4a4   :  { %8920 = vmatmul.mubr.bf16.vlgmr.msra.gmra.mrb[76].mxu1 %v12871_v38  ;;  %8929 = vmatpush1.bf16.msra.mxu0 %v11669_v39  ;;  %v11717_v39 = vld [vmem:[#allocation13 + $0x108] ss:$16 sps:$4 sm:$0xff]  }
 0x4a5   :  { %8960 = vmatprep.mubr.bf16.mxu0 %v12763_v9  ;;  %8970 = vmatpush1.bf16.msra.mxu1 %v11672_v1  ;;  %v11690_v9 = vld [vmem:[#allocation13 + $0x268] ss:$16 sps:$4 sm:$0xff]  }
 0x4a6   :  { %9001 = vmatprep.mubr.bf16.mxu1 %v12766_v10  ;;  %8930 = vmatprep.subr.bf16.mxu0 %v11677_v46  ;;  %v11693_v10 = vld [vmem:[#allocation13 + $0x88] ss:$16 sps:$4 sm:$0xff]   ;;  %v11725_v46 = vld [vmem:[#allocation13 + $0x12c] ss:$16 sps:$4 sm:$0xff]  }
 0x4a7   :  { %8971 = vmatprep.subr.bf16.mxu1 %v11680_v23  ;;  %v11720_v1 = vld [vmem:[#allocation13 + $0x308] ss:$16 sps:$4 sm:$0xff]   ;;  %v11728_v23 = vld [vmem:[#allocation13 + $0x32c] ss:$16 sps:$4 sm:$0xff]  }
 0x4a8   :  { %8931 = vmatpush1.bf16.msra.mxu0 %v11675_v40  ;;  %v11723_v40 = vld [vmem:[#allocation13 + $0x128] ss:$16 sps:$4 sm:$0xff]  }
 0x4a9   :  { %8972 = vmatpush1.bf16.msra.mxu1 %v11678_v48  ;;  %8932 = vmatprep.subr.bf16.mxu0 %v11683_v4  ;;  %v11726_v48 = vld [vmem:[#allocation13 + $0x328] ss:$16 sps:$4 sm:$0xff]   ;;  %v11731_v4 = vld [vmem:[#allocation13 + $0x14c] ss:$16 sps:$4 sm:$0xff]  }
 0x4aa   :  { %8973 = vmatprep.subr.bf16.mxu1 %v11686_v22  ;;  %v11734_v22 = vld [vmem:[#allocation13 + $0x34c] ss:$16 sps:$4 sm:$0xff]  }
 0x4ac   :  { %8933 = vmatpush1.bf16.msra.mxu0 %v11681_v52  ;;  %v11729_v52 = vld [vmem:[#allocation13 + $0x148] ss:$16 sps:$4 sm:$0xff]  }
 0x4ad   :  { %8974 = vmatpush1.bf16.msra.mxu1 %v11684_v29  ;;  %8934 = vmatprep.subr.bf16.mxu0 %v11689_v31  ;;  %v11732_v29 = vld [vmem:[#allocation13 + $0x348] ss:$16 sps:$4 sm:$0xff]   ;;  %v11737_v31 = vld [vmem:[#allocation13 + $0x16c] ss:$16 sps:$4 sm:$0xff]  }
 0x4ae   :  { %8975 = vmatprep.subr.bf16.mxu1 %v11692_v43  ;;  %v11740_v43 = vld [vmem:[#allocation13 + $0x36c] ss:$16 sps:$4 sm:$0xff]  }
 0x4b0   :  { %8935 = vmatpush1.bf16.msra.mxu0 %v11687_v47  ;;  %v11735_v47 = vld [vmem:[#allocation13 + $0x168] ss:$16 sps:$4 sm:$0xff]  }
 0x4b1   :  { %8976 = vmatpush1.bf16.msra.mxu1 %v11690_v9  ;;  %8936 = vmatprep.subr.bf16.mxu0 %v11695_v53  ;;  %v11738_v9 = vld [vmem:[#allocation13 + $0x368] ss:$16 sps:$4 sm:$0xff]   ;;  %v11743_v53 = vld [vmem:[#allocation13 + $0x18c] ss:$16 sps:$4 sm:$0xff]  }
 0x4b2   :  { %8977 = vmatprep.subr.bf16.mxu1 %v11698_v34  ;;  %v11746_v34 = vld [vmem:[#allocation13 + $0x38c] ss:$16 sps:$4 sm:$0xff]  }
 0x4b4   :  { %8937 = vmatpush1.bf16.msra.mxu0 %v11693_v10  ;;  %v11741_v10 = vld [vmem:[#allocation13 + $0x188] ss:$16 sps:$4 sm:$0xff]  }
 0x4b5   :  { %8978 = vmatpush1.bf16.msra.mxu1 %v11696_v56  ;;  %8938 = vmatprep.subr.bf16.mxu0 %v11701_v58  ;;  %v11744_v56 = vld [vmem:[#allocation13 + $0x388] ss:$16 sps:$4 sm:$0xff]   ;;  %v11749_v58 = vld [vmem:[#allocation13 + $0x1ac] ss:$16 sps:$4 sm:$0xff]  }
 0x4b6   :  { %v8634_v42 = vpop.f32.mrb[64].mxu0  ;;  %8979 = vmatprep.subr.bf16.mxu1 %v11704_v3  ;;  %v11752_v3 = vld [vmem:[#allocation13 + $0x3ac] ss:$16 sps:$4 sm:$0xff]  }
 0x4b7   :  { %v8635_v32 = vadd.f32 %v8634_v42, %v12751_v26  ;;  %v8675_v36 = vpop.f32.mrb[64].mxu1  ;;  %v8636_v51 = vpop.f32.mrb[65].mxu0  ;;  %v11716_v26 = vld [vmem:[#allocation13 + $0x2ec] ss:$16 sps:$4 sm:$0xff]  }
 0x4b8   :  { %v8637_v54 = vadd.f32 %v8636_v51, %v12753_v20  ;;  %v8677_v35 = vpop.f32.mrb[65].mxu1  ;;  %v8638_v57 = vpop.f32.mrb[66].mxu0  ;;  %8939 = vmatpush1.bf16.msra.mxu0 %v11699_v6  ;;  %v11714_v20 = vld [vmem:[#allocation13 + $0x2e8] ss:$16 sps:$4 sm:$0xff]   ;;  %v11758_v42 = vld [vmem:[#allocation13 + $0x3cc] ss:$16 sps:$4 sm:$0xff]  }
 0x4b9   :  { %v12879_v17 = vadd.f32 %v8675_v36, %v8635_v32  ;;  %v8679_v55 = vpop.f32.mrb[66].mxu1  ;;  %8980 = vmatpush1.bf16.msra.mxu1 %v11702_v33  ;;  %v8639_v16 = vpop.f32.mrb[67].mxu0  ;;  %8940 = vmatprep.subr.bf16.mxu0 %v11707_v12  ;;  %v11747_v6 = vld [vmem:[#allocation13 + $0x1a8] ss:$16 sps:$4 sm:$0xff]   ;;  %v11755_v12 = vld [vmem:[#allocation13 + $0x1cc] ss:$16 sps:$4 sm:$0xff]  }
 0x4ba   :  { %v12881_v13 = vadd.f32 %v8677_v35, %v8637_v54  ;;  %v8680_v41 = vpop.f32.mrb[67].mxu1  ;;  %8981 = vmatprep.subr.bf16.mxu1 %v11710_v45  ;;  %v11750_v33 = vld [vmem:[#allocation13 + $0x3a8] ss:$16 sps:$4 sm:$0xff]   ;;  %v11761_v36 = vld [vmem:[#allocation13 + $0x1ec] ss:$16 sps:$4 sm:$0xff]  }
 0x4bb   :  { %v11753_v45 = vld [vmem:[#allocation13 + $0x1c8] ss:$16 sps:$4 sm:$0xff]   ;;  %v11764_v51 = vld [vmem:[#allocation13 + $0x3ec] ss:$16 sps:$4 sm:$0xff]  }
 0x4bc   :  { %8941 = vmatpush1.bf16.msra.mxu0 %v11705_v7  ;;  %v11756_v32 = vld [vmem:[#allocation13 + $0x3c8] ss:$16 sps:$4 sm:$0xff]   ;;  %v11767_v57 = vld [vmem:[#allocation13 + $0x40c] ss:$16 sps:$4 sm:$0xff]  }
 0x4bd   :  { %8982 = vmatpush1.bf16.msra.mxu1 %v11708_v44  ;;  %8942 = vmatprep.subr.bf16.mxu0 %v11713_v5  ;;  %v11759_v54 = vld [vmem:[#allocation13 + $0x1e8] ss:$16 sps:$4 sm:$0xff]   ;;  %v11770_v7 = vld [vmem:[#allocation13 + $0x60c] ss:$16 sps:$4 sm:$0xff]  }
 0x4be   :  { %8983 = vmatprep.subr.bf16.mxu1 %v11716_v26  ;;  %v11762_v35 = vld [vmem:[#allocation13 + $0x3e8] ss:$16 sps:$4 sm:$0xff]   ;;  %v11773_v44 = vld [vmem:[#allocation13 + $0x42c] ss:$16 sps:$4 sm:$0xff]  }
 0x4bf   :  { %v11765_v55 = vld [vmem:[#allocation13 + $0x408] ss:$16 sps:$4 sm:$0xff]   ;;  %v11776_v5 = vld [vmem:[#allocation13 + $0x62c] ss:$16 sps:$4 sm:$0xff]  }
 0x4c0   :  { %8943 = vmatpush1.bf16.msra.mxu0 %v11711_v37  ;;  %v11768_v16 = vld [vmem:[#allocation13 + $0x608] ss:$16 sps:$4 sm:$0xff]   ;;  %v11779_v37 = vld [vmem:[#allocation13 + $0x44c] ss:$16 sps:$4 sm:$0xff]  }
 0x4c1   :  { %8984 = vmatpush1.bf16.msra.mxu1 %v11714_v20  ;;  %8944 = vmatprep.subr.bf16.mxu0 %v11719_v50  ;;  %v11771_v41 = vld [vmem:[#allocation13 + $0x428] ss:$16 sps:$4 sm:$0xff]   ;;  %v11782_v20 = vld [vmem:[#allocation13 + $0x64c] ss:$16 sps:$4 sm:$0xff]  }
 0x4c2   :  { %8985 = vmatprep.subr.bf16.mxu1 %v11722_v15  ;;  %v11774_v26 = vld [vmem:[#allocation13 + $0x628] ss:$16 sps:$4 sm:$0xff]   ;;  %v11785_v15 = vld [vmem:[#allocation13 + $0x46c] ss:$16 sps:$4 sm:$0xff]  }
 0x4c3   :  { %v11777_v50 = vld [vmem:[#allocation13 + $0x448] ss:$16 sps:$4 sm:$0xff]  }
 0x4c4   :  { %8945 = vmatpush1.bf16.msra.mxu0 %v11717_v39  ;;  %v11783_v39 = vld [vmem:[#allocation13 + $0x468] ss:$16 sps:$4 sm:$0xff]  }
 0x4c5   :  { %8986 = vmatpush1.bf16.msra.mxu1 %v11720_v1  ;;  %8946 = vmatprep.subr.bf16.mxu0 %v11725_v46  ;;  %v11791_v1 = vld [vmem:[#allocation13 + $0x48c] ss:$16 sps:$4 sm:$0xff]  }
 0x4c6   :  { %8987 = vmatprep.subr.bf16.mxu1 %v11728_v23  ;;  %v11794_v46 = vld [vmem:[#allocation13 + $0x68c] ss:$16 sps:$4 sm:$0xff]   ;;  %v11792_v23 = vld [vmem:[#allocation13 + $0x688] ss:$16 sps:$4 sm:$0xff]  }
 0x4c8   :  { %8947 = vmatpush1.bf16.msra.mxu0 %v11723_v40  ;;  %v11797_v40 = vld [vmem:[#allocation13 + $0x4ac] ss:$16 sps:$4 sm:$0xff]  }
 0x4c9   :  { %8988 = vmatpush1.bf16.msra.mxu1 %v11726_v48  ;;  %8948 = vmatprep.subr.bf16.mxu0 %v11731_v4  ;;  %v11800_v48 = vld [vmem:[#allocation13 + $0x6ac] ss:$16 sps:$4 sm:$0xff]   ;;  %v11795_v4 = vld [vmem:[#allocation13 + $0x4a8] ss:$16 sps:$4 sm:$0xff]  }
 0x4ca   :  { %8989 = vmatprep.subr.bf16.mxu1 %v11734_v22  ;;  %v11798_v22 = vld [vmem:[#allocation13 + $0x6a8] ss:$16 sps:$4 sm:$0xff]  }
 0x4cc   :  { %8949 = vmatpush1.bf16.msra.mxu0 %v11729_v52  ;;  %v11803_v52 = vld [vmem:[#allocation13 + $0x4cc] ss:$16 sps:$4 sm:$0xff]  }
 0x4cd   :  { %8990 = vmatpush1.bf16.msra.mxu1 %v11732_v29  ;;  %8950 = vmatprep.subr.bf16.mxu0 %v11737_v31  ;;  %v11806_v31 = vld [vmem:[#allocation13 + $0x6cc] ss:$16 sps:$4 sm:$0xff]  }
 0x4ce   :  { %8991 = vmatprep.subr.bf16.mxu1 %v11740_v43 }
 0x4d0   :  { %8951 = vmatpush1.bf16.msra.mxu0 %v11735_v47 }
 0x4d1   :  { %8992 = vmatpush1.bf16.msra.mxu1 %v11738_v9  ;;  %8952 = vmatprep.subr.bf16.mxu0 %v11743_v53 }
 0x4d2   :  { %8993 = vmatprep.subr.bf16.mxu1 %v11746_v34 }
 0x4d4   :  { %8953 = vmatpush1.bf16.msra.mxu0 %v11741_v10 }
 0x4d5   :  { %8994 = vmatpush1.bf16.msra.mxu1 %v11744_v56  ;;  %8954 = vmatprep.subr.bf16.mxu0 %v11749_v58  ;;  %v11801_v56 = vld [vmem:[#allocation13 + $0x4c8] ss:$16 sps:$4 sm:$0xff]  }
 0x4d6   :  { %8995 = vmatprep.subr.bf16.mxu1 %v11752_v3 }
 0x4d8   :  { %8955 = vmatpush1.bf16.msra.mxu0 %v11747_v6 }
 0x4d9   :  { %8996 = vmatpush1.bf16.msra.mxu1 %v11750_v33  ;;  %8956 = vmatprep.subr.bf16.mxu0 %v11755_v12  ;;  %v11804_v33 = vld [vmem:[#allocation13 + $0x6c8] ss:$16 sps:$4 sm:$0xff]   ;;  %v11809_v12 = vld [vmem:[#allocation13 + $0x4ec] ss:$16 sps:$4 sm:$0xff]  }
 0x4da   :  { %8997 = vmatprep.subr.bf16.mxu1 %v11758_v42 }
 0x4dc   :  { %8957 = vmatpush1.bf16.msra.mxu0 %v11753_v45 }
 0x4dd   :  { %8998 = vmatpush1.bf16.msra.mxu1 %v11756_v32  ;;  %8958 = vmatprep.subr.bf16.mxu0 %v11761_v36  ;;  %v11807_v32 = vld [vmem:[#allocation13 + $0x4e8] ss:$16 sps:$4 sm:$0xff]   ;;  %v11815_v36 = vld [vmem:[#allocation13 + $0x50c] ss:$16 sps:$4 sm:$0xff]  }
 0x4de   :  { %8999 = vmatprep.subr.bf16.mxu1 %v11764_v51  ;;  %v11818_v51 = vld [vmem:[#allocation13 + $0x70c] ss:$16 sps:$4 sm:$0xff]  }
 0x4e0   :  { %8959 = vmatpush1.bf16.msra.mxu0 %v11759_v54  ;;  %v11813_v54 = vld [vmem:[#allocation13 + $0x508] ss:$16 sps:$4 sm:$0xff]  }
 0x4e1   :  { %9000 = vmatpush1.bf16.msra.mxu1 %v11762_v35  ;;  %9010 = vmatprep.subr.bf16.mxu0 %v11767_v57  ;;  %v11816_v35 = vld [vmem:[#allocation13 + $0x708] ss:$16 sps:$4 sm:$0xff]   ;;  %v11821_v57 = vld [vmem:[#allocation13 + $0x52c] ss:$16 sps:$4 sm:$0xff]  }
 0x4e2   :  { %9051 = vmatprep.subr.bf16.mxu1 %v11770_v7  ;;  %v11824_v7 = vld [vmem:[#allocation13 + $0x72c] ss:$16 sps:$4 sm:$0xff]  }
 0x4e3   :  { %8961 = vmatmul.mubr.bf16.vlgmr.msra.gmra.mrb[80].mxu0 %v12787_v25  ;;  %v11780_v25 = vld [vmem:[#allocation13 + $0x648] ss:$16 sps:$4 sm:$0xff]  }
 0x4e4   :  { %9002 = vmatmul.mubr.bf16.vlgmr.msra.gmra.mrb[80].mxu1 %v12789_v14  ;;  %9011 = vmatpush1.bf16.msra.mxu0 %v11765_v55  ;;  %v11788_v14 = vld [vmem:[#allocation13 + $0x66c] ss:$16 sps:$4 sm:$0xff]   ;;  %v11819_v55 = vld [vmem:[#allocation13 + $0x528] ss:$16 sps:$4 sm:$0xff]  }
 0x4e5   :  { %9042 = vmatprep.mubr.bf16.mxu0 %v12791_v59  ;;  %9052 = vmatpush1.bf16.msra.mxu1 %v11768_v16  ;;  %v11786_v59 = vld [vmem:[#allocation13 + $0x668] ss:$16 sps:$4 sm:$0xff]  }
 0x4e6   :  { %9083 = vmatprep.mubr.bf16.mxu1 %v12794_v27  ;;  %9012 = vmatprep.subr.bf16.mxu0 %v11773_v44  ;;  %v11789_v27 = vld [vmem:[#allocation13 + $0x488] ss:$16 sps:$4 sm:$0xff]   ;;  %v11827_v44 = vld [vmem:[#allocation13 + $0x54c] ss:$16 sps:$4 sm:$0xff]  }
 0x4e7   :  { %9053 = vmatprep.subr.bf16.mxu1 %v11776_v5  ;;  %v11822_v16 = vld [vmem:[#allocation13 + $0x728] ss:$16 sps:$4 sm:$0xff]   ;;  %v11830_v5 = vld [vmem:[#allocation13 + $0x74c] ss:$16 sps:$4 sm:$0xff]  }
 0x4e8   :  { %9013 = vmatpush1.bf16.msra.mxu0 %v11771_v41  ;;  %v11825_v41 = vld [vmem:[#allocation13 + $0x548] ss:$16 sps:$4 sm:$0xff]  }
 0x4e9   :  { %9054 = vmatpush1.bf16.msra.mxu1 %v11774_v26  ;;  %9014 = vmatprep.subr.bf16.mxu0 %v11779_v37  ;;  %v11828_v26 = vld [vmem:[#allocation13 + $0x748] ss:$16 sps:$4 sm:$0xff]   ;;  %v11833_v37 = vld [vmem:[#allocation13 + $0x56c] ss:$16 sps:$4 sm:$0xff]  }
 0x4ea   :  { %9055 = vmatprep.subr.bf16.mxu1 %v11782_v20  ;;  %v11836_v20 = vld [vmem:[#allocation13 + $0x76c] ss:$16 sps:$4 sm:$0xff]  }
 0x4ec   :  { %9015 = vmatpush1.bf16.msra.mxu0 %v11777_v50  ;;  %v11831_v50 = vld [vmem:[#allocation13 + $0x568] ss:$16 sps:$4 sm:$0xff]  }
 0x4ed   :  { %9056 = vmatpush1.bf16.msra.mxu1 %v11780_v25  ;;  %9016 = vmatprep.subr.bf16.mxu0 %v11785_v15  ;;  %v11834_v25 = vld [vmem:[#allocation13 + $0x768] ss:$16 sps:$4 sm:$0xff]   ;;  %v11839_v15 = vld [vmem:[#allocation13 + $0x58c] ss:$16 sps:$4 sm:$0xff]  }
 0x4ee   :  { %9057 = vmatprep.subr.bf16.mxu1 %v11788_v14  ;;  %v11842_v14 = vld [vmem:[#allocation13 + $0x78c] ss:$16 sps:$4 sm:$0xff]  }
 0x4f0   :  { %9017 = vmatpush1.bf16.msra.mxu0 %v11783_v39  ;;  %v11837_v39 = vld [vmem:[#allocation13 + $0x588] ss:$16 sps:$4 sm:$0xff]  }
 0x4f1   :  { %9058 = vmatpush1.bf16.msra.mxu1 %v11786_v59  ;;  %9018 = vmatprep.subr.bf16.mxu0 %v11791_v1  ;;  %v11840_v59 = vld [vmem:[#allocation13 + $0x788] ss:$16 sps:$4 sm:$0xff]   ;;  %v11845_v1 = vld [vmem:[#allocation13 + $0x5ac] ss:$16 sps:$4 sm:$0xff]  }
 0x4f2   :  { %9059 = vmatprep.subr.bf16.mxu1 %v11794_v46  ;;  %v11848_v46 = vld [vmem:[#allocation13 + $0x7ac] ss:$16 sps:$4 sm:$0xff]  }
 0x4f4   :  { %9019 = vmatpush1.bf16.msra.mxu0 %v11789_v27  ;;  %v11843_v27 = vld [vmem:[#allocation13 + $0x5a8] ss:$16 sps:$4 sm:$0xff]  }
 0x4f5   :  { %9060 = vmatpush1.bf16.msra.mxu1 %v11792_v23  ;;  %9020 = vmatprep.subr.bf16.mxu0 %v11797_v40  ;;  %v11846_v23 = vld [vmem:[#allocation13 + $0x7a8] ss:$16 sps:$4 sm:$0xff]   ;;  %v11851_v40 = vld [vmem:[#allocation13 + $0x5cc] ss:$16 sps:$4 sm:$0xff]  }
 0x4f6   :  { %v8716_v29 = vpop.f32.mrb[68].mxu0  ;;  %9061 = vmatprep.subr.bf16.mxu1 %v11800_v48  ;;  %v11854_v48 = vld [vmem:[#allocation13 + $0x7cc] ss:$16 sps:$4 sm:$0xff]  }
 0x4f7   :  { %v8717_v43 = vadd.f32 %v8716_v29, %v12879_v17  ;;  %v8757_v47 = vpop.f32.mrb[68].mxu1  ;;  %v8718_v9 = vpop.f32.mrb[69].mxu0  ;;  %v11812_v17 = vld [vmem:[#allocation13 + $0x6ec] ss:$16 sps:$4 sm:$0xff]  }
 0x4f8   :  { %v8719_v53 = vadd.f32 %v8718_v9, %v12881_v13  ;;  %v8759_v34 = vpop.f32.mrb[69].mxu1  ;;  %v8720_v10 = vpop.f32.mrb[70].mxu0  ;;  %9021 = vmatpush1.bf16.msra.mxu0 %v11795_v4  ;;  %v11810_v13 = vld [vmem:[#allocation13 + $0x6e8] ss:$16 sps:$4 sm:$0xff]   ;;  %v11860_v29 = vld [vmem:[#allocation13 + $0x7ec] ss:$16 sps:$4 sm:$0xff]  }
 0x4f9   :  { %v12889_v58 = vadd.f32 %v8757_v47, %v8717_v43  ;;  %v8761_v3 = vpop.f32.mrb[70].mxu1  ;;  %9062 = vmatpush1.bf16.msra.mxu1 %v11798_v22  ;;  %v8721_v6 = vpop.f32.mrb[71].mxu0  ;;  %9022 = vmatprep.subr.bf16.mxu0 %v11803_v52  ;;  %v11849_v4 = vld [vmem:[#allocation13 + $0x5c8] ss:$16 sps:$4 sm:$0xff]   ;;  %v11857_v52 = vld [vmem:[#allocation13 + $0x5ec] ss:$16 sps:$4 sm:$0xff]  }
 0x4fa   :  { %v12891_v42 = vadd.f32 %v8759_v34, %v8719_v53  ;;  %v8762_v45 = vpop.f32.mrb[71].mxu1  ;;  %9063 = vmatprep.subr.bf16.mxu1 %v11806_v31  ;;  %v11852_v22 = vld [vmem:[#allocation13 + $0x7c8] ss:$16 sps:$4 sm:$0xff]   ;;  %v11863_v47 = vld [vmem:[#allocation13 + $0x80c] ss:$16 sps:$4 sm:$0xff]  }
 0x4fb   :  { %v11855_v31 = vld [vmem:[#allocation13 + $0x5e8] ss:$16 sps:$4 sm:$0xff]   ;;  %v11866_v9 = vld [vmem:[#allocation13 + $0xa0c] ss:$16 sps:$4 sm:$0xff]  }
 0x4fc   :  { %9023 = vmatpush1.bf16.msra.mxu0 %v11801_v56  ;;  %v11858_v43 = vld [vmem:[#allocation13 + $0x7e8] ss:$16 sps:$4 sm:$0xff]   ;;  %v11869_v10 = vld [vmem:[#allocation13 + $0x82c] ss:$16 sps:$4 sm:$0xff]  }
 0x4fd   :  { %9064 = vmatpush1.bf16.msra.mxu1 %v11804_v33  ;;  %9024 = vmatprep.subr.bf16.mxu0 %v11809_v12  ;;  %v11861_v53 = vld [vmem:[#allocation13 + $0x808] ss:$16 sps:$4 sm:$0xff]   ;;  %v11872_v56 = vld [vmem:[#allocation13 + $0xa2c] ss:$16 sps:$4 sm:$0xff]  }
 0x4fe   :  { %9065 = vmatprep.subr.bf16.mxu1 %v11812_v17  ;;  %v11864_v34 = vld [vmem:[#allocation13 + $0xa08] ss:$16 sps:$4 sm:$0xff]   ;;  %v11875_v33 = vld [vmem:[#allocation13 + $0x84c] ss:$16 sps:$4 sm:$0xff]  }
 0x4ff   :  { %v11867_v3 = vld [vmem:[#allocation13 + $0x828] ss:$16 sps:$4 sm:$0xff]   ;;  %v11878_v12 = vld [vmem:[#allocation13 + $0xa4c] ss:$16 sps:$4 sm:$0xff]  }
 0x500   :  { %9025 = vmatpush1.bf16.msra.mxu0 %v11807_v32  ;;  %v11870_v6 = vld [vmem:[#allocation13 + $0xa28] ss:$16 sps:$4 sm:$0xff]   ;;  %v11881_v17 = vld [vmem:[#allocation13 + $0x86c] ss:$16 sps:$4 sm:$0xff]  }
 0x501   :  { %9066 = vmatpush1.bf16.msra.mxu1 %v11810_v13  ;;  %9026 = vmatprep.subr.bf16.mxu0 %v11815_v36  ;;  %v11873_v45 = vld [vmem:[#allocation13 + $0x848] ss:$16 sps:$4 sm:$0xff]   ;;  %v11887_v13 = vld [vmem:[#allocation13 + $0x88c] ss:$16 sps:$4 sm:$0xff]  }
 0x502   :  { %9067 = vmatprep.subr.bf16.mxu1 %v11818_v51  ;;  %v11879_v32 = vld [vmem:[#allocation13 + $0x868] ss:$16 sps:$4 sm:$0xff]   ;;  %v11890_v36 = vld [vmem:[#allocation13 + $0xa8c] ss:$16 sps:$4 sm:$0xff]  }
 0x503   :  { %v11888_v51 = vld [vmem:[#allocation13 + $0xa88] ss:$16 sps:$4 sm:$0xff]  }
 0x504   :  { %9027 = vmatpush1.bf16.msra.mxu0 %v11813_v54  ;;  %v11893_v54 = vld [vmem:[#allocation13 + $0x8ac] ss:$16 sps:$4 sm:$0xff]  }
 0x505   :  { %9068 = vmatpush1.bf16.msra.mxu1 %v11816_v35  ;;  %9028 = vmatprep.subr.bf16.mxu0 %v11821_v57  ;;  %v11896_v35 = vld [vmem:[#allocation13 + $0xaac] ss:$16 sps:$4 sm:$0xff]   ;;  %v11891_v57 = vld [vmem:[#allocation13 + $0x8a8] ss:$16 sps:$4 sm:$0xff]  }
 0x506   :  { %9069 = vmatprep.subr.bf16.mxu1 %v11824_v7  ;;  %v11894_v7 = vld [vmem:[#allocation13 + $0xaa8] ss:$16 sps:$4 sm:$0xff]  }
 0x508   :  { %9029 = vmatpush1.bf16.msra.mxu0 %v11819_v55  ;;  %v11899_v55 = vld [vmem:[#allocation13 + $0x8cc] ss:$16 sps:$4 sm:$0xff]  }
 0x509   :  { %9070 = vmatpush1.bf16.msra.mxu1 %v11822_v16  ;;  %9030 = vmatprep.subr.bf16.mxu0 %v11827_v44  ;;  %v11902_v44 = vld [vmem:[#allocation13 + $0xacc] ss:$16 sps:$4 sm:$0xff]  }
 0x50a   :  { %9071 = vmatprep.subr.bf16.mxu1 %v11830_v5 }
 0x50c   :  { %9031 = vmatpush1.bf16.msra.mxu0 %v11825_v41 }
 0x50d   :  { %9072 = vmatpush1.bf16.msra.mxu1 %v11828_v26  ;;  %9032 = vmatprep.subr.bf16.mxu0 %v11833_v37 }
 0x50e   :  { %9073 = vmatprep.subr.bf16.mxu1 %v11836_v20 }
 0x510   :  { %9033 = vmatpush1.bf16.msra.mxu0 %v11831_v50 }
 0x511   :  { %9074 = vmatpush1.bf16.msra.mxu1 %v11834_v25  ;;  %9034 = vmatprep.subr.bf16.mxu0 %v11839_v15  ;;  %v11897_v25 = vld [vmem:[#allocation13 + $0x8c8] ss:$16 sps:$4 sm:$0xff]  }
 0x512   :  { %9075 = vmatprep.subr.bf16.mxu1 %v11842_v14 }
 0x514   :  { %9035 = vmatpush1.bf16.msra.mxu0 %v11837_v39 }
 0x515   :  { %9076 = vmatpush1.bf16.msra.mxu1 %v11840_v59  ;;  %9036 = vmatprep.subr.bf16.mxu0 %v11845_v1  ;;  %v11900_v59 = vld [vmem:[#allocation13 + $0xac8] ss:$16 sps:$4 sm:$0xff]   ;;  %v11905_v1 = vld [vmem:[#allocation13 + $0x8ec] ss:$16 sps:$4 sm:$0xff]  }
 0x516   :  { %9077 = vmatprep.subr.bf16.mxu1 %v11848_v46 }
 0x518   :  { %9037 = vmatpush1.bf16.msra.mxu0 %v11843_v27 }
 0x519   :  { %9078 = vmatpush1.bf16.msra.mxu1 %v11846_v23  ;;  %9038 = vmatprep.subr.bf16.mxu0 %v11851_v40  ;;  %v11903_v23 = vld [vmem:[#allocation13 + $0x8e8] ss:$16 sps:$4 sm:$0xff]   ;;  %v11911_v40 = vld [vmem:[#allocation13 + $0x90c] ss:$16 sps:$4 sm:$0xff]  }
 0x51a   :  { %9079 = vmatprep.subr.bf16.mxu1 %v11854_v48  ;;  %v11914_v48 = vld [vmem:[#allocation13 + $0xb0c] ss:$16 sps:$4 sm:$0xff]  }
 0x51c   :  { %9039 = vmatpush1.bf16.msra.mxu0 %v11849_v4  ;;  %v11909_v4 = vld [vmem:[#allocation13 + $0x908] ss:$16 sps:$4 sm:$0xff]  }
 0x51d   :  { %9080 = vmatpush1.bf16.msra.mxu1 %v11852_v22  ;;  %9040 = vmatprep.subr.bf16.mxu0 %v11857_v52  ;;  %v11912_v22 = vld [vmem:[#allocation13 + $0xb08] ss:$16 sps:$4 sm:$0xff]   ;;  %v11917_v52 = vld [vmem:[#allocation13 + $0x92c] ss:$16 sps:$4 sm:$0xff]  }
 0x51e   :  { %9081 = vmatprep.subr.bf16.mxu1 %v11860_v29  ;;  %v11920_v29 = vld [vmem:[#allocation13 + $0xb2c] ss:$16 sps:$4 sm:$0xff]  }
 0x520   :  { %9041 = vmatpush1.bf16.msra.mxu0 %v11855_v31  ;;  %v11915_v31 = vld [vmem:[#allocation13 + $0x928] ss:$16 sps:$4 sm:$0xff]  }
 0x521   :  { %9082 = vmatpush1.bf16.msra.mxu1 %v11858_v43  ;;  %9092 = vmatprep.subr.bf16.mxu0 %v11863_v47  ;;  %v11918_v43 = vld [vmem:[#allocation13 + $0xb28] ss:$16 sps:$4 sm:$0xff]   ;;  %v11923_v47 = vld [vmem:[#allocation13 + $0x94c] ss:$16 sps:$4 sm:$0xff]  }
 0x522   :  { %9133 = vmatprep.subr.bf16.mxu1 %v11866_v9  ;;  %v11926_v9 = vld [vmem:[#allocation13 + $0xb4c] ss:$16 sps:$4 sm:$0xff]  }
 0x523   :  { %9043 = vmatmul.mubr.bf16.vlgmr.msra.gmra.mrb[84].mxu0 %v12819_v19  ;;  %v11876_v19 = vld [vmem:[#allocation13 + $0xa48] ss:$16 sps:$4 sm:$0xff]  }
 0x524   :  { %9084 = vmatmul.mubr.bf16.vlgmr.msra.gmra.mrb[84].mxu1 %v12821_v21  ;;  %9093 = vmatpush1.bf16.msra.mxu0 %v11861_v53  ;;  %v11884_v21 = vld [vmem:[#allocation13 + $0xa6c] ss:$16 sps:$4 sm:$0xff]   ;;  %v11921_v53 = vld [vmem:[#allocation13 + $0x948] ss:$16 sps:$4 sm:$0xff]  }
 0x525   :  { %9124 = vmatprep.mubr.bf16.mxu0 %v12823_v49  ;;  %9134 = vmatpush1.bf16.msra.mxu1 %v11864_v34  ;;  %v11882_v49 = vld [vmem:[#allocation13 + $0xa68] ss:$16 sps:$4 sm:$0xff]  }
 0x526   :  { %9165 = vmatprep.mubr.bf16.mxu1 %v12826_v18  ;;  %9094 = vmatprep.subr.bf16.mxu0 %v11869_v10  ;;  %v11885_v18 = vld [vmem:[#allocation13 + $0x888] ss:$16 sps:$4 sm:$0xff]   ;;  %v11929_v10 = vld [vmem:[#allocation13 + $0x96c] ss:$16 sps:$4 sm:$0xff]  }
 0x527   :  { %9135 = vmatprep.subr.bf16.mxu1 %v11872_v56  ;;  %v11924_v34 = vld [vmem:[#allocation13 + $0xb48] ss:$16 sps:$4 sm:$0xff]   ;;  %v11932_v56 = vld [vmem:[#allocation13 + $0xb6c] ss:$16 sps:$4 sm:$0xff]  }
 0x528   :  { %9095 = vmatpush1.bf16.msra.mxu0 %v11867_v3  ;;  %v11927_v3 = vld [vmem:[#allocation13 + $0x968] ss:$16 sps:$4 sm:$0xff]  }
 0x529   :  { %9136 = vmatpush1.bf16.msra.mxu1 %v11870_v6  ;;  %9096 = vmatprep.subr.bf16.mxu0 %v11875_v33  ;;  %v11930_v6 = vld [vmem:[#allocation13 + $0xb68] ss:$16 sps:$4 sm:$0xff]   ;;  %v11935_v33 = vld [vmem:[#allocation13 + $0x98c] ss:$16 sps:$4 sm:$0xff]  }
 0x52a   :  { %9137 = vmatprep.subr.bf16.mxu1 %v11878_v12  ;;  %v11938_v12 = vld [vmem:[#allocation13 + $0xb8c] ss:$16 sps:$4 sm:$0xff]  }
 0x52c   :  { %9097 = vmatpush1.bf16.msra.mxu0 %v11873_v45  ;;  %v11933_v45 = vld [vmem:[#allocation13 + $0x988] ss:$16 sps:$4 sm:$0xff]  }
 0x52d   :  { %9138 = vmatpush1.bf16.msra.mxu1 %v11876_v19  ;;  %9098 = vmatprep.subr.bf16.mxu0 %v11881_v17  ;;  %v11936_v19 = vld [vmem:[#allocation13 + $0xb88] ss:$16 sps:$4 sm:$0xff]   ;;  %v11941_v17 = vld [vmem:[#allocation13 + $0x9ac] ss:$16 sps:$4 sm:$0xff]  }
 0x52e   :  { %9139 = vmatprep.subr.bf16.mxu1 %v11884_v21  ;;  %v11944_v21 = vld [vmem:[#allocation13 + $0xbac] ss:$16 sps:$4 sm:$0xff]  }
 0x530   :  { %9099 = vmatpush1.bf16.msra.mxu0 %v11879_v32  ;;  %v11939_v32 = vld [vmem:[#allocation13 + $0x9a8] ss:$16 sps:$4 sm:$0xff]  }
 0x531   :  { %9140 = vmatpush1.bf16.msra.mxu1 %v11882_v49  ;;  %9100 = vmatprep.subr.bf16.mxu0 %v11887_v13  ;;  %v11942_v49 = vld [vmem:[#allocation13 + $0xba8] ss:$16 sps:$4 sm:$0xff]   ;;  %v11947_v13 = vld [vmem:[#allocation13 + $0x9cc] ss:$16 sps:$4 sm:$0xff]  }
 0x532   :  { %9141 = vmatprep.subr.bf16.mxu1 %v11890_v36  ;;  %v11950_v36 = vld [vmem:[#allocation13 + $0xbcc] ss:$16 sps:$4 sm:$0xff]  }
 0x534   :  { %9101 = vmatpush1.bf16.msra.mxu0 %v11885_v18  ;;  %v11945_v18 = vld [vmem:[#allocation13 + $0x9c8] ss:$16 sps:$4 sm:$0xff]  }
 0x535   :  { %9142 = vmatpush1.bf16.msra.mxu1 %v11888_v51  ;;  %9102 = vmatprep.subr.bf16.mxu0 %v11893_v54  ;;  %v11948_v51 = vld [vmem:[#allocation13 + $0xbc8] ss:$16 sps:$4 sm:$0xff]   ;;  %v11953_v54 = vld [vmem:[#allocation13 + $0x9ec] ss:$16 sps:$4 sm:$0xff]  }
 0x536   :  { %v8798_v16 = vpop.f32.mrb[72].mxu0  ;;  %9143 = vmatprep.subr.bf16.mxu1 %v11896_v35  ;;  %v11956_v35 = vld [vmem:[#allocation13 + $0xbec] ss:$16 sps:$4 sm:$0xff]  }
 0x537   :  { %v8799_v5 = vadd.f32 %v8798_v16, %v12889_v58  ;;  %v8839_v41 = vpop.f32.mrb[72].mxu1  ;;  %v8800_v26 = vpop.f32.mrb[73].mxu0  ;;  %v11908_v58 = vld [vmem:[#allocation13 + $0xaec] ss:$16 sps:$4 sm:$0xff]  }
 0x538   :  { %v8801_v37 = vadd.f32 %v8800_v26, %v12891_v42  ;;  %v8841_v20 = vpop.f32.mrb[73].mxu1  ;;  %v8802_v50 = vpop.f32.mrb[74].mxu0  ;;  %9103 = vmatpush1.bf16.msra.mxu0 %v11891_v57  ;;  %v11906_v42 = vld [vmem:[#allocation13 + $0xae8] ss:$16 sps:$4 sm:$0xff]   ;;  %v11962_v16 = vld [vmem:[#allocation13 + $0xe0c] ss:$16 sps:$4 sm:$0xff]  }
 0x539   :  { %v12899_v15 = vadd.f32 %v8839_v41, %v8799_v5  ;;  %v8843_v14 = vpop.f32.mrb[74].mxu1  ;;  %9144 = vmatpush1.bf16.msra.mxu1 %v11894_v7  ;;  %v8803_v39 = vpop.f32.mrb[75].mxu0  ;;  %9104 = vmatprep.subr.bf16.mxu0 %v11899_v55  ;;  %v11951_v57 = vld [vmem:[#allocation13 + $0x9e8] ss:$16 sps:$4 sm:$0xff]   ;;  %v11959_v55 = vld [vmem:[#allocation13 + $0xc0c] ss:$16 sps:$4 sm:$0xff]  }
 0x53a   :  { %v12901_v46 = vadd.f32 %v8841_v20, %v8801_v37  ;;  %v8844_v27 = vpop.f32.mrb[75].mxu1  ;;  %9145 = vmatprep.subr.bf16.mxu1 %v11902_v44  ;;  %v11954_v7 = vld [vmem:[#allocation13 + $0xbe8] ss:$16 sps:$4 sm:$0xff]   ;;  %v11965_v41 = vld [vmem:[#allocation13 + $0xc2c] ss:$16 sps:$4 sm:$0xff]  }
 0x53b   :  { %v11957_v44 = vld [vmem:[#allocation13 + $0xc08] ss:$16 sps:$4 sm:$0xff]   ;;  %v11968_v26 = vld [vmem:[#allocation13 + $0xe2c] ss:$16 sps:$4 sm:$0xff]  }
 0x53c   :  { %9105 = vmatpush1.bf16.msra.mxu0 %v11897_v25  ;;  %v11960_v5 = vld [vmem:[#allocation13 + $0xe08] ss:$16 sps:$4 sm:$0xff]   ;;  %v11971_v50 = vld [vmem:[#allocation13 + $0xc4c] ss:$16 sps:$4 sm:$0xff]  }
 0x53d   :  { %9146 = vmatpush1.bf16.msra.mxu1 %v11900_v59  ;;  %9106 = vmatprep.subr.bf16.mxu0 %v11905_v1  ;;  %v11963_v37 = vld [vmem:[#allocation13 + $0xc28] ss:$16 sps:$4 sm:$0xff]   ;;  %v11974_v25 = vld [vmem:[#allocation13 + $0xe4c] ss:$16 sps:$4 sm:$0xff]  }
 0x53e   :  { %9147 = vmatprep.subr.bf16.mxu1 %v11908_v58  ;;  %v11966_v20 = vld [vmem:[#allocation13 + $0xe28] ss:$16 sps:$4 sm:$0xff]   ;;  %v11977_v39 = vld [vmem:[#allocation13 + $0xc6c] ss:$16 sps:$4 sm:$0xff]  }
 0x53f   :  { %v11969_v14 = vld [vmem:[#allocation13 + $0xc48] ss:$16 sps:$4 sm:$0xff]   ;;  %v11983_v1 = vld [vmem:[#allocation13 + $0xc8c] ss:$16 sps:$4 sm:$0xff]  }
 0x540   :  { %9107 = vmatpush1.bf16.msra.mxu0 %v11903_v23  ;;  %v11975_v59 = vld [vmem:[#allocation13 + $0xc68] ss:$16 sps:$4 sm:$0xff]   ;;  %v11986_v27 = vld [vmem:[#allocation13 + $0xe8c] ss:$16 sps:$4 sm:$0xff]  }
 0x541   :  { %9148 = vmatpush1.bf16.msra.mxu1 %v11906_v42  ;;  %9108 = vmatprep.subr.bf16.mxu0 %v11911_v40  ;;  %v11984_v58 = vld [vmem:[#allocation13 + $0xe88] ss:$16 sps:$4 sm:$0xff]   ;;  %v11989_v23 = vld [vmem:[#allocation13 + $0xcac] ss:$16 sps:$4 sm:$0xff]   ;;  %v12907_v40 = vld [vmem:[#allocation16] sm:$0xf] }
 0x542   :  { %9149 = vmatprep.subr.bf16.mxu1 %v11914_v48  ;;  %v11992_v42 = vld [vmem:[#allocation13 + $0xeac] ss:$16 sps:$4 sm:$0xff]   ;;  %v11987_v48 = vld [vmem:[#allocation13 + $0xca8] ss:$16 sps:$4 sm:$0xff]  }
 0x544   :  { %9109 = vmatpush1.bf16.msra.mxu0 %v11909_v4  ;;  %v11990_v4 = vld [vmem:[#allocation13 + $0xea8] ss:$16 sps:$4 sm:$0xff]  }
 0x545   :  { %9150 = vmatpush1.bf16.msra.mxu1 %v11912_v22  ;;  %9110 = vmatprep.subr.bf16.mxu0 %v11917_v52  ;;  %v11995_v22 = vld [vmem:[#allocation13 + $0xccc] ss:$16 sps:$4 sm:$0xff]  }
 0x546   :  { %9151 = vmatprep.subr.bf16.mxu1 %v11920_v29  ;;  %v12909_v29 = vld [vmem:[#allocation17] sm:$0xf] }
 0x548   :  { %9111 = vmatpush1.bf16.msra.mxu0 %v11915_v31  ;;  %v11998_v31 = vld [vmem:[#allocation13 + $0xecc] ss:$16 sps:$4 sm:$0xff]  }
 0x549   :  { %9152 = vmatpush1.bf16.msra.mxu1 %v11918_v43  ;;  %9112 = vmatprep.subr.bf16.mxu0 %v11923_v47 }
 0x54a   :  { %9153 = vmatprep.subr.bf16.mxu1 %v11926_v9  ;;  %v9261_v9 = vrot.slane %v12907_v40, %v12595_v61 }
 0x54c   :  { %9113 = vmatpush1.bf16.msra.mxu0 %v11921_v53 }
 0x54d   :  { %9154 = vmatpush1.bf16.msra.mxu1 %v11924_v34  ;;  %9114 = vmatprep.subr.bf16.mxu0 %v11929_v10 }
 0x54e   :  { %9155 = vmatprep.subr.bf16.mxu1 %v11932_v56  ;;  %v9265_v56 = vrot.slane %v12907_v40, %v12599_v63 }
 0x550   :  { %9115 = vmatpush1.bf16.msra.mxu0 %v11927_v3 }
 0x551   :  { %9156 = vmatpush1.bf16.msra.mxu1 %v11930_v6  ;;  %9116 = vmatprep.subr.bf16.mxu0 %v11935_v33  ;;  %v11993_v6 = vld [vmem:[#allocation13 + $0xcc8] ss:$16 sps:$4 sm:$0xff]  }
 0x552   :  { %9157 = vmatprep.subr.bf16.mxu1 %v11938_v12  ;;  %v9287_v12 = vrot.slane %v12909_v29, %v12595_v61  ;;  %v12002_v61 = vld [vmem:[#allocation13 + $0xee8] ss:$16 sps:$4 sm:$0xff]  }
 0x554   :  { %9117 = vmatpush1.bf16.msra.mxu0 %v11933_v45 }
 0x555   :  { %9158 = vmatpush1.bf16.msra.mxu1 %v11936_v19  ;;  %9118 = vmatprep.subr.bf16.mxu0 %v11941_v17  ;;  %v11996_v19 = vld [vmem:[#allocation13 + $0xec8] ss:$16 sps:$4 sm:$0xff]   ;;  %v12001_v17 = vld [vmem:[#allocation13 + $0xcec] ss:$16 sps:$4 sm:$0xff]  }
 0x556   :  { %9159 = vmatprep.subr.bf16.mxu1 %v11944_v21 }
 0x558   :  { %9119 = vmatpush1.bf16.msra.mxu0 %v11939_v32 }
 0x559   :  { %9160 = vmatpush1.bf16.msra.mxu1 %v11942_v49  ;;  %9120 = vmatprep.subr.bf16.mxu0 %v11947_v13  ;;  %v12004_v49 = vld [vmem:[#allocation13 + $0xeec] ss:$16 sps:$4 sm:$0xff]  }
 0x55a   :  { %9161 = vmatprep.subr.bf16.mxu1 %v11950_v36 }
 0x55c   :  { %9121 = vmatpush1.bf16.msra.mxu0 %v11945_v18  ;;  %v11999_v18 = vld [vmem:[#allocation13 + $0xce8] ss:$16 sps:$4 sm:$0xff]  }
 0x55d   :  { %9162 = vmatpush1.bf16.msra.mxu1 %v11948_v51  ;;  %9122 = vmatprep.subr.bf16.mxu0 %v11953_v54  ;;  %v12007_v54 = vld [vmem:[#allocation13 + $0xd0c] ss:$16 sps:$4 sm:$0xff]  }
 0x55e   :  { %9163 = vmatprep.subr.bf16.mxu1 %v11956_v35 }
 0x560   :  { %9123 = vmatpush1.bf16.msra.mxu0 %v11951_v57  ;;  %v12010_v57 = vld [vmem:[#allocation13 + $0xf0c] ss:$16 sps:$4 sm:$0xff]  }
 0x561   :  { %9164 = vmatpush1.bf16.msra.mxu1 %v11954_v7  ;;  %9174 = vmatprep.subr.bf16.mxu0 %v11959_v55  ;;  %v12005_v7 = vld [vmem:[#allocation13 + $0xd08] ss:$16 sps:$4 sm:$0xff]  }
 0x562   :  { %9215 = vmatprep.subr.bf16.mxu1 %v11962_v16  ;;  %v12013_v16 = vld [vmem:[#allocation13 + $0xd2c] ss:$16 sps:$4 sm:$0xff]  }
 0x563   :  { %9125 = vmatmul.mubr.bf16.vlgmr.msra.gmra.mrb[88].mxu0 %v12843_v11  ;;  %v11972_v11 = vld [vmem:[#allocation13 + $0xe48] ss:$16 sps:$4 sm:$0xff]  }
 0x564   :  { %9166 = vmatmul.mubr.bf16.vlgmr.msra.gmra.mrb[88].mxu1 %v12845_v2  ;;  %9175 = vmatpush1.bf16.msra.mxu0 %v11957_v44  ;;  %v11980_v2 = vld [vmem:[#allocation13 + $0xe6c] ss:$16 sps:$4 sm:$0xff]  }
 0x565   :  { %9206 = vmatprep.mubr.bf16.mxu0 %v12849_v28  ;;  %9216 = vmatpush1.bf16.msra.mxu1 %v11960_v5  ;;  %v11978_v28 = vld [vmem:[#allocation13 + $0xe68] ss:$16 sps:$4 sm:$0xff]   ;;  %v12016_v44 = vld [vmem:[#allocation13 + $0xf2c] ss:$16 sps:$4 sm:$0xff]  }
 0x566   :  { %9247 = vmatprep.mubr.bf16.mxu1 %v12854_v30  ;;  %9176 = vmatprep.subr.bf16.mxu0 %v11965_v41  ;;  %v11981_v30 = vld [vmem:[#allocation13 + $0xc88] ss:$16 sps:$4 sm:$0xff]  }
 0x567   :  { %9217 = vmatprep.subr.bf16.mxu1 %v11968_v26  ;;  %v12011_v5 = vld [vmem:[#allocation13 + $0xd28] ss:$16 sps:$4 sm:$0xff]   ;;  %v12019_v26 = vld [vmem:[#allocation13 + $0xd4c] ss:$16 sps:$4 sm:$0xff]  }
 0x568   :  { %9177 = vmatpush1.bf16.msra.mxu0 %v11963_v37  ;;  %v12014_v41 = vld [vmem:[#allocation13 + $0xf28] ss:$16 sps:$4 sm:$0xff]   ;;  %v12022_v37 = vld [vmem:[#allocation13 + $0xf4c] ss:$16 sps:$4 sm:$0xff]  }
 0x569   :  { %9218 = vmatpush1.bf16.msra.mxu1 %v11966_v20  ;;  %9178 = vmatprep.subr.bf16.mxu0 %v11971_v50  ;;  %v12017_v20 = vld [vmem:[#allocation13 + $0xd48] ss:$16 sps:$4 sm:$0xff]  }
 0x56a   :  { %9219 = vmatprep.subr.bf16.mxu1 %v11974_v25  ;;  %v12020_v50 = vld [vmem:[#allocation13 + $0xf48] ss:$16 sps:$4 sm:$0xff]   ;;  %v12025_v25 = vld [vmem:[#allocation13 + $0xd6c] ss:$16 sps:$4 sm:$0xff]  }
 0x56c   :  { %9179 = vmatpush1.bf16.msra.mxu0 %v11969_v14  ;;  %v12028_v14 = vld [vmem:[#allocation13 + $0xf6c] ss:$16 sps:$4 sm:$0xff]  }
 0x56d   :  { %9220 = vmatpush1.bf16.msra.mxu1 %v11972_v11  ;;  %9180 = vmatprep.subr.bf16.mxu0 %v11977_v39  ;;  %v12023_v11 = vld [vmem:[#allocation13 + $0xd68] ss:$16 sps:$4 sm:$0xff]  }
 0x56e   :  { %9221 = vmatprep.subr.bf16.mxu1 %v11980_v2  ;;  %v12026_v39 = vld [vmem:[#allocation13 + $0xf68] ss:$16 sps:$4 sm:$0xff]   ;;  %v12031_v2 = vld [vmem:[#allocation13 + $0xd8c] ss:$16 sps:$4 sm:$0xff]  }
 0x570   :  { %9181 = vmatpush1.bf16.msra.mxu0 %v11975_v59  ;;  %v12034_v59 = vld [vmem:[#allocation13 + $0xf8c] ss:$16 sps:$4 sm:$0xff]  }
 0x571   :  { %9222 = vmatpush1.bf16.msra.mxu1 %v11978_v28  ;;  %9182 = vmatprep.subr.bf16.mxu0 %v11983_v1  ;;  %v12029_v28 = vld [vmem:[#allocation13 + $0xd88] ss:$16 sps:$4 sm:$0xff]  }
 0x572   :  { %9223 = vmatprep.subr.bf16.mxu1 %v11986_v27  ;;  %v12032_v1 = vld [vmem:[#allocation13 + $0xf88] ss:$16 sps:$4 sm:$0xff]   ;;  %v12037_v27 = vld [vmem:[#allocation13 + $0xdac] ss:$16 sps:$4 sm:$0xff]  }
 0x574   :  { %9183 = vmatpush1.bf16.msra.mxu0 %v11981_v30  ;;  %v12040_v30 = vld [vmem:[#allocation13 + $0xfac] ss:$16 sps:$4 sm:$0xff]  }
 0x575   :  { %9224 = vmatpush1.bf16.msra.mxu1 %v11984_v58  ;;  %9184 = vmatprep.subr.bf16.mxu0 %v11989_v23  ;;  %v12035_v58 = vld [vmem:[#allocation13 + $0xda8] ss:$16 sps:$4 sm:$0xff]  }
 0x576   :  { %v8880_v52 = vpop.f32.mrb[76].mxu0  ;;  %9225 = vmatprep.subr.bf16.mxu1 %v11992_v42  ;;  %v12038_v23 = vld [vmem:[#allocation13 + $0xfa8] ss:$16 sps:$4 sm:$0xff]   ;;  %v12043_v42 = vld [vmem:[#allocation13 + $0xdcc] ss:$16 sps:$4 sm:$0xff]  }
 0x577   :  { %v8881_v43 = vadd.f32 %v8880_v52, %v12899_v15  ;;  %v8921_v47 = vpop.f32.mrb[76].mxu1  ;;  %v8882_v53 = vpop.f32.mrb[77].mxu0  ;;  %v12049_v52 = vld [vmem:[#allocation13 + $0xdec] ss:$16 sps:$4 sm:$0xff]  }
 0x578   :  { %v8883_v34 = vadd.f32 %v8882_v53, %v12901_v46  ;;  %v8923_v10 = vpop.f32.mrb[77].mxu1  ;;  %v8884_v3 = vpop.f32.mrb[78].mxu0  ;;  %9185 = vmatpush1.bf16.msra.mxu0 %v11987_v48  ;;  %v9291_v46 = vrot.slane %v12909_v29, %v12599_v63  ;;  %v12008_v63 = vld [vmem:[#allocation13 + $0xf08] ss:$16 sps:$4 sm:$0xff]   ;;  %v12046_v48 = vld [vmem:[#allocation13 + $0xfcc] ss:$16 sps:$4 sm:$0xff]  }
 0x579   :  { %v8922_v33 = vadd.f32 %v8921_v47, %v8881_v43  ;;  %v8925_v45 = vpop.f32.mrb[78].mxu1  ;;  %9226 = vmatpush1.bf16.msra.mxu1 %v11990_v4  ;;  %v8885_v15 = vpop.f32.mrb[79].mxu0  ;;  %9186 = vmatprep.subr.bf16.mxu0 %v11995_v22  ;;  %v12041_v4 = vld [vmem:[#allocation13 + $0xdc8] ss:$16 sps:$4 sm:$0xff]  }
 0x57a   :  { %v8924_v21 = vadd.f32 %v8923_v10, %v8883_v34  ;;  %v8926_v32 = vpop.f32.mrb[79].mxu1  ;;  %9227 = vmatprep.subr.bf16.mxu1 %v11998_v31  ;;  %v12044_v22 = vld [vmem:[#allocation13 + $0xfc8] ss:$16 sps:$4 sm:$0xff]   ;;  %v12052_v31 = vld [vmem:[#allocation13 + $0xfec] ss:$16 sps:$4 sm:$0xff]  }
 0x57b   :  { %v9278_v13 = vadd.f32 %v9261_v9, %v8922_v33  ;;  %v12047_v43 = vld [vmem:[#allocation13 + $0xde8] ss:$16 sps:$4 sm:$0xff]  }
 0x57c   :  { %v9279_v36 = vadd.f32 %v9265_v56, %v8924_v21  ;;  %9187 = vmatpush1.bf16.msra.mxu0 %v11993_v6  ;;  %v12050_v47 = vld [vmem:[#allocation13 + $0xfe8] ss:$16 sps:$4 sm:$0xff]  }
 0x57d   :  { %v9304_v51 = vmul.f32 %v9287_v12, %v9278_v13  ;;  %9228 = vmatpush1.bf16.msra.mxu1 %v11996_v19  ;;  %9188 = vmatprep.subr.bf16.mxu0 %v12001_v17 }
 0x57e   :  { %v9305_v35 = vmul.f32 %v9291_v46, %v9279_v36  ;;  %9229 = vmatprep.subr.bf16.mxu1 %v12004_v49 }
 0x580   :  { %9189 = vmatpush1.bf16.msra.mxu0 %v11999_v18  ;;  %v12921_v55 = vadd.f32 %v9305_v35, %v9304_v51 }
 0x581   :  { %9230 = vmatpush1.bf16.msra.mxu1 %v12002_v61  ;;  %9190 = vmatprep.subr.bf16.mxu0 %v12007_v54 }
 0x582   :  { %9231 = vmatprep.subr.bf16.mxu1 %v12010_v57 }
 0x584   :  { %9191 = vmatpush1.bf16.msra.mxu0 %v12005_v7 }
 0x585   :  { %9232 = vmatpush1.bf16.msra.mxu1 %v12008_v63  ;;  %9192 = vmatprep.subr.bf16.mxu0 %v12013_v16 }
 0x586   :  { %9233 = vmatprep.subr.bf16.mxu1 %v12016_v44 }
 0x588   :  { %9193 = vmatpush1.bf16.msra.mxu0 %v12011_v5 }
 0x589   :  { %9234 = vmatpush1.bf16.msra.mxu1 %v12014_v41  ;;  %9194 = vmatprep.subr.bf16.mxu0 %v12019_v26 }
 0x58a   :  { %9235 = vmatprep.subr.bf16.mxu1 %v12022_v37 }
 0x58c   :  { %9195 = vmatpush1.bf16.msra.mxu0 %v12017_v20 }
 0x58d   :  { %9236 = vmatpush1.bf16.msra.mxu1 %v12020_v50  ;;  %9196 = vmatprep.subr.bf16.mxu0 %v12025_v25  ;;  %v9269_v25 = vrot.slane %v12907_v40, %v12597_v62 }
 0x58e   :  { %9237 = vmatprep.subr.bf16.mxu1 %v12028_v14 }
 0x590   :  { %9197 = vmatpush1.bf16.msra.mxu0 %v12023_v11 }
 0x591   :  { %9238 = vmatpush1.bf16.msra.mxu1 %v12026_v39  ;;  %9198 = vmatprep.subr.bf16.mxu0 %v12031_v2  ;;  %v9273_v2 = vrot.slane %v12907_v40, %v12601_v0  ;;  %v10501_v40 = vld [vmem:[#allocation2] ss:$0 sm:$0xff] }
 0x592   :  { %9239 = vmatprep.subr.bf16.mxu1 %v12034_v59 }
 0x594   :  { %9199 = vmatpush1.bf16.msra.mxu0 %v12029_v28 }
 0x595   :  { %9240 = vmatpush1.bf16.msra.mxu1 %v12032_v1  ;;  %9200 = vmatprep.subr.bf16.mxu0 %v12037_v27 }
 0x596   :  { %9241 = vmatprep.subr.bf16.mxu1 %v12040_v30  ;;  %v9295_v30 = vrot.slane %v12909_v29, %v12597_v62 }
 0x598   :  { %9201 = vmatpush1.bf16.msra.mxu0 %v12035_v58 }
 0x599   :  { %9242 = vmatpush1.bf16.msra.mxu1 %v12038_v23  ;;  %9202 = vmatprep.subr.bf16.mxu0 %v12043_v42  ;;  %v9299_v42 = vrot.slane %v12909_v29, %v12601_v0 }
 0x59a   :  { %9243 = vmatprep.subr.bf16.mxu1 %v12046_v48 }
 0x59c   :  { %9203 = vmatpush1.bf16.msra.mxu0 %v12041_v4 }
 0x59d   :  { %9244 = vmatpush1.bf16.msra.mxu1 %v12044_v22  ;;  %9204 = vmatprep.subr.bf16.mxu0 %v12049_v52 }
 0x59e   :  { %9245 = vmatprep.subr.bf16.mxu1 %v12052_v31 }
 0x5a0   :  { %9205 = vmatpush1.bf16.msra.mxu0 %v12047_v43 }
 0x5a1   :  { %9246 = vmatpush1.bf16.msra.mxu1 %v12050_v47 }
 0x5a3   :  { %9207 = vmatmul.mubr.bf16.vlgmr.msra.gmra.mrb[92].mxu0 %v12867_v8 }
 0x5a4   :  { %9248 = vmatmul.mubr.bf16.vlgmr.msra.gmra.mrb[92].mxu1 %v12871_v38 }
 0x5b6   :  { %v8962_v9 = vpop.f32.mrb[80].mxu0 }
 0x5b7   :  { %v8963_v53 = vadd.f32 %v8962_v9, %v12861_v60  ;;  %v9003_v34 = vpop.f32.mrb[80].mxu1  ;;  %v8964_v10 = vpop.f32.mrb[81].mxu0 }
 0x5b8   :  { %v8965_v56 = vadd.f32 %v8964_v10, %v12863_v24  ;;  %v9005_v3 = vpop.f32.mrb[81].mxu1  ;;  %v8966_v6 = vpop.f32.mrb[82].mxu0 }
 0x5b9   :  { %v9004_v33 = vadd.f32 %v9003_v34, %v8963_v53  ;;  %v9007_v12 = vpop.f32.mrb[82].mxu1  ;;  %v8967_v45 = vpop.f32.mrb[83].mxu0 }
 0x5ba   :  { %v9006_v15 = vadd.f32 %v9005_v3, %v8965_v56  ;;  %v9008_v19 = vpop.f32.mrb[83].mxu1 }
 0x5f6   :  { %v9044_v17 = vpop.f32.mrb[84].mxu0 }
 0x5f7   :  { %v9045_v21 = vadd.f32 %v9044_v17, %v9004_v33  ;;  %v9085_v46 = vpop.f32.mrb[84].mxu1  ;;  %v9046_v8 = vpop.f32.mrb[85].mxu0 }
 0x5f8   :  { %v9047_v32 = vadd.f32 %v9046_v8, %v9006_v15  ;;  %v9087_v38 = vpop.f32.mrb[85].mxu1  ;;  %v9048_v49 = vpop.f32.mrb[86].mxu0 }
 0x5f9   :  { %v9086_v13 = vadd.f32 %v9085_v46, %v9045_v21  ;;  %v9089_v60 = vpop.f32.mrb[86].mxu1  ;;  %v9049_v36 = vpop.f32.mrb[87].mxu0 }
 0x5fa   :  { %v9088_v18 = vadd.f32 %v9087_v38, %v9047_v32  ;;  %v9090_v51 = vpop.f32.mrb[87].mxu1 }
 0x636   :  { %v9126_v24 = vpop.f32.mrb[88].mxu0 }
 0x637   :  { %v9127_v61 = vadd.f32 %v9126_v24, %v9086_v13  ;;  %v9167_v54 = vpop.f32.mrb[88].mxu1  ;;  %v9128_v35 = vpop.f32.mrb[89].mxu0 }
 0x638   :  { %v9129_v57 = vadd.f32 %v9128_v35, %v9088_v18  ;;  %v9169_v7 = vpop.f32.mrb[89].mxu1  ;;  %v9130_v63 = vpop.f32.mrb[90].mxu0 }
 0x639   :  { %v9168_v16 = vadd.f32 %v9167_v54, %v9127_v61  ;;  %v9171_v44 = vpop.f32.mrb[90].mxu1  ;;  %v9131_v5 = vpop.f32.mrb[91].mxu0 }
 0x63a   :  { %v9170_v41 = vadd.f32 %v9169_v7, %v9129_v57  ;;  %v9172_v26 = vpop.f32.mrb[91].mxu1 }
 0x676   :  { %v9208_v37 = vpop.f32.mrb[92].mxu0 }
 0x677   :  { %v9209_v20 = vadd.f32 %v9208_v37, %v9168_v16  ;;  %v9249_v50 = vpop.f32.mrb[92].mxu1  ;;  %v9210_v14 = vpop.f32.mrb[93].mxu0 }
 0x678   :  { %v9211_v11 = vadd.f32 %v9210_v14, %v9170_v41  ;;  %v9251_v39 = vpop.f32.mrb[93].mxu1  ;;  %v9212_v59 = vpop.f32.mrb[94].mxu0 }
 0x679   :  { %v9250_v28 = vadd.f32 %v9249_v50, %v9209_v20  ;;  %v9253_v1 = vpop.f32.mrb[94].mxu1  ;;  %v9213_v27 = vpop.f32.mrb[95].mxu0 }
 0x67a   :  { %v9252_v58 = vadd.f32 %v9251_v39, %v9211_v11  ;;  %v9254_v23 = vpop.f32.mrb[95].mxu1 }
 0x67b   :  { %v9280_v48 = vadd.f32 %v9269_v25, %v9250_v28 }
 0x67c   :  { %v9281_v4 = vadd.f32 %v9273_v2, %v9252_v58 }
 0x67d   :  { %v9306_v22 = vmul.f32 %v9295_v30, %v9280_v48 }
 0x67e   :  { %v9307_v52 = vmul.f32 %v9299_v42, %v9281_v4 }
 0x67f   :  { %v9309_v31 = vadd.f32 %v12921_v55, %v9306_v22 }
 0x681   :  { %v9310_v43 = vadd.f32 %v9309_v31, %v9307_v52 }
 0x683   :  { %9311 = vadd.xlane.f32.xlu0 %v9310_v43 }
 0x710   :  { %v9312_v47 = vpop.xlane.xlu0 %9311 }
 0x711   :  { %v9320_v9 = vadd.f32 %v10501_v40, %v9312_v47 }
 0x713   :  { %9322 = vst.msk [vmem:[%s12950_s11] sm:$0xff] %vm9321_vm1, %v9320_v9 }
 0x714   :  { %9327 = vsyncpa [#allocation4], 1 }
 0x715   :  { %9328 = vsyncpa [#allocation6], 1 }
 0x716   :  { %9329 = vsyncpa [#allocation9], 1 }
 0x717   :  { %9330 = vsyncpa [#allocation12], 1 }
 0x718   :  { %9331 = vsyncpa [#allocation15], 1 }
 0x719   :  { %9332 = vsyncpa [#allocation18], 1 }

</bundles_post_ra>
